<compile_context>
chip_gen: v6e
topology: v6e:2x2x1
jax: 0.10.0
libtpu: 0.0.40
codegen_flags: <defaults>
</compile_context>

<pallas_src>
import functools

import jax
import jax.numpy as jnp
import numpy as np
from jax import lax
from jax.experimental import pallas as pl
from jax.experimental.pallas import tpu as pltpu

# Constants from the PyTorch module
DECAY = [1.0, 0.9, 0.81, 0.73, 0.66, 0.59, 0.53, 0.48]
ETA = 4.0
KP = 1.0

# Small, TPU-friendly configuration (width kept a multiple of 128)
MAP_SIZE = 6.4
MAP_RESOLUTION = 0.05
WIDTH = int(round(MAP_SIZE / MAP_RESOLUTION))   # 128
OBS_LEN = 8
PRED_LEN = 8                                    # == len(DECAY) (eth_8 model)
BATCH = 2
HUMAN_NUM = 3                                   # TODO(synk): human_num is read
                                                # dynamically from obs in torch;
                                                # compiled in as static here.
N_COLS = 4                                      # observation columns >= max(HUMAN_NUM, 2)

_CENTER = MAP_SIZE / 2.0
_STEP = MAP_SIZE / (WIDTH - 1)                  # linspace(center, -center, W) spacing

# --- flat per-batch scalar table layout (single SMEM input) -----------------
_GOAL_OFF = 0                                   # goal x, y
_RAD_OFF = 2                                    # radii            [H]
_CMF_OFF = 2 + HUMAN_NUM                        # comfort dists    [H]
_PRED_OFF = 2 + 2 * HUMAN_NUM                   # pred traj flat   [t, h, xy]
_TABLE_W = _PRED_OFF + PRED_LEN * HUMAN_NUM * 2  # 56 scalars / batch row

# spatial strip-mining: work on (16, 128) row strips (2 vregs per live array)
_STRIP = 16
_N_STRIPS = WIDTH // _STRIP


def _potential_map_kernel(tbl_ref, out_ref, *, bs_per_step):
    """One grid step == `bs_per_step` batch elements.

    tbl_ref: SMEM (B, 56)                flat scalar table
             [0:2] goal, [2:2+H] radius, [2+H:2+2H] comfort,
             [2+2H:] predicted trajectories flat [t, h, xy]
    out_ref: VMEM (bs_per_step, W, W)    normalized potential map
    """
    W = WIDTH
    S = _STRIP

    # lane-direction coordinate (strip-invariant): py[j] = center - j*step,
    # matching torch.meshgrid(linspace(c,-c,W), ..., indexing='ij') axis 1.
    jj = lax.broadcasted_iota(jnp.int32, (S, W), 1).astype(jnp.float32)
    py = _CENTER - jj * _STEP

    b0 = pl.program_id(0) * bs_per_step
    for bb in range(bs_per_step):              # static batch loop (tiny)
        b = b0 + bb
        gx = tbl_ref[b, _GOAL_OFF + 0]
        gy = tbl_ref[b, _GOAL_OFF + 1]

        # ---- pass 1: per-strip potential + running scalar min/max ---------
        def strip_body(s, carry):
            u_min, u_max = carry
            row0 = pl.multiple_of(s * S, S)
            ii = (lax.broadcasted_iota(jnp.int32, (S, W), 0) + row0)
            px = _CENTER - ii.astype(jnp.float32) * _STEP

            # obstacle repulsive force: amax over (human, pred step) of
            # decay[t] * uo.  Squared-distance compares (dq <= c <=> dq^2 <= c^2,
            # valid because radius/comfort are non-negative); ETA*decay[t] is
            # folded into the select constants; uo >= 0 so init to 0.
            uo = jnp.zeros((S, W), jnp.float32)
            for h in range(HUMAN_NUM):
                r = tbl_ref[b, _RAD_OFF + h]
                c = tbl_ref[b, _CMF_OFF + h]
                r2 = r * r                     # hoisted out of the t loop
                c2 = c * c
                for t in range(PRED_LEN):
                    base = _PRED_OFF + (t * HUMAN_NUM + h) * 2
                    ox = tbl_ref[b, base + 0]
                    oy = tbl_ref[b, base + 1]
                    dx = px - ox
                    dy = py - oy
                    dq2 = dx * dx + dy * dy
                    # radius takes precedence over comfort distance (as torch)
                    u = jnp.where(dq2 <= r2, ETA * DECAY[t],
                                  jnp.where(dq2 <= c2, 0.5 * ETA * DECAY[t], 0.0))
                    uo = jnp.maximum(uo, u)

            # goal attractive force, computed AFTER the repulsive loop so it
            # is not live across the 24 unrolled iterations.
            ug = 0.5 * KP * jnp.sqrt((px - gx) ** 2 + (py - gy) ** 2)
            u_tot = ug + uo

            out_ref[bb, pl.ds(row0, S), :] = u_tot       # unnormalized strip
            return (jnp.minimum(u_min, jnp.min(u_tot)),
                    jnp.maximum(u_max, jnp.max(u_tot)))

        u_min, u_max = lax.fori_loop(
            0, _N_STRIPS, strip_body,
            (jnp.float32(jnp.inf), jnp.float32(-jnp.inf)))

        # ---- pass 2: in-place normalization (scalar recip + vector mul) ----
        # NOTE: span == 0 (constant map) returns all zeros instead of torch's
        # 0/0 NaN; deliberate, documented divergence.
        span = u_max - u_min
        inv_span = jnp.where(span > 0.0, 1.0 / span, 0.0)
        out_ref[bb, :, :] = (out_ref[bb, :, :] - u_min) * inv_span


def _has_megacore():
    """True on chips with 2 TensorCores sharing one device (v4 / v5p / v7x)."""
    try:
        kind = (jax.devices()[0].device_kind or "").lower()
    except Exception:
        return False
    return ("v7" in kind) or ("v4" in kind) or ("v5p" in kind)


def potential_map(goal, radius, comfort, pred_traj):
    B = goal.shape[0]
    H = radius.shape[1]
    W = WIDTH
    assert H == HUMAN_NUM and pred_traj.shape[1] == PRED_LEN

    # one flat (B, 56) f32 scalar table -> single SMEM input
    table = jnp.concatenate(
        [goal, radius, comfort, pred_traj.reshape(B, PRED_LEN * H * 2)],
        axis=1).astype(jnp.float32)

    # megacore: one batch per grid step ("parallel" -> one per TensorCore);
    # single-TC v5e/v6e: fold the whole batch into one grid step.
    if _has_megacore() and B > 1 and B % 2 == 0:
        bs_per_step = 1
    else:
        bs_per_step = B
    n_steps = B // bs_per_step

    kernel = functools.partial(_potential_map_kernel, bs_per_step=bs_per_step)
    grid_spec = pl.GridSpec(
        grid=(n_steps,),
        in_specs=[pl.BlockSpec((B, _TABLE_W), lambda g: (0, 0),
                               memory_space=pltpu.MemorySpace.SMEM)],
        out_specs=pl.BlockSpec((bs_per_step, W, W), lambda g: (g, 0, 0)),
    )
    out = pl.pallas_call(
        kernel,
        out_shape=jax.ShapeDtypeStruct((B, W, W), jnp.float32),
        grid_spec=grid_spec,
        compiler_params=pltpu.CompilerParams(
            dimension_semantics=("parallel",)),
    )(table)
    return out[:, None]                         # (B, 1, W, W)


def _const_velocity_pred(obs_traj):
    """Constant-velocity extrapolation, output layout (B, PRED_LEN, H, 2).

    TODO(synk): stands in for the checkpoint-loaded Social GAN
    TrajectoryGenerator (LSTM generator), which has no Pallas equivalent.
    """
    last = obs_traj[:, -1]                                      # (B, H, 2)
    vel = (obs_traj[:, -1] - obs_traj[:, 0]) / (OBS_LEN - 1)    # (B, H, 2)
    steps = jnp.arange(1, PRED_LEN + 1, dtype=jnp.float32)
    pred = last[:, None, :, :] + steps[None, :, None, None] * vel[:, None, :, :]
    return pred.astype(jnp.float32)


def preprocessor_forward(observations):
    """Steady-state Preprocessor.forward path (human_num > 0, not trial call).

    observations: (B, OBS_LEN + 2, N, 2) float32
      [:, :-2, :H, :]   pedestrian observed trajectories
      [:, -2, :H, 0/1]  comfort distance / radius
      [:, -1, 0, :]     goal position
      [:, -1, 1, 0]     human_num (treated as static here)
    Returns (B, 1, WIDTH, WIDTH) normalized potential map.
    """
    goal = observations[:, -1, 0, :].astype(jnp.float32)               # (B, 2)
    radius = observations[:, -2, :HUMAN_NUM, 1].astype(jnp.float32)    # (B, H)
    comfort = observations[:, -2, :HUMAN_NUM, 0].astype(jnp.float32)   # (B, H)
    obs_traj = observations[:, :-2, :HUMAN_NUM, :]                     # (B, T, H, 2)
    pred_traj = _const_velocity_pred(obs_traj)                         # (B, T_pred, H, 2)
    return potential_map(goal, radius, comfort, pred_traj)


def preprocessor_reference(observations):
    """Pure-JAX reference mirroring the torch ops (for verification)."""
    B = observations.shape[0]
    goal = observations[:, -1, 0, :]
    radius = observations[:, -2, :HUMAN_NUM, 1]
    comfort = observations[:, -2, :HUMAN_NUM, 0]
    obs_traj = observations[:, :-2, :HUMAN_NUM, :]

    pred = _const_velocity_pred(obs_traj)
    pred_b = pred.reshape(B, 1, 1, PRED_LEN, HUMAN_NUM, 2)

    # same affine grid formula as the kernel (== torch linspace(c, -c, W))
    lin = _CENTER - jnp.arange(WIDTH, dtype=jnp.float32) * _STEP
    pmap_x, pmap_y = jnp.meshgrid(lin, lin, indexing="ij")

    ug = 0.5 * KP * jnp.sqrt(
        (pmap_x[None] - goal[:, 0, None, None]) ** 2
        + (pmap_y[None] - goal[:, 1, None, None]) ** 2)

    px = pmap_x.reshape(1, WIDTH, WIDTH, 1, 1)
    py = pmap_y.reshape(1, WIDTH, WIDTH, 1, 1)
    dq = jnp.sqrt((px - pred_b[..., 0]) ** 2 + (py - pred_b[..., 1]) ** 2)
    r = radius.reshape(B, 1, 1, 1, HUMAN_NUM)
    c = comfort.reshape(B, 1, 1, 1, HUMAN_NUM)
    uo = jnp.where(dq <= c, 0.5 * ETA, 0.0)
    uo = jnp.where(dq <= r, ETA, uo)
    uo = jnp.transpose(uo, (0, 1, 2, 4, 3))
    decay = jnp.asarray(DECAY, dtype=jnp.float32).reshape(1, 1, 1, 1, -1)
    uo = jnp.max(decay * uo, axis=(-2, -1))
    u_total = ug + uo
    u_min = jnp.min(u_total, axis=(-2, -1), keepdims=True)
    u_max = jnp.max(u_total, axis=(-2, -1), keepdims=True)
    return ((u_total - u_min) / (u_max - u_min))[:, None]


if __name__ == "__main__":
    key = jax.random.PRNGKey(0)
    k1, k2, k3, k4, k5 = jax.random.split(key, 5)

    obs = jnp.zeros((BATCH, OBS_LEN + 2, N_COLS, 2), dtype=jnp.float32)
    # pedestrian observed trajectories (straight-ish walks inside the map)
    traj0 = jax.random.uniform(k1, (BATCH, 1, HUMAN_NUM, 2), minval=-2.5, maxval=2.5)
    vel0 = jax.random.uniform(k2, (BATCH, 1, HUMAN_NUM, 2), minval=-0.2, maxval=0.2)
    t = jnp.arange(OBS_LEN, dtype=jnp.float32).reshape(1, OBS_LEN, 1, 1)
    obs = obs.at[:, :OBS_LEN, :HUMAN_NUM, :].set(traj0 + t * vel0)
    # comfort distance (col 0) and radius (col 1) -- non-negative, as required
    # by the squared-distance comparison in the kernel
    comfort = jax.random.uniform(k3, (BATCH, HUMAN_NUM), minval=0.8, maxval=1.2)
    radius = jax.random.uniform(k4, (BATCH, HUMAN_NUM), minval=0.2, maxval=0.4)
    obs = obs.at[:, -2, :HUMAN_NUM, 0].set(comfort)
    obs = obs.at[:, -2, :HUMAN_NUM, 1].set(radius)
    # goal position and (static) human_num
    goal = jax.random.uniform(k5, (BATCH, 2), minval=-3.0, maxval=3.0)
    obs = obs.at[:, -1, 0, :].set(goal)
    obs = obs.at[:, -1, 1, 0].set(float(HUMAN_NUM))

    out = preprocessor_forward(obs)
    out = jax.block_until_ready(out)

    assert out.shape == (BATCH, 1, WIDTH, WIDTH)
    ref = preprocessor_reference(obs)
    np.testing.assert_allclose(np.asarray(out), np.asarray(ref),
                               rtol=1e-5, atol=1e-5)
    print("KERNEL_OK")
</pallas_src>

<mosaic_0001>
module attributes {stable_mosaic.version = 11 : i64} {
  func.func @_potential_map_kernel(%arg0: i32, %arg1: memref<2x56xf32, #tpu.memory_space<smem>>, %arg2: memref<2x128x128xf32, #tpu.memory_space<vmem>>) attributes {dimension_semantics = [#tpu.dimension_semantics<parallel>], iteration_bounds = array<i64: 1>, scalar_prefetch = 0 : i64, scratch_operands = 0 : i64, tpu.core_type = #tpu.core_type<tc>, window_params = [{transform_indices = @transform_0, window_bounds = array<i64: 2, 56>}, {transform_indices = @transform_1, window_bounds = array<i64: 2, 128, 128>}]} {
    %0 = tpu.iota {dimensions = array<i32: 1>} : vector<16x128xi32>
    %1 = arith.sitofp %0 : vector<16x128xi32> to vector<16x128xf32>
    %cst = arith.constant 5.039370e-02 : f32
    %2 = vector.broadcast %cst : f32 to vector<16x128xf32>
    %3 = arith.mulf %1, %2 : vector<16x128xf32>
    %cst_0 = arith.constant 3.200000e+00 : f32
    %4 = vector.broadcast %cst_0 : f32 to vector<16x128xf32>
    %5 = arith.subf %4, %3 : vector<16x128xf32>
    %c2_i32 = arith.constant 2 : i32
    %6 = arith.muli %arg0, %c2_i32 : i32
    %c0_i32 = arith.constant 0 : i32
    %7 = arith.addi %6, %c0_i32 : i32
    %8 = arith.index_cast %7 : i32 to index
    %c0 = arith.constant 0 : index
    %9 = memref.load %arg1[%8, %c0] : memref<2x56xf32, #tpu.memory_space<smem>>
    %10 = arith.index_cast %7 : i32 to index
    %c1 = arith.constant 1 : index
    %11 = memref.load %arg1[%10, %c1] : memref<2x56xf32, #tpu.memory_space<smem>>
    %cst_1 = arith.constant 0x7F800000 : f32
    %cst_2 = arith.constant 0xFF800000 : f32
    %c0_i32_3 = arith.constant 0 : i32
    %c8_i32 = arith.constant 8 : i32
    %12 = arith.addi %c0_i32_3, %c8_i32 : i32
    %c1_i32 = arith.constant 1 : i32
    %13:2 = scf.for %arg3 = %c0_i32_3 to %12 step %c1_i32 iter_args(%arg4 = %cst_1, %arg5 = %cst_2) -> (f32, f32)  : i32 {
      %c16_i32 = arith.constant 16 : i32
      %47 = arith.muli %arg3, %c16_i32 : i32
      %48 = tpu.assume_multiple %47, 16 : i32
      %49 = tpu.iota {dimensions = array<i32: 0>} : vector<16x128xi32>
      %50 = vector.broadcast %48 : i32 to vector<16x128xi32>
      %51 = arith.addi %49, %50 : vector<16x128xi32>
      %52 = arith.sitofp %51 : vector<16x128xi32> to vector<16x128xf32>
      %cst_32 = arith.constant 5.039370e-02 : f32
      %53 = vector.broadcast %cst_32 : f32 to vector<16x128xf32>
      %54 = arith.mulf %52, %53 : vector<16x128xf32>
      %cst_33 = arith.constant 3.200000e+00 : f32
      %55 = vector.broadcast %cst_33 : f32 to vector<16x128xf32>
      %56 = arith.subf %55, %54 : vector<16x128xf32>
      %cst_34 = arith.constant 0.000000e+00 : f32
      %57 = vector.broadcast %cst_34 : f32 to vector<16x128xf32>
      %58 = arith.index_cast %7 : i32 to index
      %c2 = arith.constant 2 : index
      %59 = memref.load %arg1[%58, %c2] : memref<2x56xf32, #tpu.memory_space<smem>>
      %60 = arith.index_cast %7 : i32 to index
      %c5 = arith.constant 5 : index
      %61 = memref.load %arg1[%60, %c5] : memref<2x56xf32, #tpu.memory_space<smem>>
      %62 = arith.mulf %59, %59 : f32
      %63 = arith.mulf %61, %61 : f32
      %64 = arith.index_cast %7 : i32 to index
      %c8 = arith.constant 8 : index
      %65 = memref.load %arg1[%64, %c8] : memref<2x56xf32, #tpu.memory_space<smem>>
      %66 = arith.index_cast %7 : i32 to index
      %c9 = arith.constant 9 : index
      %67 = memref.load %arg1[%66, %c9] : memref<2x56xf32, #tpu.memory_space<smem>>
      %68 = vector.broadcast %65 : f32 to vector<16x128xf32>
      %69 = arith.subf %56, %68 : vector<16x128xf32>
      %70 = vector.broadcast %67 : f32 to vector<16x128xf32>
      %71 = arith.subf %5, %70 : vector<16x128xf32>
      %72 = arith.mulf %69, %69 : vector<16x128xf32>
      %73 = arith.mulf %71, %71 : vector<16x128xf32>
      %74 = arith.addf %72, %73 : vector<16x128xf32>
      %75 = vector.broadcast %62 : f32 to vector<16x128xf32>
      %76 = arith.cmpf ole, %74, %75 : vector<16x128xf32>
      %77 = vector.broadcast %63 : f32 to vector<16x128xf32>
      %78 = arith.cmpf ole, %74, %77 : vector<16x128xf32>
      %cst_35 = arith.constant 2.000000e+00 : f32
      %cst_36 = arith.constant 0.000000e+00 : f32
      %79 = vector.broadcast %cst_35 : f32 to vector<16x128xf32>
      %80 = vector.broadcast %cst_36 : f32 to vector<16x128xf32>
      %81 = arith.select %78, %79, %80 : vector<16x128xi1>, vector<16x128xf32>
      %cst_37 = arith.constant 4.000000e+00 : f32
      %82 = vector.broadcast %cst_37 : f32 to vector<16x128xf32>
      %83 = arith.select %76, %82, %81 : vector<16x128xi1>, vector<16x128xf32>
      %84 = arith.maximumf %57, %83 : vector<16x128xf32>
      %85 = arith.index_cast %7 : i32 to index
      %c14 = arith.constant 14 : index
      %86 = memref.load %arg1[%85, %c14] : memref<2x56xf32, #tpu.memory_space<smem>>
      %87 = arith.index_cast %7 : i32 to index
      %c15 = arith.constant 15 : index
      %88 = memref.load %arg1[%87, %c15] : memref<2x56xf32, #tpu.memory_space<smem>>
      %89 = vector.broadcast %86 : f32 to vector<16x128xf32>
      %90 = arith.subf %56, %89 : vector<16x128xf32>
      %91 = vector.broadcast %88 : f32 to vector<16x128xf32>
      %92 = arith.subf %5, %91 : vector<16x128xf32>
      %93 = arith.mulf %90, %90 : vector<16x128xf32>
      %94 = arith.mulf %92, %92 : vector<16x128xf32>
      %95 = arith.addf %93, %94 : vector<16x128xf32>
      %96 = vector.broadcast %62 : f32 to vector<16x128xf32>
      %97 = arith.cmpf ole, %95, %96 : vector<16x128xf32>
      %98 = vector.broadcast %63 : f32 to vector<16x128xf32>
      %99 = arith.cmpf ole, %95, %98 : vector<16x128xf32>
      %cst_38 = arith.constant 1.800000e+00 : f32
      %cst_39 = arith.constant 0.000000e+00 : f32
      %100 = vector.broadcast %cst_38 : f32 to vector<16x128xf32>
      %101 = vector.broadcast %cst_39 : f32 to vector<16x128xf32>
      %102 = arith.select %99, %100, %101 : vector<16x128xi1>, vector<16x128xf32>
      %cst_40 = arith.constant 3.600000e+00 : f32
      %103 = vector.broadcast %cst_40 : f32 to vector<16x128xf32>
      %104 = arith.select %97, %103, %102 : vector<16x128xi1>, vector<16x128xf32>
      %105 = arith.maximumf %84, %104 : vector<16x128xf32>
      %106 = arith.index_cast %7 : i32 to index
      %c20 = arith.constant 20 : index
      %107 = memref.load %arg1[%106, %c20] : memref<2x56xf32, #tpu.memory_space<smem>>
      %108 = arith.index_cast %7 : i32 to index
      %c21 = arith.constant 21 : index
      %109 = memref.load %arg1[%108, %c21] : memref<2x56xf32, #tpu.memory_space<smem>>
      %110 = vector.broadcast %107 : f32 to vector<16x128xf32>
      %111 = arith.subf %56, %110 : vector<16x128xf32>
      %112 = vector.broadcast %109 : f32 to vector<16x128xf32>
      %113 = arith.subf %5, %112 : vector<16x128xf32>
      %114 = arith.mulf %111, %111 : vector<16x128xf32>
      %115 = arith.mulf %113, %113 : vector<16x128xf32>
      %116 = arith.addf %114, %115 : vector<16x128xf32>
      %117 = vector.broadcast %62 : f32 to vector<16x128xf32>
      %118 = arith.cmpf ole, %116, %117 : vector<16x128xf32>
      %119 = vector.broadcast %63 : f32 to vector<16x128xf32>
      %120 = arith.cmpf ole, %116, %119 : vector<16x128xf32>
      %cst_41 = arith.constant 1.620000e+00 : f32
      %cst_42 = arith.constant 0.000000e+00 : f32
      %121 = vector.broadcast %cst_41 : f32 to vector<16x128xf32>
      %122 = vector.broadcast %cst_42 : f32 to vector<16x128xf32>
      %123 = arith.select %120, %121, %122 : vector<16x128xi1>, vector<16x128xf32>
      %cst_43 = arith.constant 3.240000e+00 : f32
      %124 = vector.broadcast %cst_43 : f32 to vector<16x128xf32>
      %125 = arith.select %118, %124, %123 : vector<16x128xi1>, vector<16x128xf32>
      %126 = arith.maximumf %105, %125 : vector<16x128xf32>
      %127 = arith.index_cast %7 : i32 to index
      %c26 = arith.constant 26 : index
      %128 = memref.load %arg1[%127, %c26] : memref<2x56xf32, #tpu.memory_space<smem>>
      %129 = arith.index_cast %7 : i32 to index
      %c27 = arith.constant 27 : index
      %130 = memref.load %arg1[%129, %c27] : memref<2x56xf32, #tpu.memory_space<smem>>
      %131 = vector.broadcast %128 : f32 to vector<16x128xf32>
      %132 = arith.subf %56, %131 : vector<16x128xf32>
      %133 = vector.broadcast %130 : f32 to vector<16x128xf32>
      %134 = arith.subf %5, %133 : vector<16x128xf32>
      %135 = arith.mulf %132, %132 : vector<16x128xf32>
      %136 = arith.mulf %134, %134 : vector<16x128xf32>
      %137 = arith.addf %135, %136 : vector<16x128xf32>
      %138 = vector.broadcast %62 : f32 to vector<16x128xf32>
      %139 = arith.cmpf ole, %137, %138 : vector<16x128xf32>
      %140 = vector.broadcast %63 : f32 to vector<16x128xf32>
      %141 = arith.cmpf ole, %137, %140 : vector<16x128xf32>
      %cst_44 = arith.constant 1.460000e+00 : f32
      %cst_45 = arith.constant 0.000000e+00 : f32
      %142 = vector.broadcast %cst_44 : f32 to vector<16x128xf32>
      %143 = vector.broadcast %cst_45 : f32 to vector<16x128xf32>
      %144 = arith.select %141, %142, %143 : vector<16x128xi1>, vector<16x128xf32>
      %cst_46 = arith.constant 2.920000e+00 : f32
      %145 = vector.broadcast %cst_46 : f32 to vector<16x128xf32>
      %146 = arith.select %139, %145, %144 : vector<16x128xi1>, vector<16x128xf32>
      %147 = arith.maximumf %126, %146 : vector<16x128xf32>
      %148 = arith.index_cast %7 : i32 to index
      %c32 = arith.constant 32 : index
      %149 = memref.load %arg1[%148, %c32] : memref<2x56xf32, #tpu.memory_space<smem>>
      %150 = arith.index_cast %7 : i32 to index
      %c33 = arith.constant 33 : index
      %151 = memref.load %arg1[%150, %c33] : memref<2x56xf32, #tpu.memory_space<smem>>
      %152 = vector.broadcast %149 : f32 to vector<16x128xf32>
      %153 = arith.subf %56, %152 : vector<16x128xf32>
      %154 = vector.broadcast %151 : f32 to vector<16x128xf32>
      %155 = arith.subf %5, %154 : vector<16x128xf32>
      %156 = arith.mulf %153, %153 : vector<16x128xf32>
      %157 = arith.mulf %155, %155 : vector<16x128xf32>
      %158 = arith.addf %156, %157 : vector<16x128xf32>
      %159 = vector.broadcast %62 : f32 to vector<16x128xf32>
      %160 = arith.cmpf ole, %158, %159 : vector<16x128xf32>
      %161 = vector.broadcast %63 : f32 to vector<16x128xf32>
      %162 = arith.cmpf ole, %158, %161 : vector<16x128xf32>
      %cst_47 = arith.constant 1.320000e+00 : f32
      %cst_48 = arith.constant 0.000000e+00 : f32
      %163 = vector.broadcast %cst_47 : f32 to vector<16x128xf32>
      %164 = vector.broadcast %cst_48 : f32 to vector<16x128xf32>
      %165 = arith.select %162, %163, %164 : vector<16x128xi1>, vector<16x128xf32>
      %cst_49 = arith.constant 2.640000e+00 : f32
      %166 = vector.broadcast %cst_49 : f32 to vector<16x128xf32>
      %167 = arith.select %160, %166, %165 : vector<16x128xi1>, vector<16x128xf32>
      %168 = arith.maximumf %147, %167 : vector<16x128xf32>
      %169 = arith.index_cast %7 : i32 to index
      %c38 = arith.constant 38 : index
      %170 = memref.load %arg1[%169, %c38] : memref<2x56xf32, #tpu.memory_space<smem>>
      %171 = arith.index_cast %7 : i32 to index
      %c39 = arith.constant 39 : index
      %172 = memref.load %arg1[%171, %c39] : memref<2x56xf32, #tpu.memory_space<smem>>
      %173 = vector.broadcast %170 : f32 to vector<16x128xf32>
      %174 = arith.subf %56, %173 : vector<16x128xf32>
      %175 = vector.broadcast %172 : f32 to vector<16x128xf32>
      %176 = arith.subf %5, %175 : vector<16x128xf32>
      %177 = arith.mulf %174, %174 : vector<16x128xf32>
      %178 = arith.mulf %176, %176 : vector<16x128xf32>
      %179 = arith.addf %177, %178 : vector<16x128xf32>
      %180 = vector.broadcast %62 : f32 to vector<16x128xf32>
      %181 = arith.cmpf ole, %179, %180 : vector<16x128xf32>
      %182 = vector.broadcast %63 : f32 to vector<16x128xf32>
      %183 = arith.cmpf ole, %179, %182 : vector<16x128xf32>
      %cst_50 = arith.constant 1.180000e+00 : f32
      %cst_51 = arith.constant 0.000000e+00 : f32
      %184 = vector.broadcast %cst_50 : f32 to vector<16x128xf32>
      %185 = vector.broadcast %cst_51 : f32 to vector<16x128xf32>
      %186 = arith.select %183, %184, %185 : vector<16x128xi1>, vector<16x128xf32>
      %cst_52 = arith.constant 2.360000e+00 : f32
      %187 = vector.broadcast %cst_52 : f32 to vector<16x128xf32>
      %188 = arith.select %181, %187, %186 : vector<16x128xi1>, vector<16x128xf32>
      %189 = arith.maximumf %168, %188 : vector<16x128xf32>
      %190 = arith.index_cast %7 : i32 to index
      %c44 = arith.constant 44 : index
      %191 = memref.load %arg1[%190, %c44] : memref<2x56xf32, #tpu.memory_space<smem>>
      %192 = arith.index_cast %7 : i32 to index
      %c45 = arith.constant 45 : index
      %193 = memref.load %arg1[%192, %c45] : memref<2x56xf32, #tpu.memory_space<smem>>
      %194 = vector.broadcast %191 : f32 to vector<16x128xf32>
      %195 = arith.subf %56, %194 : vector<16x128xf32>
      %196 = vector.broadcast %193 : f32 to vector<16x128xf32>
      %197 = arith.subf %5, %196 : vector<16x128xf32>
      %198 = arith.mulf %195, %195 : vector<16x128xf32>
      %199 = arith.mulf %197, %197 : vector<16x128xf32>
      %200 = arith.addf %198, %199 : vector<16x128xf32>
      %201 = vector.broadcast %62 : f32 to vector<16x128xf32>
      %202 = arith.cmpf ole, %200, %201 : vector<16x128xf32>
      %203 = vector.broadcast %63 : f32 to vector<16x128xf32>
      %204 = arith.cmpf ole, %200, %203 : vector<16x128xf32>
      %cst_53 = arith.constant 1.060000e+00 : f32
      %cst_54 = arith.constant 0.000000e+00 : f32
      %205 = vector.broadcast %cst_53 : f32 to vector<16x128xf32>
      %206 = vector.broadcast %cst_54 : f32 to vector<16x128xf32>
      %207 = arith.select %204, %205, %206 : vector<16x128xi1>, vector<16x128xf32>
      %cst_55 = arith.constant 2.120000e+00 : f32
      %208 = vector.broadcast %cst_55 : f32 to vector<16x128xf32>
      %209 = arith.select %202, %208, %207 : vector<16x128xi1>, vector<16x128xf32>
      %210 = arith.maximumf %189, %209 : vector<16x128xf32>
      %211 = arith.index_cast %7 : i32 to index
      %c50 = arith.constant 50 : index
      %212 = memref.load %arg1[%211, %c50] : memref<2x56xf32, #tpu.memory_space<smem>>
      %213 = arith.index_cast %7 : i32 to index
      %c51 = arith.constant 51 : index
      %214 = memref.load %arg1[%213, %c51] : memref<2x56xf32, #tpu.memory_space<smem>>
      %215 = vector.broadcast %212 : f32 to vector<16x128xf32>
      %216 = arith.subf %56, %215 : vector<16x128xf32>
      %217 = vector.broadcast %214 : f32 to vector<16x128xf32>
      %218 = arith.subf %5, %217 : vector<16x128xf32>
      %219 = arith.mulf %216, %216 : vector<16x128xf32>
      %220 = arith.mulf %218, %218 : vector<16x128xf32>
      %221 = arith.addf %219, %220 : vector<16x128xf32>
      %222 = vector.broadcast %62 : f32 to vector<16x128xf32>
      %223 = arith.cmpf ole, %221, %222 : vector<16x128xf32>
      %224 = vector.broadcast %63 : f32 to vector<16x128xf32>
      %225 = arith.cmpf ole, %221, %224 : vector<16x128xf32>
      %cst_56 = arith.constant 0.959999978 : f32
      %cst_57 = arith.constant 0.000000e+00 : f32
      %226 = vector.broadcast %cst_56 : f32 to vector<16x128xf32>
      %227 = vector.broadcast %cst_57 : f32 to vector<16x128xf32>
      %228 = arith.select %225, %226, %227 : vector<16x128xi1>, vector<16x128xf32>
      %cst_58 = arith.constant 1.920000e+00 : f32
      %229 = vector.broadcast %cst_58 : f32 to vector<16x128xf32>
      %230 = arith.select %223, %229, %228 : vector<16x128xi1>, vector<16x128xf32>
      %231 = arith.maximumf %210, %230 : vector<16x128xf32>
      %232 = arith.index_cast %7 : i32 to index
      %c3 = arith.constant 3 : index
      %233 = memref.load %arg1[%232, %c3] : memref<2x56xf32, #tpu.memory_space<smem>>
      %234 = arith.index_cast %7 : i32 to index
      %c6 = arith.constant 6 : index
      %235 = memref.load %arg1[%234, %c6] : memref<2x56xf32, #tpu.memory_space<smem>>
      %236 = arith.mulf %233, %233 : f32
      %237 = arith.mulf %235, %235 : f32
      %238 = arith.index_cast %7 : i32 to index
      %c10 = arith.constant 10 : index
      %239 = memref.load %arg1[%238, %c10] : memref<2x56xf32, #tpu.memory_space<smem>>
      %240 = arith.index_cast %7 : i32 to index
      %c11 = arith.constant 11 : index
      %241 = memref.load %arg1[%240, %c11] : memref<2x56xf32, #tpu.memory_space<smem>>
      %242 = vector.broadcast %239 : f32 to vector<16x128xf32>
      %243 = arith.subf %56, %242 : vector<16x128xf32>
      %244 = vector.broadcast %241 : f32 to vector<16x128xf32>
      %245 = arith.subf %5, %244 : vector<16x128xf32>
      %246 = arith.mulf %243, %243 : vector<16x128xf32>
      %247 = arith.mulf %245, %245 : vector<16x128xf32>
      %248 = arith.addf %246, %247 : vector<16x128xf32>
      %249 = vector.broadcast %236 : f32 to vector<16x128xf32>
      %250 = arith.cmpf ole, %248, %249 : vector<16x128xf32>
      %251 = vector.broadcast %237 : f32 to vector<16x128xf32>
      %252 = arith.cmpf ole, %248, %251 : vector<16x128xf32>
      %cst_59 = arith.constant 2.000000e+00 : f32
      %cst_60 = arith.constant 0.000000e+00 : f32
      %253 = vector.broadcast %cst_59 : f32 to vector<16x128xf32>
      %254 = vector.broadcast %cst_60 : f32 to vector<16x128xf32>
      %255 = arith.select %252, %253, %254 : vector<16x128xi1>, vector<16x128xf32>
      %cst_61 = arith.constant 4.000000e+00 : f32
      %256 = vector.broadcast %cst_61 : f32 to vector<16x128xf32>
      %257 = arith.select %250, %256, %255 : vector<16x128xi1>, vector<16x128xf32>
      %258 = arith.maximumf %231, %257 : vector<16x128xf32>
      %259 = arith.index_cast %7 : i32 to index
      %c16 = arith.constant 16 : index
      %260 = memref.load %arg1[%259, %c16] : memref<2x56xf32, #tpu.memory_space<smem>>
      %261 = arith.index_cast %7 : i32 to index
      %c17 = arith.constant 17 : index
      %262 = memref.load %arg1[%261, %c17] : memref<2x56xf32, #tpu.memory_space<smem>>
      %263 = vector.broadcast %260 : f32 to vector<16x128xf32>
      %264 = arith.subf %56, %263 : vector<16x128xf32>
      %265 = vector.broadcast %262 : f32 to vector<16x128xf32>
      %266 = arith.subf %5, %265 : vector<16x128xf32>
      %267 = arith.mulf %264, %264 : vector<16x128xf32>
      %268 = arith.mulf %266, %266 : vector<16x128xf32>
      %269 = arith.addf %267, %268 : vector<16x128xf32>
      %270 = vector.broadcast %236 : f32 to vector<16x128xf32>
      %271 = arith.cmpf ole, %269, %270 : vector<16x128xf32>
      %272 = vector.broadcast %237 : f32 to vector<16x128xf32>
      %273 = arith.cmpf ole, %269, %272 : vector<16x128xf32>
      %cst_62 = arith.constant 1.800000e+00 : f32
      %cst_63 = arith.constant 0.000000e+00 : f32
      %274 = vector.broadcast %cst_62 : f32 to vector<16x128xf32>
      %275 = vector.broadcast %cst_63 : f32 to vector<16x128xf32>
      %276 = arith.select %273, %274, %275 : vector<16x128xi1>, vector<16x128xf32>
      %cst_64 = arith.constant 3.600000e+00 : f32
      %277 = vector.broadcast %cst_64 : f32 to vector<16x128xf32>
      %278 = arith.select %271, %277, %276 : vector<16x128xi1>, vector<16x128xf32>
      %279 = arith.maximumf %258, %278 : vector<16x128xf32>
      %280 = arith.index_cast %7 : i32 to index
      %c22 = arith.constant 22 : index
      %281 = memref.load %arg1[%280, %c22] : memref<2x56xf32, #tpu.memory_space<smem>>
      %282 = arith.index_cast %7 : i32 to index
      %c23 = arith.constant 23 : index
      %283 = memref.load %arg1[%282, %c23] : memref<2x56xf32, #tpu.memory_space<smem>>
      %284 = vector.broadcast %281 : f32 to vector<16x128xf32>
      %285 = arith.subf %56, %284 : vector<16x128xf32>
      %286 = vector.broadcast %283 : f32 to vector<16x128xf32>
      %287 = arith.subf %5, %286 : vector<16x128xf32>
      %288 = arith.mulf %285, %285 : vector<16x128xf32>
      %289 = arith.mulf %287, %287 : vector<16x128xf32>
      %290 = arith.addf %288, %289 : vector<16x128xf32>
      %291 = vector.broadcast %236 : f32 to vector<16x128xf32>
      %292 = arith.cmpf ole, %290, %291 : vector<16x128xf32>
      %293 = vector.broadcast %237 : f32 to vector<16x128xf32>
      %294 = arith.cmpf ole, %290, %293 : vector<16x128xf32>
      %cst_65 = arith.constant 1.620000e+00 : f32
      %cst_66 = arith.constant 0.000000e+00 : f32
      %295 = vector.broadcast %cst_65 : f32 to vector<16x128xf32>
      %296 = vector.broadcast %cst_66 : f32 to vector<16x128xf32>
      %297 = arith.select %294, %295, %296 : vector<16x128xi1>, vector<16x128xf32>
      %cst_67 = arith.constant 3.240000e+00 : f32
      %298 = vector.broadcast %cst_67 : f32 to vector<16x128xf32>
      %299 = arith.select %292, %298, %297 : vector<16x128xi1>, vector<16x128xf32>
      %300 = arith.maximumf %279, %299 : vector<16x128xf32>
      %301 = arith.index_cast %7 : i32 to index
      %c28 = arith.constant 28 : index
      %302 = memref.load %arg1[%301, %c28] : memref<2x56xf32, #tpu.memory_space<smem>>
      %303 = arith.index_cast %7 : i32 to index
      %c29 = arith.constant 29 : index
      %304 = memref.load %arg1[%303, %c29] : memref<2x56xf32, #tpu.memory_space<smem>>
      %305 = vector.broadcast %302 : f32 to vector<16x128xf32>
      %306 = arith.subf %56, %305 : vector<16x128xf32>
      %307 = vector.broadcast %304 : f32 to vector<16x128xf32>
      %308 = arith.subf %5, %307 : vector<16x128xf32>
      %309 = arith.mulf %306, %306 : vector<16x128xf32>
      %310 = arith.mulf %308, %308 : vector<16x128xf32>
      %311 = arith.addf %309, %310 : vector<16x128xf32>
      %312 = vector.broadcast %236 : f32 to vector<16x128xf32>
      %313 = arith.cmpf ole, %311, %312 : vector<16x128xf32>
      %314 = vector.broadcast %237 : f32 to vector<16x128xf32>
      %315 = arith.cmpf ole, %311, %314 : vector<16x128xf32>
      %cst_68 = arith.constant 1.460000e+00 : f32
      %cst_69 = arith.constant 0.000000e+00 : f32
      %316 = vector.broadcast %cst_68 : f32 to vector<16x128xf32>
      %317 = vector.broadcast %cst_69 : f32 to vector<16x128xf32>
      %318 = arith.select %315, %316, %317 : vector<16x128xi1>, vector<16x128xf32>
      %cst_70 = arith.constant 2.920000e+00 : f32
      %319 = vector.broadcast %cst_70 : f32 to vector<16x128xf32>
      %320 = arith.select %313, %319, %318 : vector<16x128xi1>, vector<16x128xf32>
      %321 = arith.maximumf %300, %320 : vector<16x128xf32>
      %322 = arith.index_cast %7 : i32 to index
      %c34 = arith.constant 34 : index
      %323 = memref.load %arg1[%322, %c34] : memref<2x56xf32, #tpu.memory_space<smem>>
      %324 = arith.index_cast %7 : i32 to index
      %c35 = arith.constant 35 : index
      %325 = memref.load %arg1[%324, %c35] : memref<2x56xf32, #tpu.memory_space<smem>>
      %326 = vector.broadcast %323 : f32 to vector<16x128xf32>
      %327 = arith.subf %56, %326 : vector<16x128xf32>
      %328 = vector.broadcast %325 : f32 to vector<16x128xf32>
      %329 = arith.subf %5, %328 : vector<16x128xf32>
      %330 = arith.mulf %327, %327 : vector<16x128xf32>
      %331 = arith.mulf %329, %329 : vector<16x128xf32>
      %332 = arith.addf %330, %331 : vector<16x128xf32>
      %333 = vector.broadcast %236 : f32 to vector<16x128xf32>
      %334 = arith.cmpf ole, %332, %333 : vector<16x128xf32>
      %335 = vector.broadcast %237 : f32 to vector<16x128xf32>
      %336 = arith.cmpf ole, %332, %335 : vector<16x128xf32>
      %cst_71 = arith.constant 1.320000e+00 : f32
      %cst_72 = arith.constant 0.000000e+00 : f32
      %337 = vector.broadcast %cst_71 : f32 to vector<16x128xf32>
      %338 = vector.broadcast %cst_72 : f32 to vector<16x128xf32>
      %339 = arith.select %336, %337, %338 : vector<16x128xi1>, vector<16x128xf32>
      %cst_73 = arith.constant 2.640000e+00 : f32
      %340 = vector.broadcast %cst_73 : f32 to vector<16x128xf32>
      %341 = arith.select %334, %340, %339 : vector<16x128xi1>, vector<16x128xf32>
      %342 = arith.maximumf %321, %341 : vector<16x128xf32>
      %343 = arith.index_cast %7 : i32 to index
      %c40 = arith.constant 40 : index
      %344 = memref.load %arg1[%343, %c40] : memref<2x56xf32, #tpu.memory_space<smem>>
      %345 = arith.index_cast %7 : i32 to index
      %c41 = arith.constant 41 : index
      %346 = memref.load %arg1[%345, %c41] : memref<2x56xf32, #tpu.memory_space<smem>>
      %347 = vector.broadcast %344 : f32 to vector<16x128xf32>
      %348 = arith.subf %56, %347 : vector<16x128xf32>
      %349 = vector.broadcast %346 : f32 to vector<16x128xf32>
      %350 = arith.subf %5, %349 : vector<16x128xf32>
      %351 = arith.mulf %348, %348 : vector<16x128xf32>
      %352 = arith.mulf %350, %350 : vector<16x128xf32>
      %353 = arith.addf %351, %352 : vector<16x128xf32>
      %354 = vector.broadcast %236 : f32 to vector<16x128xf32>
      %355 = arith.cmpf ole, %353, %354 : vector<16x128xf32>
      %356 = vector.broadcast %237 : f32 to vector<16x128xf32>
      %357 = arith.cmpf ole, %353, %356 : vector<16x128xf32>
      %cst_74 = arith.constant 1.180000e+00 : f32
      %cst_75 = arith.constant 0.000000e+00 : f32
      %358 = vector.broadcast %cst_74 : f32 to vector<16x128xf32>
      %359 = vector.broadcast %cst_75 : f32 to vector<16x128xf32>
      %360 = arith.select %357, %358, %359 : vector<16x128xi1>, vector<16x128xf32>
      %cst_76 = arith.constant 2.360000e+00 : f32
      %361 = vector.broadcast %cst_76 : f32 to vector<16x128xf32>
      %362 = arith.select %355, %361, %360 : vector<16x128xi1>, vector<16x128xf32>
      %363 = arith.maximumf %342, %362 : vector<16x128xf32>
      %364 = arith.index_cast %7 : i32 to index
      %c46 = arith.constant 46 : index
      %365 = memref.load %arg1[%364, %c46] : memref<2x56xf32, #tpu.memory_space<smem>>
      %366 = arith.index_cast %7 : i32 to index
      %c47 = arith.constant 47 : index
      %367 = memref.load %arg1[%366, %c47] : memref<2x56xf32, #tpu.memory_space<smem>>
      %368 = vector.broadcast %365 : f32 to vector<16x128xf32>
      %369 = arith.subf %56, %368 : vector<16x128xf32>
      %370 = vector.broadcast %367 : f32 to vector<16x128xf32>
      %371 = arith.subf %5, %370 : vector<16x128xf32>
      %372 = arith.mulf %369, %369 : vector<16x128xf32>
      %373 = arith.mulf %371, %371 : vector<16x128xf32>
      %374 = arith.addf %372, %373 : vector<16x128xf32>
      %375 = vector.broadcast %236 : f32 to vector<16x128xf32>
      %376 = arith.cmpf ole, %374, %375 : vector<16x128xf32>
      %377 = vector.broadcast %237 : f32 to vector<16x128xf32>
      %378 = arith.cmpf ole, %374, %377 : vector<16x128xf32>
      %cst_77 = arith.constant 1.060000e+00 : f32
      %cst_78 = arith.constant 0.000000e+00 : f32
      %379 = vector.broadcast %cst_77 : f32 to vector<16x128xf32>
      %380 = vector.broadcast %cst_78 : f32 to vector<16x128xf32>
      %381 = arith.select %378, %379, %380 : vector<16x128xi1>, vector<16x128xf32>
      %cst_79 = arith.constant 2.120000e+00 : f32
      %382 = vector.broadcast %cst_79 : f32 to vector<16x128xf32>
      %383 = arith.select %376, %382, %381 : vector<16x128xi1>, vector<16x128xf32>
      %384 = arith.maximumf %363, %383 : vector<16x128xf32>
      %385 = arith.index_cast %7 : i32 to index
      %c52 = arith.constant 52 : index
      %386 = memref.load %arg1[%385, %c52] : memref<2x56xf32, #tpu.memory_space<smem>>
      %387 = arith.index_cast %7 : i32 to index
      %c53 = arith.constant 53 : index
      %388 = memref.load %arg1[%387, %c53] : memref<2x56xf32, #tpu.memory_space<smem>>
      %389 = vector.broadcast %386 : f32 to vector<16x128xf32>
      %390 = arith.subf %56, %389 : vector<16x128xf32>
      %391 = vector.broadcast %388 : f32 to vector<16x128xf32>
      %392 = arith.subf %5, %391 : vector<16x128xf32>
      %393 = arith.mulf %390, %390 : vector<16x128xf32>
      %394 = arith.mulf %392, %392 : vector<16x128xf32>
      %395 = arith.addf %393, %394 : vector<16x128xf32>
      %396 = vector.broadcast %236 : f32 to vector<16x128xf32>
      %397 = arith.cmpf ole, %395, %396 : vector<16x128xf32>
      %398 = vector.broadcast %237 : f32 to vector<16x128xf32>
      %399 = arith.cmpf ole, %395, %398 : vector<16x128xf32>
      %cst_80 = arith.constant 0.959999978 : f32
      %cst_81 = arith.constant 0.000000e+00 : f32
      %400 = vector.broadcast %cst_80 : f32 to vector<16x128xf32>
      %401 = vector.broadcast %cst_81 : f32 to vector<16x128xf32>
      %402 = arith.select %399, %400, %401 : vector<16x128xi1>, vector<16x128xf32>
      %cst_82 = arith.constant 1.920000e+00 : f32
      %403 = vector.broadcast %cst_82 : f32 to vector<16x128xf32>
      %404 = arith.select %397, %403, %402 : vector<16x128xi1>, vector<16x128xf32>
      %405 = arith.maximumf %384, %404 : vector<16x128xf32>
      %406 = arith.index_cast %7 : i32 to index
      %c4 = arith.constant 4 : index
      %407 = memref.load %arg1[%406, %c4] : memref<2x56xf32, #tpu.memory_space<smem>>
      %408 = arith.index_cast %7 : i32 to index
      %c7 = arith.constant 7 : index
      %409 = memref.load %arg1[%408, %c7] : memref<2x56xf32, #tpu.memory_space<smem>>
      %410 = arith.mulf %407, %407 : f32
      %411 = arith.mulf %409, %409 : f32
      %412 = arith.index_cast %7 : i32 to index
      %c12 = arith.constant 12 : index
      %413 = memref.load %arg1[%412, %c12] : memref<2x56xf32, #tpu.memory_space<smem>>
      %414 = arith.index_cast %7 : i32 to index
      %c13 = arith.constant 13 : index
      %415 = memref.load %arg1[%414, %c13] : memref<2x56xf32, #tpu.memory_space<smem>>
      %416 = vector.broadcast %413 : f32 to vector<16x128xf32>
      %417 = arith.subf %56, %416 : vector<16x128xf32>
      %418 = vector.broadcast %415 : f32 to vector<16x128xf32>
      %419 = arith.subf %5, %418 : vector<16x128xf32>
      %420 = arith.mulf %417, %417 : vector<16x128xf32>
      %421 = arith.mulf %419, %419 : vector<16x128xf32>
      %422 = arith.addf %420, %421 : vector<16x128xf32>
      %423 = vector.broadcast %410 : f32 to vector<16x128xf32>
      %424 = arith.cmpf ole, %422, %423 : vector<16x128xf32>
      %425 = vector.broadcast %411 : f32 to vector<16x128xf32>
      %426 = arith.cmpf ole, %422, %425 : vector<16x128xf32>
      %cst_83 = arith.constant 2.000000e+00 : f32
      %cst_84 = arith.constant 0.000000e+00 : f32
      %427 = vector.broadcast %cst_83 : f32 to vector<16x128xf32>
      %428 = vector.broadcast %cst_84 : f32 to vector<16x128xf32>
      %429 = arith.select %426, %427, %428 : vector<16x128xi1>, vector<16x128xf32>
      %cst_85 = arith.constant 4.000000e+00 : f32
      %430 = vector.broadcast %cst_85 : f32 to vector<16x128xf32>
      %431 = arith.select %424, %430, %429 : vector<16x128xi1>, vector<16x128xf32>
      %432 = arith.maximumf %405, %431 : vector<16x128xf32>
      %433 = arith.index_cast %7 : i32 to index
      %c18 = arith.constant 18 : index
      %434 = memref.load %arg1[%433, %c18] : memref<2x56xf32, #tpu.memory_space<smem>>
      %435 = arith.index_cast %7 : i32 to index
      %c19 = arith.constant 19 : index
      %436 = memref.load %arg1[%435, %c19] : memref<2x56xf32, #tpu.memory_space<smem>>
      %437 = vector.broadcast %434 : f32 to vector<16x128xf32>
      %438 = arith.subf %56, %437 : vector<16x128xf32>
      %439 = vector.broadcast %436 : f32 to vector<16x128xf32>
      %440 = arith.subf %5, %439 : vector<16x128xf32>
      %441 = arith.mulf %438, %438 : vector<16x128xf32>
      %442 = arith.mulf %440, %440 : vector<16x128xf32>
      %443 = arith.addf %441, %442 : vector<16x128xf32>
      %444 = vector.broadcast %410 : f32 to vector<16x128xf32>
      %445 = arith.cmpf ole, %443, %444 : vector<16x128xf32>
      %446 = vector.broadcast %411 : f32 to vector<16x128xf32>
      %447 = arith.cmpf ole, %443, %446 : vector<16x128xf32>
      %cst_86 = arith.constant 1.800000e+00 : f32
      %cst_87 = arith.constant 0.000000e+00 : f32
      %448 = vector.broadcast %cst_86 : f32 to vector<16x128xf32>
      %449 = vector.broadcast %cst_87 : f32 to vector<16x128xf32>
      %450 = arith.select %447, %448, %449 : vector<16x128xi1>, vector<16x128xf32>
      %cst_88 = arith.constant 3.600000e+00 : f32
      %451 = vector.broadcast %cst_88 : f32 to vector<16x128xf32>
      %452 = arith.select %445, %451, %450 : vector<16x128xi1>, vector<16x128xf32>
      %453 = arith.maximumf %432, %452 : vector<16x128xf32>
      %454 = arith.index_cast %7 : i32 to index
      %c24 = arith.constant 24 : index
      %455 = memref.load %arg1[%454, %c24] : memref<2x56xf32, #tpu.memory_space<smem>>
      %456 = arith.index_cast %7 : i32 to index
      %c25 = arith.constant 25 : index
      %457 = memref.load %arg1[%456, %c25] : memref<2x56xf32, #tpu.memory_space<smem>>
      %458 = vector.broadcast %455 : f32 to vector<16x128xf32>
      %459 = arith.subf %56, %458 : vector<16x128xf32>
      %460 = vector.broadcast %457 : f32 to vector<16x128xf32>
      %461 = arith.subf %5, %460 : vector<16x128xf32>
      %462 = arith.mulf %459, %459 : vector<16x128xf32>
      %463 = arith.mulf %461, %461 : vector<16x128xf32>
      %464 = arith.addf %462, %463 : vector<16x128xf32>
      %465 = vector.broadcast %410 : f32 to vector<16x128xf32>
      %466 = arith.cmpf ole, %464, %465 : vector<16x128xf32>
      %467 = vector.broadcast %411 : f32 to vector<16x128xf32>
      %468 = arith.cmpf ole, %464, %467 : vector<16x128xf32>
      %cst_89 = arith.constant 1.620000e+00 : f32
      %cst_90 = arith.constant 0.000000e+00 : f32
      %469 = vector.broadcast %cst_89 : f32 to vector<16x128xf32>
      %470 = vector.broadcast %cst_90 : f32 to vector<16x128xf32>
      %471 = arith.select %468, %469, %470 : vector<16x128xi1>, vector<16x128xf32>
      %cst_91 = arith.constant 3.240000e+00 : f32
      %472 = vector.broadcast %cst_91 : f32 to vector<16x128xf32>
      %473 = arith.select %466, %472, %471 : vector<16x128xi1>, vector<16x128xf32>
      %474 = arith.maximumf %453, %473 : vector<16x128xf32>
      %475 = arith.index_cast %7 : i32 to index
      %c30 = arith.constant 30 : index
      %476 = memref.load %arg1[%475, %c30] : memref<2x56xf32, #tpu.memory_space<smem>>
      %477 = arith.index_cast %7 : i32 to index
      %c31 = arith.constant 31 : index
      %478 = memref.load %arg1[%477, %c31] : memref<2x56xf32, #tpu.memory_space<smem>>
      %479 = vector.broadcast %476 : f32 to vector<16x128xf32>
      %480 = arith.subf %56, %479 : vector<16x128xf32>
      %481 = vector.broadcast %478 : f32 to vector<16x128xf32>
      %482 = arith.subf %5, %481 : vector<16x128xf32>
      %483 = arith.mulf %480, %480 : vector<16x128xf32>
      %484 = arith.mulf %482, %482 : vector<16x128xf32>
      %485 = arith.addf %483, %484 : vector<16x128xf32>
      %486 = vector.broadcast %410 : f32 to vector<16x128xf32>
      %487 = arith.cmpf ole, %485, %486 : vector<16x128xf32>
      %488 = vector.broadcast %411 : f32 to vector<16x128xf32>
      %489 = arith.cmpf ole, %485, %488 : vector<16x128xf32>
      %cst_92 = arith.constant 1.460000e+00 : f32
      %cst_93 = arith.constant 0.000000e+00 : f32
      %490 = vector.broadcast %cst_92 : f32 to vector<16x128xf32>
      %491 = vector.broadcast %cst_93 : f32 to vector<16x128xf32>
      %492 = arith.select %489, %490, %491 : vector<16x128xi1>, vector<16x128xf32>
      %cst_94 = arith.constant 2.920000e+00 : f32
      %493 = vector.broadcast %cst_94 : f32 to vector<16x128xf32>
      %494 = arith.select %487, %493, %492 : vector<16x128xi1>, vector<16x128xf32>
      %495 = arith.maximumf %474, %494 : vector<16x128xf32>
      %496 = arith.index_cast %7 : i32 to index
      %c36 = arith.constant 36 : index
      %497 = memref.load %arg1[%496, %c36] : memref<2x56xf32, #tpu.memory_space<smem>>
      %498 = arith.index_cast %7 : i32 to index
      %c37 = arith.constant 37 : index
      %499 = memref.load %arg1[%498, %c37] : memref<2x56xf32, #tpu.memory_space<smem>>
      %500 = vector.broadcast %497 : f32 to vector<16x128xf32>
      %501 = arith.subf %56, %500 : vector<16x128xf32>
      %502 = vector.broadcast %499 : f32 to vector<16x128xf32>
      %503 = arith.subf %5, %502 : vector<16x128xf32>
      %504 = arith.mulf %501, %501 : vector<16x128xf32>
      %505 = arith.mulf %503, %503 : vector<16x128xf32>
      %506 = arith.addf %504, %505 : vector<16x128xf32>
      %507 = vector.broadcast %410 : f32 to vector<16x128xf32>
      %508 = arith.cmpf ole, %506, %507 : vector<16x128xf32>
      %509 = vector.broadcast %411 : f32 to vector<16x128xf32>
      %510 = arith.cmpf ole, %506, %509 : vector<16x128xf32>
      %cst_95 = arith.constant 1.320000e+00 : f32
      %cst_96 = arith.constant 0.000000e+00 : f32
      %511 = vector.broadcast %cst_95 : f32 to vector<16x128xf32>
      %512 = vector.broadcast %cst_96 : f32 to vector<16x128xf32>
      %513 = arith.select %510, %511, %512 : vector<16x128xi1>, vector<16x128xf32>
      %cst_97 = arith.constant 2.640000e+00 : f32
      %514 = vector.broadcast %cst_97 : f32 to vector<16x128xf32>
      %515 = arith.select %508, %514, %513 : vector<16x128xi1>, vector<16x128xf32>
      %516 = arith.maximumf %495, %515 : vector<16x128xf32>
      %517 = arith.index_cast %7 : i32 to index
      %c42 = arith.constant 42 : index
      %518 = memref.load %arg1[%517, %c42] : memref<2x56xf32, #tpu.memory_space<smem>>
      %519 = arith.index_cast %7 : i32 to index
      %c43 = arith.constant 43 : index
      %520 = memref.load %arg1[%519, %c43] : memref<2x56xf32, #tpu.memory_space<smem>>
      %521 = vector.broadcast %518 : f32 to vector<16x128xf32>
      %522 = arith.subf %56, %521 : vector<16x128xf32>
      %523 = vector.broadcast %520 : f32 to vector<16x128xf32>
      %524 = arith.subf %5, %523 : vector<16x128xf32>
      %525 = arith.mulf %522, %522 : vector<16x128xf32>
      %526 = arith.mulf %524, %524 : vector<16x128xf32>
      %527 = arith.addf %525, %526 : vector<16x128xf32>
      %528 = vector.broadcast %410 : f32 to vector<16x128xf32>
      %529 = arith.cmpf ole, %527, %528 : vector<16x128xf32>
      %530 = vector.broadcast %411 : f32 to vector<16x128xf32>
      %531 = arith.cmpf ole, %527, %530 : vector<16x128xf32>
      %cst_98 = arith.constant 1.180000e+00 : f32
      %cst_99 = arith.constant 0.000000e+00 : f32
      %532 = vector.broadcast %cst_98 : f32 to vector<16x128xf32>
      %533 = vector.broadcast %cst_99 : f32 to vector<16x128xf32>
      %534 = arith.select %531, %532, %533 : vector<16x128xi1>, vector<16x128xf32>
      %cst_100 = arith.constant 2.360000e+00 : f32
      %535 = vector.broadcast %cst_100 : f32 to vector<16x128xf32>
      %536 = arith.select %529, %535, %534 : vector<16x128xi1>, vector<16x128xf32>
      %537 = arith.maximumf %516, %536 : vector<16x128xf32>
      %538 = arith.index_cast %7 : i32 to index
      %c48 = arith.constant 48 : index
      %539 = memref.load %arg1[%538, %c48] : memref<2x56xf32, #tpu.memory_space<smem>>
      %540 = arith.index_cast %7 : i32 to index
      %c49 = arith.constant 49 : index
      %541 = memref.load %arg1[%540, %c49] : memref<2x56xf32, #tpu.memory_space<smem>>
      %542 = vector.broadcast %539 : f32 to vector<16x128xf32>
      %543 = arith.subf %56, %542 : vector<16x128xf32>
      %544 = vector.broadcast %541 : f32 to vector<16x128xf32>
      %545 = arith.subf %5, %544 : vector<16x128xf32>
      %546 = arith.mulf %543, %543 : vector<16x128xf32>
      %547 = arith.mulf %545, %545 : vector<16x128xf32>
      %548 = arith.addf %546, %547 : vector<16x128xf32>
      %549 = vector.broadcast %410 : f32 to vector<16x128xf32>
      %550 = arith.cmpf ole, %548, %549 : vector<16x128xf32>
      %551 = vector.broadcast %411 : f32 to vector<16x128xf32>
      %552 = arith.cmpf ole, %548, %551 : vector<16x128xf32>
      %cst_101 = arith.constant 1.060000e+00 : f32
      %cst_102 = arith.constant 0.000000e+00 : f32
      %553 = vector.broadcast %cst_101 : f32 to vector<16x128xf32>
      %554 = vector.broadcast %cst_102 : f32 to vector<16x128xf32>
      %555 = arith.select %552, %553, %554 : vector<16x128xi1>, vector<16x128xf32>
      %cst_103 = arith.constant 2.120000e+00 : f32
      %556 = vector.broadcast %cst_103 : f32 to vector<16x128xf32>
      %557 = arith.select %550, %556, %555 : vector<16x128xi1>, vector<16x128xf32>
      %558 = arith.maximumf %537, %557 : vector<16x128xf32>
      %559 = arith.index_cast %7 : i32 to index
      %c54 = arith.constant 54 : index
      %560 = memref.load %arg1[%559, %c54] : memref<2x56xf32, #tpu.memory_space<smem>>
      %561 = arith.index_cast %7 : i32 to index
      %c55 = arith.constant 55 : index
      %562 = memref.load %arg1[%561, %c55] : memref<2x56xf32, #tpu.memory_space<smem>>
      %563 = vector.broadcast %560 : f32 to vector<16x128xf32>
      %564 = arith.subf %56, %563 : vector<16x128xf32>
      %565 = vector.broadcast %562 : f32 to vector<16x128xf32>
      %566 = arith.subf %5, %565 : vector<16x128xf32>
      %567 = arith.mulf %564, %564 : vector<16x128xf32>
      %568 = arith.mulf %566, %566 : vector<16x128xf32>
      %569 = arith.addf %567, %568 : vector<16x128xf32>
      %570 = vector.broadcast %410 : f32 to vector<16x128xf32>
      %571 = arith.cmpf ole, %569, %570 : vector<16x128xf32>
      %572 = vector.broadcast %411 : f32 to vector<16x128xf32>
      %573 = arith.cmpf ole, %569, %572 : vector<16x128xf32>
      %cst_104 = arith.constant 0.959999978 : f32
      %cst_105 = arith.constant 0.000000e+00 : f32
      %574 = vector.broadcast %cst_104 : f32 to vector<16x128xf32>
      %575 = vector.broadcast %cst_105 : f32 to vector<16x128xf32>
      %576 = arith.select %573, %574, %575 : vector<16x128xi1>, vector<16x128xf32>
      %cst_106 = arith.constant 1.920000e+00 : f32
      %577 = vector.broadcast %cst_106 : f32 to vector<16x128xf32>
      %578 = arith.select %571, %577, %576 : vector<16x128xi1>, vector<16x128xf32>
      %579 = arith.maximumf %558, %578 : vector<16x128xf32>
      %580 = vector.broadcast %9 : f32 to vector<16x128xf32>
      %581 = arith.subf %56, %580 : vector<16x128xf32>
      %582 = arith.mulf %581, %581 : vector<16x128xf32>
      %583 = vector.broadcast %11 : f32 to vector<16x128xf32>
      %584 = arith.subf %5, %583 : vector<16x128xf32>
      %585 = arith.mulf %584, %584 : vector<16x128xf32>
      %586 = arith.addf %582, %585 : vector<16x128xf32>
      %587 = math.sqrt %586 : vector<16x128xf32>
      %cst_107 = arith.constant 5.000000e-01 : f32
      %588 = vector.broadcast %cst_107 : f32 to vector<16x128xf32>
      %589 = arith.mulf %588, %587 : vector<16x128xf32>
      %590 = arith.addf %589, %579 : vector<16x128xf32>
      %c0_108 = arith.constant 0 : index
      %591 = arith.index_cast %48 : i32 to index
      %c0_109 = arith.constant 0 : index
      %592 = vector.load %arg2[%c0_108, %591, %c0_109] : memref<2x128x128xf32, #tpu.memory_space<vmem>>, vector<1x16x128xf32>
      %593 = vector.shape_cast %592 : vector<1x16x128xf32> to vector<16x128xf32>
      %594 = vector.shape_cast %590 : vector<16x128xf32> to vector<1x16x128xf32>
      tpu.vector_store %arg2[%c0_108, %591, %c0_109], %594 {strides = array<i32>} : memref<2x128x128xf32, #tpu.memory_space<vmem>>, vector<1x16x128xf32>,
      %595 = vector.shape_cast %590 : vector<16x128xf32> to vector<1x16x128xf32>
      %cst_110 = arith.constant dense<0x7F800000> : vector<1xf32>
      %596 = vector.multi_reduction <minimumf>, %595, %cst_110 [1, 2] : vector<1x16x128xf32> to vector<1xf32>
      %597 = vector.shape_cast %596 : vector<1xf32> to vector<1x1x1xf32>
      %598 = vector.extract %597[0, 0, 0] : f32 from vector<1x1x1xf32>
      %599 = arith.minimumf %arg4, %598 : f32
      %600 = vector.shape_cast %590 : vector<16x128xf32> to vector<1x16x128xf32>
      %cst_111 = arith.constant dense<0xFF800000> : vector<1xf32>
      %601 = vector.multi_reduction <maximumf>, %600, %cst_111 [1, 2] : vector<1x16x128xf32> to vector<1xf32>
      %602 = vector.shape_cast %601 : vector<1xf32> to vector<1x1x1xf32>
      %603 = vector.extract %602[0, 0, 0] : f32 from vector<1x1x1xf32>
      %604 = arith.maximumf %arg5, %603 : f32
      scf.yield %599, %604 : f32, f32
    }
    %c8_i32_4 = arith.constant 8 : i32
    %14 = arith.subf %13#1, %13#0 : f32
    %cst_5 = arith.constant 0.000000e+00 : f32
    %15 = arith.cmpf ogt, %14, %cst_5 : f32
    %cst_6 = arith.constant 1.000000e+00 : f32
    %16 = arith.divf %cst_6, %14 : f32
    %cst_7 = arith.constant 0.000000e+00 : f32
    %17 = arith.select %15, %16, %cst_7 : f32
    %c0_8 = arith.constant 0 : index
    %c0_9 = arith.constant 0 : index
    %c0_10 = arith.constant 0 : index
    %18 = vector.load %arg2[%c0_8, %c0_9, %c0_10] : memref<2x128x128xf32, #tpu.memory_space<vmem>>, vector<1x128x128xf32>
    %19 = vector.shape_cast %18 : vector<1x128x128xf32> to vector<128x128xf32>
    %20 = vector.broadcast %13#0 : f32 to vector<128x128xf32>
    %21 = arith.subf %19, %20 : vector<128x128xf32>
    %22 = vector.broadcast %17 : f32 to vector<128x128xf32>
    %23 = arith.mulf %21, %22 : vector<128x128xf32>
    %c0_11 = arith.constant 0 : index
    %c0_12 = arith.constant 0 : index
    %c0_13 = arith.constant 0 : index
    %24 = vector.load %arg2[%c0_11, %c0_12, %c0_13] : memref<2x128x128xf32, #tpu.memory_space<vmem>>, vector<1x128x128xf32>
    %25 = vector.shape_cast %24 : vector<1x128x128xf32> to vector<128x128xf32>
    %26 = vector.shape_cast %23 : vector<128x128xf32> to vector<1x128x128xf32>
    tpu.vector_store %arg2[%c0_11, %c0_12, %c0_13], %26 {strides = array<i32>} : memref<2x128x128xf32, #tpu.memory_space<vmem>>, vector<1x128x128xf32>,
    %c1_i32_14 = arith.constant 1 : i32
    %27 = arith.addi %6, %c1_i32_14 : i32
    %28 = arith.index_cast %27 : i32 to index
    %c0_15 = arith.constant 0 : index
    %29 = memref.load %arg1[%28, %c0_15] : memref<2x56xf32, #tpu.memory_space<smem>>
    %30 = arith.index_cast %27 : i32 to index
    %c1_16 = arith.constant 1 : index
    %31 = memref.load %arg1[%30, %c1_16] : memref<2x56xf32, #tpu.memory_space<smem>>
    %cst_17 = arith.constant 0x7F800000 : f32
    %cst_18 = arith.constant 0xFF800000 : f32
    %c0_i32_19 = arith.constant 0 : i32
    %c8_i32_20 = arith.constant 8 : i32
    %32 = arith.addi %c0_i32_19, %c8_i32_20 : i32
    %c1_i32_21 = arith.constant 1 : i32
    %33:2 = scf.for %arg3 = %c0_i32_19 to %32 step %c1_i32_21 iter_args(%arg4 = %cst_17, %arg5 = %cst_18) -> (f32, f32)  : i32 {
      %c16_i32 = arith.constant 16 : i32
      %47 = arith.muli %arg3, %c16_i32 : i32
      %48 = tpu.assume_multiple %47, 16 : i32
      %49 = tpu.iota {dimensions = array<i32: 0>} : vector<16x128xi32>
      %50 = vector.broadcast %48 : i32 to vector<16x128xi32>
      %51 = arith.addi %49, %50 : vector<16x128xi32>
      %52 = arith.sitofp %51 : vector<16x128xi32> to vector<16x128xf32>
      %cst_32 = arith.constant 5.039370e-02 : f32
      %53 = vector.broadcast %cst_32 : f32 to vector<16x128xf32>
      %54 = arith.mulf %52, %53 : vector<16x128xf32>
      %cst_33 = arith.constant 3.200000e+00 : f32
      %55 = vector.broadcast %cst_33 : f32 to vector<16x128xf32>
      %56 = arith.subf %55, %54 : vector<16x128xf32>
      %cst_34 = arith.constant 0.000000e+00 : f32
      %57 = vector.broadcast %cst_34 : f32 to vector<16x128xf32>
      %58 = arith.index_cast %27 : i32 to index
      %c2 = arith.constant 2 : index
      %59 = memref.load %arg1[%58, %c2] : memref<2x56xf32, #tpu.memory_space<smem>>
      %60 = arith.index_cast %27 : i32 to index
      %c5 = arith.constant 5 : index
      %61 = memref.load %arg1[%60, %c5] : memref<2x56xf32, #tpu.memory_space<smem>>
      %62 = arith.mulf %59, %59 : f32
      %63 = arith.mulf %61, %61 : f32
      %64 = arith.index_cast %27 : i32 to index
      %c8 = arith.constant 8 : index
      %65 = memref.load %arg1[%64, %c8] : memref<2x56xf32, #tpu.memory_space<smem>>
      %66 = arith.index_cast %27 : i32 to index
      %c9 = arith.constant 9 : index
      %67 = memref.load %arg1[%66, %c9] : memref<2x56xf32, #tpu.memory_space<smem>>
      %68 = vector.broadcast %65 : f32 to vector<16x128xf32>
      %69 = arith.subf %56, %68 : vector<16x128xf32>
      %70 = vector.broadcast %67 : f32 to vector<16x128xf32>
      %71 = arith.subf %5, %70 : vector<16x128xf32>
      %72 = arith.mulf %69, %69 : vector<16x128xf32>
      %73 = arith.mulf %71, %71 : vector<16x128xf32>
      %74 = arith.addf %72, %73 : vector<16x128xf32>
      %75 = vector.broadcast %62 : f32 to vector<16x128xf32>
      %76 = arith.cmpf ole, %74, %75 : vector<16x128xf32>
      %77 = vector.broadcast %63 : f32 to vector<16x128xf32>
      %78 = arith.cmpf ole, %74, %77 : vector<16x128xf32>
      %cst_35 = arith.constant 2.000000e+00 : f32
      %cst_36 = arith.constant 0.000000e+00 : f32
      %79 = vector.broadcast %cst_35 : f32 to vector<16x128xf32>
      %80 = vector.broadcast %cst_36 : f32 to vector<16x128xf32>
      %81 = arith.select %78, %79, %80 : vector<16x128xi1>, vector<16x128xf32>
      %cst_37 = arith.constant 4.000000e+00 : f32
      %82 = vector.broadcast %cst_37 : f32 to vector<16x128xf32>
      %83 = arith.select %76, %82, %81 : vector<16x128xi1>, vector<16x128xf32>
      %84 = arith.maximumf %57, %83 : vector<16x128xf32>
      %85 = arith.index_cast %27 : i32 to index
      %c14 = arith.constant 14 : index
      %86 = memref.load %arg1[%85, %c14] : memref<2x56xf32, #tpu.memory_space<smem>>
      %87 = arith.index_cast %27 : i32 to index
      %c15 = arith.constant 15 : index
      %88 = memref.load %arg1[%87, %c15] : memref<2x56xf32, #tpu.memory_space<smem>>
      %89 = vector.broadcast %86 : f32 to vector<16x128xf32>
      %90 = arith.subf %56, %89 : vector<16x128xf32>
      %91 = vector.broadcast %88 : f32 to vector<16x128xf32>
      %92 = arith.subf %5, %91 : vector<16x128xf32>
      %93 = arith.mulf %90, %90 : vector<16x128xf32>
      %94 = arith.mulf %92, %92 : vector<16x128xf32>
      %95 = arith.addf %93, %94 : vector<16x128xf32>
      %96 = vector.broadcast %62 : f32 to vector<16x128xf32>
      %97 = arith.cmpf ole, %95, %96 : vector<16x128xf32>
      %98 = vector.broadcast %63 : f32 to vector<16x128xf32>
      %99 = arith.cmpf ole, %95, %98 : vector<16x128xf32>
      %cst_38 = arith.constant 1.800000e+00 : f32
      %cst_39 = arith.constant 0.000000e+00 : f32
      %100 = vector.broadcast %cst_38 : f32 to vector<16x128xf32>
      %101 = vector.broadcast %cst_39 : f32 to vector<16x128xf32>
      %102 = arith.select %99, %100, %101 : vector<16x128xi1>, vector<16x128xf32>
      %cst_40 = arith.constant 3.600000e+00 : f32
      %103 = vector.broadcast %cst_40 : f32 to vector<16x128xf32>
      %104 = arith.select %97, %103, %102 : vector<16x128xi1>, vector<16x128xf32>
      %105 = arith.maximumf %84, %104 : vector<16x128xf32>
      %106 = arith.index_cast %27 : i32 to index
      %c20 = arith.constant 20 : index
      %107 = memref.load %arg1[%106, %c20] : memref<2x56xf32, #tpu.memory_space<smem>>
      %108 = arith.index_cast %27 : i32 to index
      %c21 = arith.constant 21 : index
      %109 = memref.load %arg1[%108, %c21] : memref<2x56xf32, #tpu.memory_space<smem>>
      %110 = vector.broadcast %107 : f32 to vector<16x128xf32>
      %111 = arith.subf %56, %110 : vector<16x128xf32>
      %112 = vector.broadcast %109 : f32 to vector<16x128xf32>
      %113 = arith.subf %5, %112 : vector<16x128xf32>
      %114 = arith.mulf %111, %111 : vector<16x128xf32>
      %115 = arith.mulf %113, %113 : vector<16x128xf32>
      %116 = arith.addf %114, %115 : vector<16x128xf32>
      %117 = vector.broadcast %62 : f32 to vector<16x128xf32>
      %118 = arith.cmpf ole, %116, %117 : vector<16x128xf32>
      %119 = vector.broadcast %63 : f32 to vector<16x128xf32>
      %120 = arith.cmpf ole, %116, %119 : vector<16x128xf32>
      %cst_41 = arith.constant 1.620000e+00 : f32
      %cst_42 = arith.constant 0.000000e+00 : f32
      %121 = vector.broadcast %cst_41 : f32 to vector<16x128xf32>
      %122 = vector.broadcast %cst_42 : f32 to vector<16x128xf32>
      %123 = arith.select %120, %121, %122 : vector<16x128xi1>, vector<16x128xf32>
      %cst_43 = arith.constant 3.240000e+00 : f32
      %124 = vector.broadcast %cst_43 : f32 to vector<16x128xf32>
      %125 = arith.select %118, %124, %123 : vector<16x128xi1>, vector<16x128xf32>
      %126 = arith.maximumf %105, %125 : vector<16x128xf32>
      %127 = arith.index_cast %27 : i32 to index
      %c26 = arith.constant 26 : index
      %128 = memref.load %arg1[%127, %c26] : memref<2x56xf32, #tpu.memory_space<smem>>
      %129 = arith.index_cast %27 : i32 to index
      %c27 = arith.constant 27 : index
      %130 = memref.load %arg1[%129, %c27] : memref<2x56xf32, #tpu.memory_space<smem>>
      %131 = vector.broadcast %128 : f32 to vector<16x128xf32>
      %132 = arith.subf %56, %131 : vector<16x128xf32>
      %133 = vector.broadcast %130 : f32 to vector<16x128xf32>
      %134 = arith.subf %5, %133 : vector<16x128xf32>
      %135 = arith.mulf %132, %132 : vector<16x128xf32>
      %136 = arith.mulf %134, %134 : vector<16x128xf32>
      %137 = arith.addf %135, %136 : vector<16x128xf32>
      %138 = vector.broadcast %62 : f32 to vector<16x128xf32>
      %139 = arith.cmpf ole, %137, %138 : vector<16x128xf32>
      %140 = vector.broadcast %63 : f32 to vector<16x128xf32>
      %141 = arith.cmpf ole, %137, %140 : vector<16x128xf32>
      %cst_44 = arith.constant 1.460000e+00 : f32
      %cst_45 = arith.constant 0.000000e+00 : f32
      %142 = vector.broadcast %cst_44 : f32 to vector<16x128xf32>
      %143 = vector.broadcast %cst_45 : f32 to vector<16x128xf32>
      %144 = arith.select %141, %142, %143 : vector<16x128xi1>, vector<16x128xf32>
      %cst_46 = arith.constant 2.920000e+00 : f32
      %145 = vector.broadcast %cst_46 : f32 to vector<16x128xf32>
      %146 = arith.select %139, %145, %144 : vector<16x128xi1>, vector<16x128xf32>
      %147 = arith.maximumf %126, %146 : vector<16x128xf32>
      %148 = arith.index_cast %27 : i32 to index
      %c32 = arith.constant 32 : index
      %149 = memref.load %arg1[%148, %c32] : memref<2x56xf32, #tpu.memory_space<smem>>
      %150 = arith.index_cast %27 : i32 to index
      %c33 = arith.constant 33 : index
      %151 = memref.load %arg1[%150, %c33] : memref<2x56xf32, #tpu.memory_space<smem>>
      %152 = vector.broadcast %149 : f32 to vector<16x128xf32>
      %153 = arith.subf %56, %152 : vector<16x128xf32>
      %154 = vector.broadcast %151 : f32 to vector<16x128xf32>
      %155 = arith.subf %5, %154 : vector<16x128xf32>
      %156 = arith.mulf %153, %153 : vector<16x128xf32>
      %157 = arith.mulf %155, %155 : vector<16x128xf32>
      %158 = arith.addf %156, %157 : vector<16x128xf32>
      %159 = vector.broadcast %62 : f32 to vector<16x128xf32>
      %160 = arith.cmpf ole, %158, %159 : vector<16x128xf32>
      %161 = vector.broadcast %63 : f32 to vector<16x128xf32>
      %162 = arith.cmpf ole, %158, %161 : vector<16x128xf32>
      %cst_47 = arith.constant 1.320000e+00 : f32
      %cst_48 = arith.constant 0.000000e+00 : f32
      %163 = vector.broadcast %cst_47 : f32 to vector<16x128xf32>
      %164 = vector.broadcast %cst_48 : f32 to vector<16x128xf32>
      %165 = arith.select %162, %163, %164 : vector<16x128xi1>, vector<16x128xf32>
      %cst_49 = arith.constant 2.640000e+00 : f32
      %166 = vector.broadcast %cst_49 : f32 to vector<16x128xf32>
      %167 = arith.select %160, %166, %165 : vector<16x128xi1>, vector<16x128xf32>
      %168 = arith.maximumf %147, %167 : vector<16x128xf32>
      %169 = arith.index_cast %27 : i32 to index
      %c38 = arith.constant 38 : index
      %170 = memref.load %arg1[%169, %c38] : memref<2x56xf32, #tpu.memory_space<smem>>
      %171 = arith.index_cast %27 : i32 to index
      %c39 = arith.constant 39 : index
      %172 = memref.load %arg1[%171, %c39] : memref<2x56xf32, #tpu.memory_space<smem>>
      %173 = vector.broadcast %170 : f32 to vector<16x128xf32>
      %174 = arith.subf %56, %173 : vector<16x128xf32>
      %175 = vector.broadcast %172 : f32 to vector<16x128xf32>
      %176 = arith.subf %5, %175 : vector<16x128xf32>
      %177 = arith.mulf %174, %174 : vector<16x128xf32>
      %178 = arith.mulf %176, %176 : vector<16x128xf32>
      %179 = arith.addf %177, %178 : vector<16x128xf32>
      %180 = vector.broadcast %62 : f32 to vector<16x128xf32>
      %181 = arith.cmpf ole, %179, %180 : vector<16x128xf32>
      %182 = vector.broadcast %63 : f32 to vector<16x128xf32>
      %183 = arith.cmpf ole, %179, %182 : vector<16x128xf32>
      %cst_50 = arith.constant 1.180000e+00 : f32
      %cst_51 = arith.constant 0.000000e+00 : f32
      %184 = vector.broadcast %cst_50 : f32 to vector<16x128xf32>
      %185 = vector.broadcast %cst_51 : f32 to vector<16x128xf32>
      %186 = arith.select %183, %184, %185 : vector<16x128xi1>, vector<16x128xf32>
      %cst_52 = arith.constant 2.360000e+00 : f32
      %187 = vector.broadcast %cst_52 : f32 to vector<16x128xf32>
      %188 = arith.select %181, %187, %186 : vector<16x128xi1>, vector<16x128xf32>
      %189 = arith.maximumf %168, %188 : vector<16x128xf32>
      %190 = arith.index_cast %27 : i32 to index
      %c44 = arith.constant 44 : index
      %191 = memref.load %arg1[%190, %c44] : memref<2x56xf32, #tpu.memory_space<smem>>
      %192 = arith.index_cast %27 : i32 to index
      %c45 = arith.constant 45 : index
      %193 = memref.load %arg1[%192, %c45] : memref<2x56xf32, #tpu.memory_space<smem>>
      %194 = vector.broadcast %191 : f32 to vector<16x128xf32>
      %195 = arith.subf %56, %194 : vector<16x128xf32>
      %196 = vector.broadcast %193 : f32 to vector<16x128xf32>
      %197 = arith.subf %5, %196 : vector<16x128xf32>
      %198 = arith.mulf %195, %195 : vector<16x128xf32>
      %199 = arith.mulf %197, %197 : vector<16x128xf32>
      %200 = arith.addf %198, %199 : vector<16x128xf32>
      %201 = vector.broadcast %62 : f32 to vector<16x128xf32>
      %202 = arith.cmpf ole, %200, %201 : vector<16x128xf32>
      %203 = vector.broadcast %63 : f32 to vector<16x128xf32>
      %204 = arith.cmpf ole, %200, %203 : vector<16x128xf32>
      %cst_53 = arith.constant 1.060000e+00 : f32
      %cst_54 = arith.constant 0.000000e+00 : f32
      %205 = vector.broadcast %cst_53 : f32 to vector<16x128xf32>
      %206 = vector.broadcast %cst_54 : f32 to vector<16x128xf32>
      %207 = arith.select %204, %205, %206 : vector<16x128xi1>, vector<16x128xf32>
      %cst_55 = arith.constant 2.120000e+00 : f32
      %208 = vector.broadcast %cst_55 : f32 to vector<16x128xf32>
      %209 = arith.select %202, %208, %207 : vector<16x128xi1>, vector<16x128xf32>
      %210 = arith.maximumf %189, %209 : vector<16x128xf32>
      %211 = arith.index_cast %27 : i32 to index
      %c50 = arith.constant 50 : index
      %212 = memref.load %arg1[%211, %c50] : memref<2x56xf32, #tpu.memory_space<smem>>
      %213 = arith.index_cast %27 : i32 to index
      %c51 = arith.constant 51 : index
      %214 = memref.load %arg1[%213, %c51] : memref<2x56xf32, #tpu.memory_space<smem>>
      %215 = vector.broadcast %212 : f32 to vector<16x128xf32>
      %216 = arith.subf %56, %215 : vector<16x128xf32>
      %217 = vector.broadcast %214 : f32 to vector<16x128xf32>
      %218 = arith.subf %5, %217 : vector<16x128xf32>
      %219 = arith.mulf %216, %216 : vector<16x128xf32>
      %220 = arith.mulf %218, %218 : vector<16x128xf32>
      %221 = arith.addf %219, %220 : vector<16x128xf32>
      %222 = vector.broadcast %62 : f32 to vector<16x128xf32>
      %223 = arith.cmpf ole, %221, %222 : vector<16x128xf32>
      %224 = vector.broadcast %63 : f32 to vector<16x128xf32>
      %225 = arith.cmpf ole, %221, %224 : vector<16x128xf32>
      %cst_56 = arith.constant 0.959999978 : f32
      %cst_57 = arith.constant 0.000000e+00 : f32
      %226 = vector.broadcast %cst_56 : f32 to vector<16x128xf32>
      %227 = vector.broadcast %cst_57 : f32 to vector<16x128xf32>
      %228 = arith.select %225, %226, %227 : vector<16x128xi1>, vector<16x128xf32>
      %cst_58 = arith.constant 1.920000e+00 : f32
      %229 = vector.broadcast %cst_58 : f32 to vector<16x128xf32>
      %230 = arith.select %223, %229, %228 : vector<16x128xi1>, vector<16x128xf32>
      %231 = arith.maximumf %210, %230 : vector<16x128xf32>
      %232 = arith.index_cast %27 : i32 to index
      %c3 = arith.constant 3 : index
      %233 = memref.load %arg1[%232, %c3] : memref<2x56xf32, #tpu.memory_space<smem>>
      %234 = arith.index_cast %27 : i32 to index
      %c6 = arith.constant 6 : index
      %235 = memref.load %arg1[%234, %c6] : memref<2x56xf32, #tpu.memory_space<smem>>
      %236 = arith.mulf %233, %233 : f32
      %237 = arith.mulf %235, %235 : f32
      %238 = arith.index_cast %27 : i32 to index
      %c10 = arith.constant 10 : index
      %239 = memref.load %arg1[%238, %c10] : memref<2x56xf32, #tpu.memory_space<smem>>
      %240 = arith.index_cast %27 : i32 to index
      %c11 = arith.constant 11 : index
      %241 = memref.load %arg1[%240, %c11] : memref<2x56xf32, #tpu.memory_space<smem>>
      %242 = vector.broadcast %239 : f32 to vector<16x128xf32>
      %243 = arith.subf %56, %242 : vector<16x128xf32>
      %244 = vector.broadcast %241 : f32 to vector<16x128xf32>
      %245 = arith.subf %5, %244 : vector<16x128xf32>
      %246 = arith.mulf %243, %243 : vector<16x128xf32>
      %247 = arith.mulf %245, %245 : vector<16x128xf32>
      %248 = arith.addf %246, %247 : vector<16x128xf32>
      %249 = vector.broadcast %236 : f32 to vector<16x128xf32>
      %250 = arith.cmpf ole, %248, %249 : vector<16x128xf32>
      %251 = vector.broadcast %237 : f32 to vector<16x128xf32>
      %252 = arith.cmpf ole, %248, %251 : vector<16x128xf32>
      %cst_59 = arith.constant 2.000000e+00 : f32
      %cst_60 = arith.constant 0.000000e+00 : f32
      %253 = vector.broadcast %cst_59 : f32 to vector<16x128xf32>
      %254 = vector.broadcast %cst_60 : f32 to vector<16x128xf32>
      %255 = arith.select %252, %253, %254 : vector<16x128xi1>, vector<16x128xf32>
      %cst_61 = arith.constant 4.000000e+00 : f32
      %256 = vector.broadcast %cst_61 : f32 to vector<16x128xf32>
      %257 = arith.select %250, %256, %255 : vector<16x128xi1>, vector<16x128xf32>
      %258 = arith.maximumf %231, %257 : vector<16x128xf32>
      %259 = arith.index_cast %27 : i32 to index
      %c16 = arith.constant 16 : index
      %260 = memref.load %arg1[%259, %c16] : memref<2x56xf32, #tpu.memory_space<smem>>
      %261 = arith.index_cast %27 : i32 to index
      %c17 = arith.constant 17 : index
      %262 = memref.load %arg1[%261, %c17] : memref<2x56xf32, #tpu.memory_space<smem>>
      %263 = vector.broadcast %260 : f32 to vector<16x128xf32>
      %264 = arith.subf %56, %263 : vector<16x128xf32>
      %265 = vector.broadcast %262 : f32 to vector<16x128xf32>
      %266 = arith.subf %5, %265 : vector<16x128xf32>
      %267 = arith.mulf %264, %264 : vector<16x128xf32>
      %268 = arith.mulf %266, %266 : vector<16x128xf32>
      %269 = arith.addf %267, %268 : vector<16x128xf32>
      %270 = vector.broadcast %236 : f32 to vector<16x128xf32>
      %271 = arith.cmpf ole, %269, %270 : vector<16x128xf32>
      %272 = vector.broadcast %237 : f32 to vector<16x128xf32>
      %273 = arith.cmpf ole, %269, %272 : vector<16x128xf32>
      %cst_62 = arith.constant 1.800000e+00 : f32
      %cst_63 = arith.constant 0.000000e+00 : f32
      %274 = vector.broadcast %cst_62 : f32 to vector<16x128xf32>
      %275 = vector.broadcast %cst_63 : f32 to vector<16x128xf32>
      %276 = arith.select %273, %274, %275 : vector<16x128xi1>, vector<16x128xf32>
      %cst_64 = arith.constant 3.600000e+00 : f32
      %277 = vector.broadcast %cst_64 : f32 to vector<16x128xf32>
      %278 = arith.select %271, %277, %276 : vector<16x128xi1>, vector<16x128xf32>
      %279 = arith.maximumf %258, %278 : vector<16x128xf32>
      %280 = arith.index_cast %27 : i32 to index
      %c22 = arith.constant 22 : index
      %281 = memref.load %arg1[%280, %c22] : memref<2x56xf32, #tpu.memory_space<smem>>
      %282 = arith.index_cast %27 : i32 to index
      %c23 = arith.constant 23 : index
      %283 = memref.load %arg1[%282, %c23] : memref<2x56xf32, #tpu.memory_space<smem>>
      %284 = vector.broadcast %281 : f32 to vector<16x128xf32>
      %285 = arith.subf %56, %284 : vector<16x128xf32>
      %286 = vector.broadcast %283 : f32 to vector<16x128xf32>
      %287 = arith.subf %5, %286 : vector<16x128xf32>
      %288 = arith.mulf %285, %285 : vector<16x128xf32>
      %289 = arith.mulf %287, %287 : vector<16x128xf32>
      %290 = arith.addf %288, %289 : vector<16x128xf32>
      %291 = vector.broadcast %236 : f32 to vector<16x128xf32>
      %292 = arith.cmpf ole, %290, %291 : vector<16x128xf32>
      %293 = vector.broadcast %237 : f32 to vector<16x128xf32>
      %294 = arith.cmpf ole, %290, %293 : vector<16x128xf32>
      %cst_65 = arith.constant 1.620000e+00 : f32
      %cst_66 = arith.constant 0.000000e+00 : f32
      %295 = vector.broadcast %cst_65 : f32 to vector<16x128xf32>
      %296 = vector.broadcast %cst_66 : f32 to vector<16x128xf32>
      %297 = arith.select %294, %295, %296 : vector<16x128xi1>, vector<16x128xf32>
      %cst_67 = arith.constant 3.240000e+00 : f32
      %298 = vector.broadcast %cst_67 : f32 to vector<16x128xf32>
      %299 = arith.select %292, %298, %297 : vector<16x128xi1>, vector<16x128xf32>
      %300 = arith.maximumf %279, %299 : vector<16x128xf32>
      %301 = arith.index_cast %27 : i32 to index
      %c28 = arith.constant 28 : index
      %302 = memref.load %arg1[%301, %c28] : memref<2x56xf32, #tpu.memory_space<smem>>
      %303 = arith.index_cast %27 : i32 to index
      %c29 = arith.constant 29 : index
      %304 = memref.load %arg1[%303, %c29] : memref<2x56xf32, #tpu.memory_space<smem>>
      %305 = vector.broadcast %302 : f32 to vector<16x128xf32>
      %306 = arith.subf %56, %305 : vector<16x128xf32>
      %307 = vector.broadcast %304 : f32 to vector<16x128xf32>
      %308 = arith.subf %5, %307 : vector<16x128xf32>
      %309 = arith.mulf %306, %306 : vector<16x128xf32>
      %310 = arith.mulf %308, %308 : vector<16x128xf32>
      %311 = arith.addf %309, %310 : vector<16x128xf32>
      %312 = vector.broadcast %236 : f32 to vector<16x128xf32>
      %313 = arith.cmpf ole, %311, %312 : vector<16x128xf32>
      %314 = vector.broadcast %237 : f32 to vector<16x128xf32>
      %315 = arith.cmpf ole, %311, %314 : vector<16x128xf32>
      %cst_68 = arith.constant 1.460000e+00 : f32
      %cst_69 = arith.constant 0.000000e+00 : f32
      %316 = vector.broadcast %cst_68 : f32 to vector<16x128xf32>
      %317 = vector.broadcast %cst_69 : f32 to vector<16x128xf32>
      %318 = arith.select %315, %316, %317 : vector<16x128xi1>, vector<16x128xf32>
      %cst_70 = arith.constant 2.920000e+00 : f32
      %319 = vector.broadcast %cst_70 : f32 to vector<16x128xf32>
      %320 = arith.select %313, %319, %318 : vector<16x128xi1>, vector<16x128xf32>
      %321 = arith.maximumf %300, %320 : vector<16x128xf32>
      %322 = arith.index_cast %27 : i32 to index
      %c34 = arith.constant 34 : index
      %323 = memref.load %arg1[%322, %c34] : memref<2x56xf32, #tpu.memory_space<smem>>
      %324 = arith.index_cast %27 : i32 to index
      %c35 = arith.constant 35 : index
      %325 = memref.load %arg1[%324, %c35] : memref<2x56xf32, #tpu.memory_space<smem>>
      %326 = vector.broadcast %323 : f32 to vector<16x128xf32>
      %327 = arith.subf %56, %326 : vector<16x128xf32>
      %328 = vector.broadcast %325 : f32 to vector<16x128xf32>
      %329 = arith.subf %5, %328 : vector<16x128xf32>
      %330 = arith.mulf %327, %327 : vector<16x128xf32>
      %331 = arith.mulf %329, %329 : vector<16x128xf32>
      %332 = arith.addf %330, %331 : vector<16x128xf32>
      %333 = vector.broadcast %236 : f32 to vector<16x128xf32>
      %334 = arith.cmpf ole, %332, %333 : vector<16x128xf32>
      %335 = vector.broadcast %237 : f32 to vector<16x128xf32>
      %336 = arith.cmpf ole, %332, %335 : vector<16x128xf32>
      %cst_71 = arith.constant 1.320000e+00 : f32
      %cst_72 = arith.constant 0.000000e+00 : f32
      %337 = vector.broadcast %cst_71 : f32 to vector<16x128xf32>
      %338 = vector.broadcast %cst_72 : f32 to vector<16x128xf32>
      %339 = arith.select %336, %337, %338 : vector<16x128xi1>, vector<16x128xf32>
      %cst_73 = arith.constant 2.640000e+00 : f32
      %340 = vector.broadcast %cst_73 : f32 to vector<16x128xf32>
      %341 = arith.select %334, %340, %339 : vector<16x128xi1>, vector<16x128xf32>
      %342 = arith.maximumf %321, %341 : vector<16x128xf32>
      %343 = arith.index_cast %27 : i32 to index
      %c40 = arith.constant 40 : index
      %344 = memref.load %arg1[%343, %c40] : memref<2x56xf32, #tpu.memory_space<smem>>
      %345 = arith.index_cast %27 : i32 to index
      %c41 = arith.constant 41 : index
      %346 = memref.load %arg1[%345, %c41] : memref<2x56xf32, #tpu.memory_space<smem>>
      %347 = vector.broadcast %344 : f32 to vector<16x128xf32>
      %348 = arith.subf %56, %347 : vector<16x128xf32>
      %349 = vector.broadcast %346 : f32 to vector<16x128xf32>
      %350 = arith.subf %5, %349 : vector<16x128xf32>
      %351 = arith.mulf %348, %348 : vector<16x128xf32>
      %352 = arith.mulf %350, %350 : vector<16x128xf32>
      %353 = arith.addf %351, %352 : vector<16x128xf32>
      %354 = vector.broadcast %236 : f32 to vector<16x128xf32>
      %355 = arith.cmpf ole, %353, %354 : vector<16x128xf32>
      %356 = vector.broadcast %237 : f32 to vector<16x128xf32>
      %357 = arith.cmpf ole, %353, %356 : vector<16x128xf32>
      %cst_74 = arith.constant 1.180000e+00 : f32
      %cst_75 = arith.constant 0.000000e+00 : f32
      %358 = vector.broadcast %cst_74 : f32 to vector<16x128xf32>
      %359 = vector.broadcast %cst_75 : f32 to vector<16x128xf32>
      %360 = arith.select %357, %358, %359 : vector<16x128xi1>, vector<16x128xf32>
      %cst_76 = arith.constant 2.360000e+00 : f32
      %361 = vector.broadcast %cst_76 : f32 to vector<16x128xf32>
      %362 = arith.select %355, %361, %360 : vector<16x128xi1>, vector<16x128xf32>
      %363 = arith.maximumf %342, %362 : vector<16x128xf32>
      %364 = arith.index_cast %27 : i32 to index
      %c46 = arith.constant 46 : index
      %365 = memref.load %arg1[%364, %c46] : memref<2x56xf32, #tpu.memory_space<smem>>
      %366 = arith.index_cast %27 : i32 to index
      %c47 = arith.constant 47 : index
      %367 = memref.load %arg1[%366, %c47] : memref<2x56xf32, #tpu.memory_space<smem>>
      %368 = vector.broadcast %365 : f32 to vector<16x128xf32>
      %369 = arith.subf %56, %368 : vector<16x128xf32>
      %370 = vector.broadcast %367 : f32 to vector<16x128xf32>
      %371 = arith.subf %5, %370 : vector<16x128xf32>
      %372 = arith.mulf %369, %369 : vector<16x128xf32>
      %373 = arith.mulf %371, %371 : vector<16x128xf32>
      %374 = arith.addf %372, %373 : vector<16x128xf32>
      %375 = vector.broadcast %236 : f32 to vector<16x128xf32>
      %376 = arith.cmpf ole, %374, %375 : vector<16x128xf32>
      %377 = vector.broadcast %237 : f32 to vector<16x128xf32>
      %378 = arith.cmpf ole, %374, %377 : vector<16x128xf32>
      %cst_77 = arith.constant 1.060000e+00 : f32
      %cst_78 = arith.constant 0.000000e+00 : f32
      %379 = vector.broadcast %cst_77 : f32 to vector<16x128xf32>
      %380 = vector.broadcast %cst_78 : f32 to vector<16x128xf32>
      %381 = arith.select %378, %379, %380 : vector<16x128xi1>, vector<16x128xf32>
      %cst_79 = arith.constant 2.120000e+00 : f32
      %382 = vector.broadcast %cst_79 : f32 to vector<16x128xf32>
      %383 = arith.select %376, %382, %381 : vector<16x128xi1>, vector<16x128xf32>
      %384 = arith.maximumf %363, %383 : vector<16x128xf32>
      %385 = arith.index_cast %27 : i32 to index
      %c52 = arith.constant 52 : index
      %386 = memref.load %arg1[%385, %c52] : memref<2x56xf32, #tpu.memory_space<smem>>
      %387 = arith.index_cast %27 : i32 to index
      %c53 = arith.constant 53 : index
      %388 = memref.load %arg1[%387, %c53] : memref<2x56xf32, #tpu.memory_space<smem>>
      %389 = vector.broadcast %386 : f32 to vector<16x128xf32>
      %390 = arith.subf %56, %389 : vector<16x128xf32>
      %391 = vector.broadcast %388 : f32 to vector<16x128xf32>
      %392 = arith.subf %5, %391 : vector<16x128xf32>
      %393 = arith.mulf %390, %390 : vector<16x128xf32>
      %394 = arith.mulf %392, %392 : vector<16x128xf32>
      %395 = arith.addf %393, %394 : vector<16x128xf32>
      %396 = vector.broadcast %236 : f32 to vector<16x128xf32>
      %397 = arith.cmpf ole, %395, %396 : vector<16x128xf32>
      %398 = vector.broadcast %237 : f32 to vector<16x128xf32>
      %399 = arith.cmpf ole, %395, %398 : vector<16x128xf32>
      %cst_80 = arith.constant 0.959999978 : f32
      %cst_81 = arith.constant 0.000000e+00 : f32
      %400 = vector.broadcast %cst_80 : f32 to vector<16x128xf32>
      %401 = vector.broadcast %cst_81 : f32 to vector<16x128xf32>
      %402 = arith.select %399, %400, %401 : vector<16x128xi1>, vector<16x128xf32>
      %cst_82 = arith.constant 1.920000e+00 : f32
      %403 = vector.broadcast %cst_82 : f32 to vector<16x128xf32>
      %404 = arith.select %397, %403, %402 : vector<16x128xi1>, vector<16x128xf32>
      %405 = arith.maximumf %384, %404 : vector<16x128xf32>
      %406 = arith.index_cast %27 : i32 to index
      %c4 = arith.constant 4 : index
      %407 = memref.load %arg1[%406, %c4] : memref<2x56xf32, #tpu.memory_space<smem>>
      %408 = arith.index_cast %27 : i32 to index
      %c7 = arith.constant 7 : index
      %409 = memref.load %arg1[%408, %c7] : memref<2x56xf32, #tpu.memory_space<smem>>
      %410 = arith.mulf %407, %407 : f32
      %411 = arith.mulf %409, %409 : f32
      %412 = arith.index_cast %27 : i32 to index
      %c12 = arith.constant 12 : index
      %413 = memref.load %arg1[%412, %c12] : memref<2x56xf32, #tpu.memory_space<smem>>
      %414 = arith.index_cast %27 : i32 to index
      %c13 = arith.constant 13 : index
      %415 = memref.load %arg1[%414, %c13] : memref<2x56xf32, #tpu.memory_space<smem>>
      %416 = vector.broadcast %413 : f32 to vector<16x128xf32>
      %417 = arith.subf %56, %416 : vector<16x128xf32>
      %418 = vector.broadcast %415 : f32 to vector<16x128xf32>
      %419 = arith.subf %5, %418 : vector<16x128xf32>
      %420 = arith.mulf %417, %417 : vector<16x128xf32>
      %421 = arith.mulf %419, %419 : vector<16x128xf32>
      %422 = arith.addf %420, %421 : vector<16x128xf32>
      %423 = vector.broadcast %410 : f32 to vector<16x128xf32>
      %424 = arith.cmpf ole, %422, %423 : vector<16x128xf32>
      %425 = vector.broadcast %411 : f32 to vector<16x128xf32>
      %426 = arith.cmpf ole, %422, %425 : vector<16x128xf32>
      %cst_83 = arith.constant 2.000000e+00 : f32
      %cst_84 = arith.constant 0.000000e+00 : f32
      %427 = vector.broadcast %cst_83 : f32 to vector<16x128xf32>
      %428 = vector.broadcast %cst_84 : f32 to vector<16x128xf32>
      %429 = arith.select %426, %427, %428 : vector<16x128xi1>, vector<16x128xf32>
      %cst_85 = arith.constant 4.000000e+00 : f32
      %430 = vector.broadcast %cst_85 : f32 to vector<16x128xf32>
      %431 = arith.select %424, %430, %429 : vector<16x128xi1>, vector<16x128xf32>
      %432 = arith.maximumf %405, %431 : vector<16x128xf32>
      %433 = arith.index_cast %27 : i32 to index
      %c18 = arith.constant 18 : index
      %434 = memref.load %arg1[%433, %c18] : memref<2x56xf32, #tpu.memory_space<smem>>
      %435 = arith.index_cast %27 : i32 to index
      %c19 = arith.constant 19 : index
      %436 = memref.load %arg1[%435, %c19] : memref<2x56xf32, #tpu.memory_space<smem>>
      %437 = vector.broadcast %434 : f32 to vector<16x128xf32>
      %438 = arith.subf %56, %437 : vector<16x128xf32>
      %439 = vector.broadcast %436 : f32 to vector<16x128xf32>
      %440 = arith.subf %5, %439 : vector<16x128xf32>
      %441 = arith.mulf %438, %438 : vector<16x128xf32>
      %442 = arith.mulf %440, %440 : vector<16x128xf32>
      %443 = arith.addf %441, %442 : vector<16x128xf32>
      %444 = vector.broadcast %410 : f32 to vector<16x128xf32>
      %445 = arith.cmpf ole, %443, %444 : vector<16x128xf32>
      %446 = vector.broadcast %411 : f32 to vector<16x128xf32>
      %447 = arith.cmpf ole, %443, %446 : vector<16x128xf32>
      %cst_86 = arith.constant 1.800000e+00 : f32
      %cst_87 = arith.constant 0.000000e+00 : f32
      %448 = vector.broadcast %cst_86 : f32 to vector<16x128xf32>
      %449 = vector.broadcast %cst_87 : f32 to vector<16x128xf32>
      %450 = arith.select %447, %448, %449 : vector<16x128xi1>, vector<16x128xf32>
      %cst_88 = arith.constant 3.600000e+00 : f32
      %451 = vector.broadcast %cst_88 : f32 to vector<16x128xf32>
      %452 = arith.select %445, %451, %450 : vector<16x128xi1>, vector<16x128xf32>
      %453 = arith.maximumf %432, %452 : vector<16x128xf32>
      %454 = arith.index_cast %27 : i32 to index
      %c24 = arith.constant 24 : index
      %455 = memref.load %arg1[%454, %c24] : memref<2x56xf32, #tpu.memory_space<smem>>
      %456 = arith.index_cast %27 : i32 to index
      %c25 = arith.constant 25 : index
      %457 = memref.load %arg1[%456, %c25] : memref<2x56xf32, #tpu.memory_space<smem>>
      %458 = vector.broadcast %455 : f32 to vector<16x128xf32>
      %459 = arith.subf %56, %458 : vector<16x128xf32>
      %460 = vector.broadcast %457 : f32 to vector<16x128xf32>
      %461 = arith.subf %5, %460 : vector<16x128xf32>
      %462 = arith.mulf %459, %459 : vector<16x128xf32>
      %463 = arith.mulf %461, %461 : vector<16x128xf32>
      %464 = arith.addf %462, %463 : vector<16x128xf32>
      %465 = vector.broadcast %410 : f32 to vector<16x128xf32>
      %466 = arith.cmpf ole, %464, %465 : vector<16x128xf32>
      %467 = vector.broadcast %411 : f32 to vector<16x128xf32>
      %468 = arith.cmpf ole, %464, %467 : vector<16x128xf32>
      %cst_89 = arith.constant 1.620000e+00 : f32
      %cst_90 = arith.constant 0.000000e+00 : f32
      %469 = vector.broadcast %cst_89 : f32 to vector<16x128xf32>
      %470 = vector.broadcast %cst_90 : f32 to vector<16x128xf32>
      %471 = arith.select %468, %469, %470 : vector<16x128xi1>, vector<16x128xf32>
      %cst_91 = arith.constant 3.240000e+00 : f32
      %472 = vector.broadcast %cst_91 : f32 to vector<16x128xf32>
      %473 = arith.select %466, %472, %471 : vector<16x128xi1>, vector<16x128xf32>
      %474 = arith.maximumf %453, %473 : vector<16x128xf32>
      %475 = arith.index_cast %27 : i32 to index
      %c30 = arith.constant 30 : index
      %476 = memref.load %arg1[%475, %c30] : memref<2x56xf32, #tpu.memory_space<smem>>
      %477 = arith.index_cast %27 : i32 to index
      %c31 = arith.constant 31 : index
      %478 = memref.load %arg1[%477, %c31] : memref<2x56xf32, #tpu.memory_space<smem>>
      %479 = vector.broadcast %476 : f32 to vector<16x128xf32>
      %480 = arith.subf %56, %479 : vector<16x128xf32>
      %481 = vector.broadcast %478 : f32 to vector<16x128xf32>
      %482 = arith.subf %5, %481 : vector<16x128xf32>
      %483 = arith.mulf %480, %480 : vector<16x128xf32>
      %484 = arith.mulf %482, %482 : vector<16x128xf32>
      %485 = arith.addf %483, %484 : vector<16x128xf32>
      %486 = vector.broadcast %410 : f32 to vector<16x128xf32>
      %487 = arith.cmpf ole, %485, %486 : vector<16x128xf32>
      %488 = vector.broadcast %411 : f32 to vector<16x128xf32>
      %489 = arith.cmpf ole, %485, %488 : vector<16x128xf32>
      %cst_92 = arith.constant 1.460000e+00 : f32
      %cst_93 = arith.constant 0.000000e+00 : f32
      %490 = vector.broadcast %cst_92 : f32 to vector<16x128xf32>
      %491 = vector.broadcast %cst_93 : f32 to vector<16x128xf32>
      %492 = arith.select %489, %490, %491 : vector<16x128xi1>, vector<16x128xf32>
      %cst_94 = arith.constant 2.920000e+00 : f32
      %493 = vector.broadcast %cst_94 : f32 to vector<16x128xf32>
      %494 = arith.select %487, %493, %492 : vector<16x128xi1>, vector<16x128xf32>
      %495 = arith.maximumf %474, %494 : vector<16x128xf32>
      %496 = arith.index_cast %27 : i32 to index
      %c36 = arith.constant 36 : index
      %497 = memref.load %arg1[%496, %c36] : memref<2x56xf32, #tpu.memory_space<smem>>
      %498 = arith.index_cast %27 : i32 to index
      %c37 = arith.constant 37 : index
      %499 = memref.load %arg1[%498, %c37] : memref<2x56xf32, #tpu.memory_space<smem>>
      %500 = vector.broadcast %497 : f32 to vector<16x128xf32>
      %501 = arith.subf %56, %500 : vector<16x128xf32>
      %502 = vector.broadcast %499 : f32 to vector<16x128xf32>
      %503 = arith.subf %5, %502 : vector<16x128xf32>
      %504 = arith.mulf %501, %501 : vector<16x128xf32>
      %505 = arith.mulf %503, %503 : vector<16x128xf32>
      %506 = arith.addf %504, %505 : vector<16x128xf32>
      %507 = vector.broadcast %410 : f32 to vector<16x128xf32>
      %508 = arith.cmpf ole, %506, %507 : vector<16x128xf32>
      %509 = vector.broadcast %411 : f32 to vector<16x128xf32>
      %510 = arith.cmpf ole, %506, %509 : vector<16x128xf32>
      %cst_95 = arith.constant 1.320000e+00 : f32
      %cst_96 = arith.constant 0.000000e+00 : f32
      %511 = vector.broadcast %cst_95 : f32 to vector<16x128xf32>
      %512 = vector.broadcast %cst_96 : f32 to vector<16x128xf32>
      %513 = arith.select %510, %511, %512 : vector<16x128xi1>, vector<16x128xf32>
      %cst_97 = arith.constant 2.640000e+00 : f32
      %514 = vector.broadcast %cst_97 : f32 to vector<16x128xf32>
      %515 = arith.select %508, %514, %513 : vector<16x128xi1>, vector<16x128xf32>
      %516 = arith.maximumf %495, %515 : vector<16x128xf32>
      %517 = arith.index_cast %27 : i32 to index
      %c42 = arith.constant 42 : index
      %518 = memref.load %arg1[%517, %c42] : memref<2x56xf32, #tpu.memory_space<smem>>
      %519 = arith.index_cast %27 : i32 to index
      %c43 = arith.constant 43 : index
      %520 = memref.load %arg1[%519, %c43] : memref<2x56xf32, #tpu.memory_space<smem>>
      %521 = vector.broadcast %518 : f32 to vector<16x128xf32>
      %522 = arith.subf %56, %521 : vector<16x128xf32>
      %523 = vector.broadcast %520 : f32 to vector<16x128xf32>
      %524 = arith.subf %5, %523 : vector<16x128xf32>
      %525 = arith.mulf %522, %522 : vector<16x128xf32>
      %526 = arith.mulf %524, %524 : vector<16x128xf32>
      %527 = arith.addf %525, %526 : vector<16x128xf32>
      %528 = vector.broadcast %410 : f32 to vector<16x128xf32>
      %529 = arith.cmpf ole, %527, %528 : vector<16x128xf32>
      %530 = vector.broadcast %411 : f32 to vector<16x128xf32>
      %531 = arith.cmpf ole, %527, %530 : vector<16x128xf32>
      %cst_98 = arith.constant 1.180000e+00 : f32
      %cst_99 = arith.constant 0.000000e+00 : f32
      %532 = vector.broadcast %cst_98 : f32 to vector<16x128xf32>
      %533 = vector.broadcast %cst_99 : f32 to vector<16x128xf32>
      %534 = arith.select %531, %532, %533 : vector<16x128xi1>, vector<16x128xf32>
      %cst_100 = arith.constant 2.360000e+00 : f32
      %535 = vector.broadcast %cst_100 : f32 to vector<16x128xf32>
      %536 = arith.select %529, %535, %534 : vector<16x128xi1>, vector<16x128xf32>
      %537 = arith.maximumf %516, %536 : vector<16x128xf32>
      %538 = arith.index_cast %27 : i32 to index
      %c48 = arith.constant 48 : index
      %539 = memref.load %arg1[%538, %c48] : memref<2x56xf32, #tpu.memory_space<smem>>
      %540 = arith.index_cast %27 : i32 to index
      %c49 = arith.constant 49 : index
      %541 = memref.load %arg1[%540, %c49] : memref<2x56xf32, #tpu.memory_space<smem>>
      %542 = vector.broadcast %539 : f32 to vector<16x128xf32>
      %543 = arith.subf %56, %542 : vector<16x128xf32>
      %544 = vector.broadcast %541 : f32 to vector<16x128xf32>
      %545 = arith.subf %5, %544 : vector<16x128xf32>
      %546 = arith.mulf %543, %543 : vector<16x128xf32>
      %547 = arith.mulf %545, %545 : vector<16x128xf32>
      %548 = arith.addf %546, %547 : vector<16x128xf32>
      %549 = vector.broadcast %410 : f32 to vector<16x128xf32>
      %550 = arith.cmpf ole, %548, %549 : vector<16x128xf32>
      %551 = vector.broadcast %411 : f32 to vector<16x128xf32>
      %552 = arith.cmpf ole, %548, %551 : vector<16x128xf32>
      %cst_101 = arith.constant 1.060000e+00 : f32
      %cst_102 = arith.constant 0.000000e+00 : f32
      %553 = vector.broadcast %cst_101 : f32 to vector<16x128xf32>
      %554 = vector.broadcast %cst_102 : f32 to vector<16x128xf32>
      %555 = arith.select %552, %553, %554 : vector<16x128xi1>, vector<16x128xf32>
      %cst_103 = arith.constant 2.120000e+00 : f32
      %556 = vector.broadcast %cst_103 : f32 to vector<16x128xf32>
      %557 = arith.select %550, %556, %555 : vector<16x128xi1>, vector<16x128xf32>
      %558 = arith.maximumf %537, %557 : vector<16x128xf32>
      %559 = arith.index_cast %27 : i32 to index
      %c54 = arith.constant 54 : index
      %560 = memref.load %arg1[%559, %c54] : memref<2x56xf32, #tpu.memory_space<smem>>
      %561 = arith.index_cast %27 : i32 to index
      %c55 = arith.constant 55 : index
      %562 = memref.load %arg1[%561, %c55] : memref<2x56xf32, #tpu.memory_space<smem>>
      %563 = vector.broadcast %560 : f32 to vector<16x128xf32>
      %564 = arith.subf %56, %563 : vector<16x128xf32>
      %565 = vector.broadcast %562 : f32 to vector<16x128xf32>
      %566 = arith.subf %5, %565 : vector<16x128xf32>
      %567 = arith.mulf %564, %564 : vector<16x128xf32>
      %568 = arith.mulf %566, %566 : vector<16x128xf32>
      %569 = arith.addf %567, %568 : vector<16x128xf32>
      %570 = vector.broadcast %410 : f32 to vector<16x128xf32>
      %571 = arith.cmpf ole, %569, %570 : vector<16x128xf32>
      %572 = vector.broadcast %411 : f32 to vector<16x128xf32>
      %573 = arith.cmpf ole, %569, %572 : vector<16x128xf32>
      %cst_104 = arith.constant 0.959999978 : f32
      %cst_105 = arith.constant 0.000000e+00 : f32
      %574 = vector.broadcast %cst_104 : f32 to vector<16x128xf32>
      %575 = vector.broadcast %cst_105 : f32 to vector<16x128xf32>
      %576 = arith.select %573, %574, %575 : vector<16x128xi1>, vector<16x128xf32>
      %cst_106 = arith.constant 1.920000e+00 : f32
      %577 = vector.broadcast %cst_106 : f32 to vector<16x128xf32>
      %578 = arith.select %571, %577, %576 : vector<16x128xi1>, vector<16x128xf32>
      %579 = arith.maximumf %558, %578 : vector<16x128xf32>
      %580 = vector.broadcast %29 : f32 to vector<16x128xf32>
      %581 = arith.subf %56, %580 : vector<16x128xf32>
      %582 = arith.mulf %581, %581 : vector<16x128xf32>
      %583 = vector.broadcast %31 : f32 to vector<16x128xf32>
      %584 = arith.subf %5, %583 : vector<16x128xf32>
      %585 = arith.mulf %584, %584 : vector<16x128xf32>
      %586 = arith.addf %582, %585 : vector<16x128xf32>
      %587 = math.sqrt %586 : vector<16x128xf32>
      %cst_107 = arith.constant 5.000000e-01 : f32
      %588 = vector.broadcast %cst_107 : f32 to vector<16x128xf32>
      %589 = arith.mulf %588, %587 : vector<16x128xf32>
      %590 = arith.addf %589, %579 : vector<16x128xf32>
      %c1_108 = arith.constant 1 : index
      %591 = arith.index_cast %48 : i32 to index
      %c0_109 = arith.constant 0 : index
      %592 = vector.load %arg2[%c1_108, %591, %c0_109] : memref<2x128x128xf32, #tpu.memory_space<vmem>>, vector<1x16x128xf32>
      %593 = vector.shape_cast %592 : vector<1x16x128xf32> to vector<16x128xf32>
      %594 = vector.shape_cast %590 : vector<16x128xf32> to vector<1x16x128xf32>
      tpu.vector_store %arg2[%c1_108, %591, %c0_109], %594 {strides = array<i32>} : memref<2x128x128xf32, #tpu.memory_space<vmem>>, vector<1x16x128xf32>,
      %595 = vector.shape_cast %590 : vector<16x128xf32> to vector<1x16x128xf32>
      %cst_110 = arith.constant dense<0x7F800000> : vector<1xf32>
      %596 = vector.multi_reduction <minimumf>, %595, %cst_110 [1, 2] : vector<1x16x128xf32> to vector<1xf32>
      %597 = vector.shape_cast %596 : vector<1xf32> to vector<1x1x1xf32>
      %598 = vector.extract %597[0, 0, 0] : f32 from vector<1x1x1xf32>
      %599 = arith.minimumf %arg4, %598 : f32
      %600 = vector.shape_cast %590 : vector<16x128xf32> to vector<1x16x128xf32>
      %cst_111 = arith.constant dense<0xFF800000> : vector<1xf32>
      %601 = vector.multi_reduction <maximumf>, %600, %cst_111 [1, 2] : vector<1x16x128xf32> to vector<1xf32>
      %602 = vector.shape_cast %601 : vector<1xf32> to vector<1x1x1xf32>
      %603 = vector.extract %602[0, 0, 0] : f32 from vector<1x1x1xf32>
      %604 = arith.maximumf %arg5, %603 : f32
      scf.yield %599, %604 : f32, f32
    }
    %c8_i32_22 = arith.constant 8 : i32
    %34 = arith.subf %33#1, %33#0 : f32
    %cst_23 = arith.constant 0.000000e+00 : f32
    %35 = arith.cmpf ogt, %34, %cst_23 : f32
    %cst_24 = arith.constant 1.000000e+00 : f32
    %36 = arith.divf %cst_24, %34 : f32
    %cst_25 = arith.constant 0.000000e+00 : f32
    %37 = arith.select %35, %36, %cst_25 : f32
    %c1_26 = arith.constant 1 : index
    %c0_27 = arith.constant 0 : index
    %c0_28 = arith.constant 0 : index
    %38 = vector.load %arg2[%c1_26, %c0_27, %c0_28] : memref<2x128x128xf32, #tpu.memory_space<vmem>>, vector<1x128x128xf32>
    %39 = vector.shape_cast %38 : vector<1x128x128xf32> to vector<128x128xf32>
    %40 = vector.broadcast %33#0 : f32 to vector<128x128xf32>
    %41 = arith.subf %39, %40 : vector<128x128xf32>
    %42 = vector.broadcast %37 : f32 to vector<128x128xf32>
    %43 = arith.mulf %41, %42 : vector<128x128xf32>
    %c1_29 = arith.constant 1 : index
    %c0_30 = arith.constant 0 : index
    %c0_31 = arith.constant 0 : index
    %44 = vector.load %arg2[%c1_29, %c0_30, %c0_31] : memref<2x128x128xf32, #tpu.memory_space<vmem>>, vector<1x128x128xf32>
    %45 = vector.shape_cast %44 : vector<1x128x128xf32> to vector<128x128xf32>
    %46 = vector.shape_cast %43 : vector<128x128xf32> to vector<1x128x128xf32>
    tpu.vector_store %arg2[%c1_29, %c0_30, %c0_31], %46 {strides = array<i32>} : memref<2x128x128xf32, #tpu.memory_space<vmem>>, vector<1x128x128xf32>,
    return
  }
  func.func @transform_0(%arg0: i32) -> (i32, i32) {
    %c0_i32 = arith.constant 0 : i32
    %c0_i32_0 = arith.constant 0 : i32
    %c0_i32_1 = arith.constant 0 : i32
    return %c0_i32, %c0_i32_0 : i32, i32
  }
  func.func @transform_1(%arg0: i32) -> (i32, i32, i32) {
    %c0_i32 = arith.constant 0 : i32
    %c0_i32_0 = arith.constant 0 : i32
    %c0_i32_1 = arith.constant 0 : i32
    return %arg0, %c0_i32, %c0_i32_0 : i32, i32, i32
  }
}

</mosaic_0001>

<bundles_post_ra>
// kernel: tpu_custom_call.1
= control target key start
LH: loop header
LB: loop body
LE: loop exit
PB: predicated region body
PF: predicated region fallthrough
CT: control target
= control target key end

     0   :  { %6 = vsyncpa [#allocation4], 0  ;;  %s2870_s0 = inlined_call_operand.hbm [shape: f32[2,56], index: 0, kind: input, shape index: {}]   ;;  %s2871_s1 = inlined_call_operand.hbm [shape: f32[2,128,128], index: 1, kind: output, shape index: {}]  }
   0x1   :  { %7 = vsyncpa [#allocation3], 0  ;;  %s1847_s6 = smov [#allocation2]  }
   0x2   :  { %15 = dma.hbm_to_smem %s2870_s0, 32, %s1847_s6, [#allocation4]  }
   0x3   :  { %1819 = dma.done.wait [#allocation4], 32  }
   0x4   :  { %1820 = vsyncadd [#allocation4], 4294967264 }
   0x5   :  { %19 = sfence }
   0x6   :  { %v20_v0 = vlaneseq  ;;  %s1866_s9 = sld [smem:[#allocation2]]  ;;  %s1873_s11 = smov -inf  }
   0x7   :  { %s1868_s10 = sld [smem:[#allocation2 + $0x1]]  ;;  %s1875_s12 = smov inf  }
   0x8   :  { %v21_v1 = vand.u32 127, %v20_v0  ;;  %s1877_s13 = smov 0  }
   0xa   :  { %v22_v2 = vcvt.s32.f32 %v21_v1 }
   0xc   :  { %v23_v3 = vmul.f32 0.0503937, %v22_v2 }
   0xe   :  { %v1871_v4 = vsub.f32 3.2, %v23_v3 }
   0xf LB: > { %v1889_v5 = vshrl.u32 %v20_v0, 7  ;;  %s1891_s0 = sld [smem:[#allocation2 + $0x2]]  ;;  %s1574_s15 = sshll.u32 %s1833_s13, 4  ;;  %v1848_v46 = vmov 0.0   ;;  %s1833_s13 = sphi %s1877_s13, %s35_s13   ;;  %s1829_s12 = sphi %s1875_s12, %s2873_s12   ;;  %s1825_s11 = sphi %s1873_s11, %s2872_s11  }
  0x10   : > { %s1576_s14 = sld [smem:[#allocation2 + $0x5]]  ;;  %v42_v7 = vstv %s1574_s15  ;;  %s35_s13 = sadd.s32 1, %s1833_s13  }
  0x11   : > { %v1895_v6 = vadd.s32 8, %v1889_v5  ;;  %s1577_s16 = sld [smem:[#allocation2 + $0x8]]  ;;  %v43_v8 = vadd.s32 %v42_v7, %v1889_v5  ;;  %p32_p0 = scmp.ge.s32.totalorder %s35_s13, 8  }
  0x12   : > { %s1578_s17 = sld [smem:[#allocation2 + $0x9]] }
  0x13   : > { %v44_v9 = vadd.s32 %v42_v7, %v1895_v6  ;;  %s1579_s18 = sld [smem:[#allocation2 + $0xe]]  ;;  %v45_v10 = vcvt.s32.f32 %v43_v8 }
  0x14   : > { %s1580_s19 = sld [smem:[#allocation2 + $0xf]] }
  0x15   : > { %v46_v11 = vcvt.s32.f32 %v44_v9  ;;  %s1581_s20 = sld [smem:[#allocation2 + $0x14]]  ;;  %v47_v12 = vmul.f32 0.0503937, %v45_v10  ;;  %s55_s23 = smul.f32 %s1891_s0, %s1891_s0 }
  0x16   : > { %s56_s21 = smul.f32 %s1576_s14, %s1576_s14  ;;  %s1582_s22 = sld [smem:[#allocation2 + $0x15]] }
  0x17   : > { %v48_v13 = vmul.f32 0.0503937, %v46_v11  ;;  %v61_v14 = vstv %s1577_s16  ;;  %v1901_v16 = vsub.f32 3.2, %v47_v12  ;;  %s1913_s24 = sld [smem:[#allocation2 + $0x1a]]  ;;  %v1920_v40 = vstv %s55_s23 }
  0x18   : > { %v64_v15 = vstv %s1578_s17  ;;  %v1906_v20 = vstv %s56_s21  ;;  %s1922_s25 = sld [smem:[#allocation2 + $0x1b]] }
  0x19   : > { %v1903_v17 = vsub.f32 3.2, %v48_v13  ;;  %v65_v18 = vsub.f32 %v1871_v4, %v64_v15  ;;  %v87_v19 = vstv %s1579_s18  ;;  %v62_v22 = vsub.f32 %v1901_v16, %v61_v14  ;;  %s1926_s26 = sld [smem:[#allocation2 + $0x20]] }
  0x1a   : > { %v90_v21 = vstv %s1580_s19  ;;  %v88_v25 = vsub.f32 %v1901_v16, %v87_v19  ;;  %s1932_s27 = sld [smem:[#allocation2 + $0x21]] }
  0x1b   : > { %v63_v23 = vsub.f32 %v1903_v17, %v61_v14  ;;  %v68_v24 = vmul.f32 %v65_v18, %v65_v18  ;;  %v89_v26 = vsub.f32 %v1903_v17, %v87_v19  ;;  %v91_v27 = vsub.f32 %v1871_v4, %v90_v21  ;;  %s1935_s28 = sld [smem:[#allocation2 + $0x26]] }
  0x1c   : > { %v111_v28 = vstv %s1581_s20  ;;  %v114_v29 = vstv %s1582_s22  ;;  %v66_v30 = vmul.f32 %v62_v22, %v62_v22  ;;  %v92_v32 = vmul.f32 %v88_v25, %v88_v25  ;;  %s1937_s29 = sld [smem:[#allocation2 + $0x27]] }
  0x1d   : > { %v67_v31 = vmul.f32 %v63_v23, %v63_v23  ;;  %v112_v33 = vsub.f32 %v1901_v16, %v111_v28  ;;  %v93_v34 = vmul.f32 %v89_v26, %v89_v26  ;;  %v94_v35 = vmul.f32 %v91_v27, %v91_v27  ;;  %s1947_s30 = sld [smem:[#allocation2 + $0x2c]] }
  0x1e   : > { %v113_v36 = vsub.f32 %v1903_v17, %v111_v28  ;;  %v115_v37 = vsub.f32 %v1871_v4, %v114_v29  ;;  %v69_v38 = vadd.f32 %v68_v24, %v66_v30  ;;  %v135_v49 = vstv %s1913_s24  ;;  %s1952_s2 = sld [smem:[#allocation2 + $0x2d]] }
  0x1f   : > { %v70_v39 = vadd.f32 %v68_v24, %v67_v31  ;;  %v95_v41 = vadd.f32 %v94_v35, %v92_v32  ;;  %v96_v42 = vadd.f32 %v94_v35, %v93_v34  ;;  %v116_v43 = vmul.f32 %v112_v33, %v112_v33  ;;  %s1978_s3 = sld [smem:[#allocation2 + $0x32]] }
  0x20   : > { %vm75_vm0 = vcmp.le.f32.partialorder %v69_v38, %v1906_v20  ;;  %v117_v44 = vmul.f32 %v113_v36, %v113_v36  ;;  %v118_v45 = vmul.f32 %v115_v37, %v115_v37  ;;  %vm72_vm2 = vcmp.le.f32.partialorder %v69_v38, %v1920_v40  ;;  %s1989_s4 = sld [smem:[#allocation2 + $0x33]] }
  0x21   : > { %vm76_vm1 = vcmp.le.f32.partialorder %v70_v39, %v1906_v20  ;;  %vm73_vm3 = vcmp.le.f32.partialorder %v70_v39, %v1920_v40  ;;  %v77_v47 = vsel %vm75_vm0, 2.0, %v1848_v46  ;;  %vm99_vm4 = vcmp.le.f32.partialorder %v95_v41, %v1906_v20  ;;  %s1993_s5 = sld [smem:[#allocation2 + $0xa]] }
  0x22   : > { %v78_v48 = vsel %vm76_vm1, 2.0, %v1848_v46  ;;  %v79_v50 = vsel %vm72_vm2, 4.0, %v77_v47  ;;  %v119_v52 = vadd.f32 %v118_v45, %v116_v43  ;;  %vm100_vm5 = vcmp.le.f32.partialorder %v96_v42, %v1906_v20  ;;  %s1999_s6 = sld [smem:[#allocation2 + $0xb]] }
  0x23   : > { %v80_v51 = vsel %vm73_vm3, 4.0, %v78_v48  ;;  %v120_v53 = vadd.f32 %v118_v45, %v117_v44  ;;  %v136_v54 = vsub.f32 %v1901_v16, %v135_v49  ;;  %v137_v55 = vsub.f32 %v1903_v17, %v135_v49  ;;  %s2005_s7 = sld [smem:[#allocation2 + $0x10]] }
  0x24   : > { %vm97_vm6 = vcmp.le.f32.partialorder %v95_v41, %v1920_v40  ;;  %vm98_vm7 = vcmp.le.f32.partialorder %v96_v42, %v1920_v40  ;;  %v81_v56 = vmax.f32 %v79_v50, 0.0  ;;  %v82_v57 = vmax.f32 %v80_v51, 0.0  ;;  %s2011_s8 = sld [smem:[#allocation2 + $0x11]] }
  0x25   : > { %v101_v58 = vsel %vm99_vm4, 1.8, %v1848_v46  ;;  %v138_v59 = vstv %s1922_s25  ;;  %v102_v60 = vsel %vm100_vm5, 1.8, %v1848_v46  ;;  %vm123_vm8 = vcmp.le.f32.partialorder %v119_v52, %v1906_v20  ;;  %s2018_s0 = sld [smem:[#allocation2 + $0x6]] }
  0x26   : > { %v139_v61 = vsub.f32 %v1871_v4, %v138_v59  ;;  %v140_v62 = vmul.f32 %v136_v54, %v136_v54  ;;  %vm124_vm9 = vcmp.le.f32.partialorder %v120_v53, %v1906_v20  ;;  %v141_v63 = vmul.f32 %v137_v55, %v137_v55  ;;  %s2024_s14 = sld [smem:[#allocation2 + $0x3]] }
  0x27   : > { %v159_v1 = vstv %s1926_s26  ;;  %v162_v2 = vstv %s1932_s27  ;;  %v103_v10 = vsel %vm97_vm6, 3.6, %v101_v58  ;;  %v104_v11 = vsel %vm98_vm7, 3.6, %v102_v60  ;;  %s2029_s16 = sld [smem:[#allocation2 + $0x16]] }
  0x28   : > { %v142_v3 = vmul.f32 %v139_v61, %v139_v61  ;;  %v160_v7 = vsub.f32 %v1901_v16, %v159_v1  ;;  %v161_v8 = vsub.f32 %v1903_v17, %v159_v1  ;;  %v163_v9 = vsub.f32 %v1871_v4, %v162_v2  ;;  %s2039_s17 = sld [smem:[#allocation2 + $0x17]] }
  0x29   : > { %v183_v12 = vstv %s1935_s28  ;;  %v186_v13 = vstv %s1937_s29  ;;  %vm121_vm10 = vcmp.le.f32.partialorder %v119_v52, %v1920_v40  ;;  %vm122_vm11 = vcmp.le.f32.partialorder %v120_v53, %v1920_v40  ;;  %s2047_s18 = sld [smem:[#allocation2 + $0x1c]] }
  0x2a   : > { %v125_v14 = vsel %vm123_vm8, 1.62, %v1848_v46  ;;  %v143_v15 = vadd.f32 %v142_v3, %v140_v62  ;;  %v126_v18 = vsel %vm124_vm9, 1.62, %v1848_v46  ;;  %v144_v19 = vadd.f32 %v142_v3, %v141_v63  ;;  %s2053_s20 = sld [smem:[#allocation2 + $0x1d]] }
  0x2b   : > { %v164_v21 = vmul.f32 %v160_v7, %v160_v7  ;;  %v165_v22 = vmul.f32 %v161_v8, %v161_v8  ;;  %v166_v23 = vmul.f32 %v163_v9, %v163_v9  ;;  %v184_v24 = vsub.f32 %v1901_v16, %v183_v12  ;;  %s256_s19 = smul.f32 %s2018_s0, %s2018_s0  ;;  %s2061_s22 = sld [smem:[#allocation2 + $0x22]] }
  0x2c   : > { %vm147_vm12 = vcmp.le.f32.partialorder %v143_v15, %v1906_v20  ;;  %v187_v25 = vsub.f32 %v1871_v4, %v186_v13  ;;  %v105_v26 = vmax.f32 %v81_v56, %v103_v10  ;;  %v185_v27 = vsub.f32 %v1903_v17, %v183_v12  ;;  %s255_s21 = smul.f32 %s2024_s14, %s2024_s14  ;;  %s2067_s23 = sld [smem:[#allocation2 + $0x23]] }
  0x2d   : > { %v106_v28 = vmax.f32 %v82_v57, %v104_v11  ;;  %v127_v29 = vsel %vm121_vm10, 3.24, %v125_v14  ;;  %v207_v30 = vstv %s1947_s30  ;;  %v210_v31 = vstv %s1952_s2  ;;  %s2085_s24 = sld [smem:[#allocation2 + $0x28]] }
  0x2e   : > { %v128_v32 = vsel %vm122_vm11, 3.24, %v126_v18  ;;  %vm145_vm13 = vcmp.le.f32.partialorder %v143_v15, %v1920_v40  ;;  %vm148_vm14 = vcmp.le.f32.partialorder %v144_v19, %v1906_v20  ;;  %v149_v33 = vsel %vm147_vm12, 1.46, %v1848_v46  ;;  %s2094_s25 = sld [smem:[#allocation2 + $0x29]] }
  0x2f   : > { %v167_v34 = vadd.f32 %v166_v23, %v164_v21  ;;  %v168_v35 = vadd.f32 %v166_v23, %v165_v22  ;;  %v188_v36 = vmul.f32 %v184_v24, %v184_v24  ;;  %v190_v37 = vmul.f32 %v187_v25, %v187_v25  ;;  %s2107_s26 = sld [smem:[#allocation2 + $0x2e]] }
  0x30   : > { %v189_v38 = vmul.f32 %v185_v27, %v185_v27  ;;  %v208_v39 = vsub.f32 %v1901_v16, %v207_v30  ;;  %v211_v41 = vsub.f32 %v1871_v4, %v210_v31  ;;  %v129_v42 = vmax.f32 %v105_v26, %v127_v29  ;;  %s2112_s27 = sld [smem:[#allocation2 + $0x2f]] }
  0x31   : > { %v130_v43 = vmax.f32 %v106_v28, %v128_v32  ;;  %vm146_vm15 = vcmp.le.f32.partialorder %v144_v19, %v1920_v40  ;;  %v150_v44 = vsel %vm148_vm14, 1.46, %v1848_v46  ;;  %v151_v45 = vsel %vm145_vm13, 2.92, %v149_v33  ;;  %s2121_s28 = sld [smem:[#allocation2 + $0x34]] }
  0x32   : > { %vm171_vm0 = vcmp.le.f32.partialorder %v167_v34, %v1906_v20  ;;  %vm172_vm1 = vcmp.le.f32.partialorder %v168_v35, %v1906_v20  ;;  %v191_v47 = vadd.f32 %v190_v37, %v188_v36  ;;  %v209_v48 = vsub.f32 %v1903_v17, %v207_v30  ;;  %s2124_s29 = sld [smem:[#allocation2 + $0x35]] }
  0x33   : > { %v192_v49 = vadd.f32 %v190_v37, %v189_v38  ;;  %v212_v50 = vmul.f32 %v208_v39, %v208_v39  ;;  %v214_v51 = vmul.f32 %v211_v41, %v211_v41  ;;  %v231_v52 = vstv %s1978_s3  ;;  %s2140_s30 = sld [smem:[#allocation2 + $0xc]] }
  0x34   : > { %v152_v53 = vsel %vm146_vm15, 2.92, %v150_v44  ;;  %vm169_vm2 = vcmp.le.f32.partialorder %v167_v34, %v1920_v40  ;;  %vm170_vm3 = vcmp.le.f32.partialorder %v168_v35, %v1920_v40  ;;  %v173_v54 = vsel %vm171_vm0, 1.32, %v1848_v46  ;;  %s2146_s2 = sld [smem:[#allocation2 + $0xd]] }
  0x35   : > { %v174_v55 = vsel %vm172_vm1, 1.32, %v1848_v46  ;;  %v153_v56 = vmax.f32 %v129_v42, %v151_v45  ;;  %v213_v57 = vmul.f32 %v209_v48, %v209_v48  ;;  %v232_v58 = vsub.f32 %v1901_v16, %v231_v52  ;;  %s2161_s3 = sld [smem:[#allocation2 + $0x12]] }
  0x36   : > { %v234_v59 = vstv %s1989_s4  ;;  %v154_v60 = vmax.f32 %v130_v43, %v152_v53  ;;  %vm195_vm4 = vcmp.le.f32.partialorder %v191_v47, %v1906_v20  ;;  %vm196_vm5 = vcmp.le.f32.partialorder %v192_v49, %v1906_v20  ;;  %s2166_s4 = sld [smem:[#allocation2 + $0x13]] }
  0x37   : > { %v215_v61 = vadd.f32 %v214_v51, %v212_v50  ;;  %v175_v62 = vsel %vm169_vm2, 2.64, %v173_v54  ;;  %v176_v63 = vsel %vm170_vm3, 2.64, %v174_v55  ;;  %v235_v1 = vsub.f32 %v1871_v4, %v234_v59 }
  0x38   : > { %v261_v2 = vstv %s1993_s5  ;;  %vm193_vm6 = vcmp.le.f32.partialorder %v191_v47, %v1920_v40  ;;  %vm194_vm7 = vcmp.le.f32.partialorder %v192_v49, %v1920_v40  ;;  %v233_v3 = vsub.f32 %v1903_v17, %v231_v52  ;;  %s2171_s5 = sld [smem:[#allocation2 + $0x7]] }
  0x39   : > { %v264_v7 = vstv %s1999_s6  ;;  %v197_v8 = vsel %vm195_vm4, 1.18, %v1848_v46  ;;  %v198_v9 = vsel %vm196_vm5, 1.18, %v1848_v46  ;;  %v216_v10 = vadd.f32 %v214_v51, %v213_v57  ;;  %s2180_s6 = sld [smem:[#allocation2 + $0x4]] }
  0x3a   : > { %v236_v11 = vmul.f32 %v232_v58, %v232_v58  ;;  %vm219_vm8 = vcmp.le.f32.partialorder %v215_v61, %v1906_v20  ;;  %v238_v12 = vmul.f32 %v235_v1, %v235_v1  ;;  %v262_v13 = vsub.f32 %v1901_v16, %v261_v2 }
  0x3b   : > { %v265_v14 = vsub.f32 %v1871_v4, %v264_v7  ;;  %v177_v15 = vmax.f32 %v153_v56, %v175_v62  ;;  %v178_v18 = vmax.f32 %v154_v60, %v176_v63  ;;  %v287_v19 = vstv %s2005_s7  ;;  %s2186_s7 = sld [smem:[#allocation2 + $0x18]] }
  0x3c   : > { %v199_v21 = vsel %vm193_vm6, 2.36, %v197_v8  ;;  %v237_v22 = vmul.f32 %v233_v3, %v233_v3  ;;  %v263_v23 = vsub.f32 %v1903_v17, %v261_v2  ;;  %v290_v24 = vstv %s2011_s8  ;;  %s2190_s8 = sld [smem:[#allocation2 + $0x19]] }
  0x3d   : > { %v200_v25 = vsel %vm194_vm7, 2.36, %v198_v9  ;;  %vm217_vm9 = vcmp.le.f32.partialorder %v215_v61, %v1920_v40  ;;  %vm220_vm10 = vcmp.le.f32.partialorder %v216_v10, %v1906_v20  ;;  %v221_v26 = vsel %vm219_vm8, 1.06, %v1848_v46 }
  0x3e   : > { %v239_v27 = vadd.f32 %v238_v12, %v236_v11  ;;  %v266_v28 = vmul.f32 %v262_v13, %v262_v13  ;;  %v268_v29 = vmul.f32 %v265_v14, %v265_v14  ;;  %v288_v30 = vsub.f32 %v1901_v16, %v287_v19  ;;  %s456_s0 = smul.f32 %s2171_s5, %s2171_s5 }
  0x3f   : > { %v201_v31 = vmax.f32 %v177_v15, %v199_v21  ;;  %vm218_vm11 = vcmp.le.f32.partialorder %v216_v10, %v1920_v40  ;;  %v291_v32 = vsub.f32 %v1871_v4, %v290_v24  ;;  %v222_v33 = vsel %vm220_vm10, 1.06, %v1848_v46  ;;  %s455_s14 = smul.f32 %s2180_s6, %s2180_s6 }
  0x40   : > { %v223_v34 = vsel %vm217_vm9, 2.12, %v221_v26  ;;  %v240_v35 = vadd.f32 %v238_v12, %v237_v22  ;;  %v267_v36 = vmul.f32 %v263_v23, %v263_v23  ;;  %v202_v37 = vmax.f32 %v178_v18, %v200_v25 }
  0x41   : > { %v289_v38 = vsub.f32 %v1903_v17, %v287_v19  ;;  %v311_v39 = vstv %s2029_s16  ;;  %vm243_vm12 = vcmp.le.f32.partialorder %v239_v27, %v1906_v20  ;;  %v269_v41 = vadd.f32 %v268_v29, %v266_v28  ;;  %s2212_s16 = sld [smem:[#allocation2 + $0x1e]] }
  0x42   : > { %v292_v42 = vmul.f32 %v288_v30, %v288_v30  ;;  %v294_v43 = vmul.f32 %v291_v32, %v291_v32  ;;  %v224_v44 = vsel %vm218_vm11, 2.12, %v222_v33  ;;  %v225_v45 = vmax.f32 %v201_v31, %v223_v34 }
  0x43   : > { %v2065_v47 = vstv %s256_s19  ;;  %vm244_vm13 = vcmp.le.f32.partialorder %v240_v35, %v1906_v20  ;;  %v270_v48 = vadd.f32 %v268_v29, %v267_v36  ;;  %v2070_v49 = vstv %s255_s21  ;;  %s2236_s19 = sld [smem:[#allocation2 + $0x25]] }
  0x44   : > { %v314_v50 = vstv %s2039_s17  ;;  %vm241_vm14 = vcmp.le.f32.partialorder %v239_v27, %v1920_v40  ;;  %v245_v51 = vsel %vm243_vm12, 0.96, %v1848_v46  ;;  %v293_v52 = vmul.f32 %v289_v38, %v289_v38  ;;  %s2217_s17 = sld [smem:[#allocation2 + $0x1f]] }
  0x45   : > { %v312_v53 = vsub.f32 %v1901_v16, %v311_v39  ;;  %v226_v54 = vmax.f32 %v202_v37, %v224_v44  ;;  %vm275_vm15 = vcmp.le.f32.partialorder %v269_v41, %v2065_v47  ;;  %v295_v55 = vadd.f32 %v294_v43, %v292_v42  ;;  %s2252_s21 = sld [smem:[#allocation2 + $0x2b]] }
  0x46   : > { %v315_v56 = vsub.f32 %v1871_v4, %v314_v50  ;;  %vm242_vm0 = vcmp.le.f32.partialorder %v240_v35, %v1920_v40  ;;  %v246_v20 = vsel %vm244_vm13, 0.96, %v1848_v46  ;;  %v335_v57 = vstv %s2047_s18  ;;  %s2231_s18 = sld [smem:[#allocation2 + $0x24]] }
  0x47   : > { %v338_v58 = vstv %s2053_s20  ;;  %v247_v59 = vsel %vm241_vm14, 1.92, %v245_v51  ;;  %vm272_vm1 = vcmp.le.f32.partialorder %v269_v41, %v2070_v49  ;;  %vm276_vm2 = vcmp.le.f32.partialorder %v270_v48, %v2065_v47  ;;  %s2248_s20 = sld [smem:[#allocation2 + $0x2a]] }
  0x48   : > { %v313_v60 = vsub.f32 %v1903_v17, %v311_v39  ;;  %v277_v61 = vsel %vm275_vm15, 2.0, %v1848_v46  ;;  %v296_v62 = vadd.f32 %v294_v43, %v293_v52  ;;  %v316_v63 = vmul.f32 %v312_v53, %v312_v53 }
  0x49   : > { %v318_v40 = vmul.f32 %v315_v56, %v315_v56  ;;  %v248_v1 = vsel %vm242_vm0, 1.92, %v246_v20  ;;  %vm299_vm3 = vcmp.le.f32.partialorder %v295_v55, %v2065_v47  ;;  %v336_v2 = vsub.f32 %v1901_v16, %v335_v57 }
  0x4a   : > { %v339_v3 = vsub.f32 %v1871_v4, %v338_v58  ;;  %v249_v7 = vmax.f32 %v225_v45, %v247_v59  ;;  %vm273_vm4 = vcmp.le.f32.partialorder %v270_v48, %v2070_v49  ;;  %v359_v8 = vstv %s2061_s22  ;;  %s2269_s22 = sld [smem:[#allocation2 + $0x30]] }
  0x4b   : > { %v362_v9 = vstv %s2067_s23  ;;  %v278_v10 = vsel %vm276_vm2, 2.0, %v1848_v46  ;;  %v279_v11 = vsel %vm272_vm1, 4.0, %v277_v61  ;;  %v317_v12 = vmul.f32 %v313_v60, %v313_v60  ;;  %s2276_s23 = sld [smem:[#allocation2 + $0x31]] }
  0x4c   : > { %v337_v13 = vsub.f32 %v1903_v17, %v335_v57  ;;  %vm297_vm5 = vcmp.le.f32.partialorder %v295_v55, %v2070_v49  ;;  %vm300_vm6 = vcmp.le.f32.partialorder %v296_v62, %v2065_v47  ;;  %v301_v14 = vsel %vm299_vm3, 1.8, %v1848_v46 }
  0x4d   : > { %v319_v15 = vadd.f32 %v318_v40, %v316_v63  ;;  %v340_v18 = vmul.f32 %v336_v2, %v336_v2  ;;  %v342_v19 = vmul.f32 %v339_v3, %v339_v3  ;;  %v360_v21 = vsub.f32 %v1901_v16, %v359_v8 }
  0x4e   : > { %v363_v22 = vsub.f32 %v1871_v4, %v362_v9  ;;  %v250_v23 = vmax.f32 %v226_v54, %v248_v1  ;;  %v280_v24 = vsel %vm273_vm4, 4.0, %v278_v10  ;;  %v281_v25 = vmax.f32 %v249_v7, %v279_v11 }
  0x4f   : > { %vm298_vm7 = vcmp.le.f32.partialorder %v296_v62, %v2070_v49  ;;  %v302_v26 = vsel %vm300_vm6, 1.8, %v1848_v46  ;;  %v320_v27 = vadd.f32 %v318_v40, %v317_v12  ;;  %v341_v28 = vmul.f32 %v337_v13, %v337_v13 }
  0x50   : > { %v383_v29 = vstv %s2085_s24  ;;  %v303_v30 = vsel %vm297_vm5, 3.6, %v301_v14  ;;  %vm323_vm8 = vcmp.le.f32.partialorder %v319_v15, %v2065_v47  ;;  %v361_v31 = vsub.f32 %v1903_v17, %v359_v8  ;;  %s2288_s24 = sld [smem:[#allocation2 + $0x36]] }
  0x51   : > { %v343_v32 = vadd.f32 %v342_v19, %v340_v18  ;;  %v364_v33 = vmul.f32 %v360_v21, %v360_v21  ;;  %v366_v34 = vmul.f32 %v363_v22, %v363_v22  ;;  %v384_v35 = vsub.f32 %v1901_v16, %v383_v29 }
  0x52   : > { %v282_v36 = vmax.f32 %v250_v23, %v280_v24  ;;  %v304_v37 = vsel %vm298_vm7, 3.6, %v302_v26  ;;  %v386_v38 = vstv %s2094_s25  ;;  %v305_v39 = vmax.f32 %v281_v25, %v303_v30  ;;  %s2292_s25 = sld [smem:[#allocation2 + $0x37]] }
  0x53   : > { %vm321_vm9 = vcmp.le.f32.partialorder %v319_v15, %v2070_v49  ;;  %vm324_vm10 = vcmp.le.f32.partialorder %v320_v27, %v2065_v47  ;;  %v344_v41 = vadd.f32 %v342_v19, %v341_v28  ;;  %v325_v42 = vsel %vm323_vm8, 1.62, %v1848_v46 }
  0x54   : > { %v365_v43 = vmul.f32 %v361_v31, %v361_v31  ;;  %v385_v44 = vsub.f32 %v1903_v17, %v383_v29  ;;  %v387_v45 = vsub.f32 %v1871_v4, %v386_v38  ;;  %vm347_vm11 = vcmp.le.f32.partialorder %v343_v32, %v2065_v47 }
  0x55   : > { %v367_v48 = vadd.f32 %v366_v34, %v364_v33  ;;  %v388_v50 = vmul.f32 %v384_v35, %v384_v35  ;;  %v407_v51 = vstv %s2107_s26  ;;  %vm322_vm12 = vcmp.le.f32.partialorder %v320_v27, %v2070_v49  ;;  %s679_s26 = scalar_lea.vmem [#allocation5], %s1574_s15 }
  0x56   : > { %v326_v52 = vsel %vm324_vm10, 1.62, %v1848_v46  ;;  %v390_v53 = vmul.f32 %v387_v45, %v387_v45  ;;  %v410_v54 = vstv %s2112_s27  ;;  %v306_v55 = vmax.f32 %v282_v36, %v304_v37 }
  0x57   : > { %v327_v56 = vsel %vm321_vm9, 3.24, %v325_v42  ;;  %vm345_vm13 = vcmp.le.f32.partialorder %v343_v32, %v2070_v49  ;;  %vm348_vm14 = vcmp.le.f32.partialorder %v344_v41, %v2065_v47  ;;  %v349_v20 = vsel %vm347_vm11, 1.46, %v1848_v46 }
  0x58   : > { %v368_v57 = vadd.f32 %v366_v34, %v365_v43  ;;  %v389_v58 = vmul.f32 %v385_v44, %v385_v44  ;;  %v408_v59 = vsub.f32 %v1901_v16, %v407_v51  ;;  %v328_v60 = vsel %vm322_vm12, 3.24, %v326_v52 }
  0x59   : > { %vm371_vm15 = vcmp.le.f32.partialorder %v367_v48, %v2065_v47  ;;  %v391_v61 = vadd.f32 %v390_v53, %v388_v50  ;;  %v411_v62 = vsub.f32 %v1871_v4, %v410_v54  ;;  %v329_v63 = vmax.f32 %v305_v39, %v327_v56 }
  0x5a   : > { %vm346_vm0 = vcmp.le.f32.partialorder %v344_v41, %v2070_v49  ;;  %v431_v40 = vstv %s2121_s28  ;;  %v434_v1 = vstv %s2124_s29  ;;  %v350_v2 = vsel %vm348_vm14, 1.46, %v1848_v46 }
  0x5b   : > { %v351_v3 = vsel %vm345_vm13, 2.92, %v349_v20  ;;  %vm369_vm1 = vcmp.le.f32.partialorder %v367_v48, %v2070_v49  ;;  %v409_v7 = vsub.f32 %v1903_v17, %v407_v51  ;;  %vm372_vm2 = vcmp.le.f32.partialorder %v368_v57, %v2065_v47 }
  0x5c   : > { %v373_v8 = vsel %vm371_vm15, 1.32, %v1848_v46  ;;  %v392_v9 = vadd.f32 %v390_v53, %v389_v58  ;;  %v412_v10 = vmul.f32 %v408_v59, %v408_v59  ;;  %vm395_vm3 = vcmp.le.f32.partialorder %v391_v61, %v2065_v47 }
  0x5d   : > { %v414_v11 = vmul.f32 %v411_v62, %v411_v62  ;;  %v432_v12 = vsub.f32 %v1901_v16, %v431_v40  ;;  %v435_v13 = vsub.f32 %v1871_v4, %v434_v1  ;;  %v330_v14 = vmax.f32 %v306_v55, %v328_v60 }
  0x5e   : > { %v352_v15 = vsel %vm346_vm0, 2.92, %v350_v2  ;;  %v353_v18 = vmax.f32 %v329_v63, %v351_v3  ;;  %vm370_vm4 = vcmp.le.f32.partialorder %v368_v57, %v2070_v49  ;;  %v374_v19 = vsel %vm372_vm2, 1.32, %v1848_v46 }
  0x5f   : > { %v375_v21 = vsel %vm369_vm1, 2.64, %v373_v8  ;;  %v413_v22 = vmul.f32 %v409_v7, %v409_v7  ;;  %v461_v23 = vstv %s2140_s30  ;;  %vm393_vm5 = vcmp.le.f32.partialorder %v391_v61, %v2070_v49 }
  0x60   : > { %vm396_vm6 = vcmp.le.f32.partialorder %v392_v9, %v2065_v47  ;;  %v397_v24 = vsel %vm395_vm3, 1.18, %v1848_v46  ;;  %v433_v25 = vsub.f32 %v1903_v17, %v431_v40  ;;  %v415_v26 = vadd.f32 %v414_v11, %v412_v10 }
  0x61   : > { %v436_v27 = vmul.f32 %v432_v12, %v432_v12  ;;  %v438_v28 = vmul.f32 %v435_v13, %v435_v13  ;;  %v464_v29 = vstv %s2146_s2  ;;  %v354_v30 = vmax.f32 %v330_v14, %v352_v15  ;;  %s2367_s2 = sld [smem:[#allocation2 + $0x80]] (%p32_p0) }
  0x62   : > { %v376_v31 = vsel %vm370_vm4, 2.64, %v374_v19  ;;  %v462_v32 = vsub.f32 %v1901_v16, %v461_v23  ;;  %v377_v33 = vmax.f32 %v353_v18, %v375_v21  ;;  %vm394_vm7 = vcmp.le.f32.partialorder %v392_v9, %v2070_v49 }
  0x63   : > { %v416_v34 = vadd.f32 %v414_v11, %v413_v22  ;;  %v465_v35 = vsub.f32 %v1871_v4, %v464_v29  ;;  %v398_v36 = vsel %vm396_vm6, 1.18, %v1848_v46  ;;  %v399_v37 = vsel %vm393_vm5, 2.36, %v397_v24 }
  0x64   : > { %v437_v38 = vmul.f32 %v433_v25, %v433_v25  ;;  %v463_v39 = vsub.f32 %v1903_v17, %v461_v23  ;;  %vm419_vm8 = vcmp.le.f32.partialorder %v415_v26, %v2065_v47  ;;  %v439_v41 = vadd.f32 %v438_v28, %v436_v27 }
  0x65   : > { %v466_v42 = vmul.f32 %v462_v32, %v462_v32  ;;  %v468_v43 = vmul.f32 %v465_v35, %v465_v35  ;;  %v487_v44 = vstv %s2161_s3  ;;  %v490_v45 = vstv %s2166_s4  ;;  %s2370_s3 = sld [smem:[#allocation2 + $0x81]] (%p32_p0) }
  0x66   : > { %v378_v48 = vmax.f32 %v354_v30, %v376_v31  ;;  %v400_v50 = vsel %vm394_vm7, 2.36, %v398_v36  ;;  %v401_v51 = vmax.f32 %v377_v33, %v399_v37  ;;  %vm420_vm9 = vcmp.le.f32.partialorder %v416_v34, %v2065_v47 }
  0x67   : > { %vm417_vm10 = vcmp.le.f32.partialorder %v415_v26, %v2070_v49  ;;  %v421_v52 = vsel %vm419_vm8, 1.06, %v1848_v46  ;;  %v440_v53 = vadd.f32 %v438_v28, %v437_v38  ;;  %v467_v54 = vmul.f32 %v463_v39, %v463_v39 }
  0x68   : > { %vm418_vm11 = vcmp.le.f32.partialorder %v416_v34, %v2070_v49  ;;  %vm443_vm12 = vcmp.le.f32.partialorder %v439_v41, %v2065_v47  ;;  %v488_v55 = vsub.f32 %v1901_v16, %v487_v44  ;;  %v491_v56 = vsub.f32 %v1871_v4, %v490_v45 }
  0x69   : > { %v422_v20 = vsel %vm420_vm9, 1.06, %v1848_v46  ;;  %v469_v57 = vadd.f32 %v468_v43, %v466_v42  ;;  %v489_v58 = vsub.f32 %v1903_v17, %v487_v44  ;;  %v511_v59 = vstv %s2186_s7 }
  0x6a   : > { %v423_v60 = vsel %vm417_vm10, 2.12, %v421_v52  ;;  %vm441_vm13 = vcmp.le.f32.partialorder %v439_v41, %v2070_v49  ;;  %v2220_v61 = vstv %s456_s0  ;;  %v514_v62 = vstv %s2190_s8 }
  0x6b   : > { %vm444_vm14 = vcmp.le.f32.partialorder %v440_v53, %v2065_v47  ;;  %v445_v63 = vsel %vm443_vm12, 0.96, %v1848_v46  ;;  %v470_v40 = vadd.f32 %v468_v43, %v467_v54  ;;  %v2225_v1 = vstv %s455_s14 }
  0x6c   : > { %v492_v2 = vmul.f32 %v488_v55, %v488_v55  ;;  %v494_v3 = vmul.f32 %v491_v56, %v491_v56  ;;  %v512_v7 = vsub.f32 %v1901_v16, %v511_v59  ;;  %v513_v8 = vsub.f32 %v1903_v17, %v511_v59 }
  0x6d   : > { %vm475_vm15 = vcmp.le.f32.partialorder %v469_v57, %v2220_v61  ;;  %v493_v9 = vmul.f32 %v489_v58, %v489_v58  ;;  %v515_v10 = vsub.f32 %v1871_v4, %v514_v62  ;;  %v402_v11 = vmax.f32 %v378_v48, %v400_v50 }
  0x6e   : > { %v424_v12 = vsel %vm418_vm11, 2.12, %v422_v20  ;;  %v425_v13 = vmax.f32 %v401_v51, %v423_v60  ;;  %vm442_vm0 = vcmp.le.f32.partialorder %v440_v53, %v2070_v49  ;;  %v446_v14 = vsel %vm444_vm14, 0.96, %v1848_v46 }
  0x6f   : > { %v447_v15 = vsel %vm441_vm13, 1.92, %v445_v63  ;;  %vm472_vm1 = vcmp.le.f32.partialorder %v469_v57, %v2225_v1  ;;  %vm476_vm2 = vcmp.le.f32.partialorder %v470_v40, %v2220_v61  ;;  %v477_v18 = vsel %vm475_vm15, 2.0, %v1848_v46 }
  0x70   : > { %v495_v19 = vadd.f32 %v494_v3, %v492_v2  ;;  %v516_v21 = vmul.f32 %v512_v7, %v512_v7  ;;  %v517_v22 = vmul.f32 %v513_v8, %v513_v8  ;;  %v496_v23 = vadd.f32 %v494_v3, %v493_v9 }
  0x71   : > { %v518_v24 = vmul.f32 %v515_v10, %v515_v10  ;;  %v535_v25 = vstv %s2212_s16  ;;  %v538_v26 = vstv %s2217_s17  ;;  %v426_v47 = vmax.f32 %v402_v11, %v424_v12 }
  0x72   : > { %v448_v27 = vsel %vm442_vm0, 1.92, %v446_v14  ;;  %v656_v28 = vstv %s1868_s10  ;;  %v449_v29 = vmax.f32 %v425_v13, %v447_v15  ;;  %vm473_vm3 = vcmp.le.f32.partialorder %v470_v40, %v2225_v1  ;;  %s2375_s10 = smov (%p32_p0), -inf  }
  0x73   : > { %v478_v30 = vsel %vm476_vm2, 2.0, %v1848_v46  ;;  %v479_v31 = vsel %vm472_vm1, 4.0, %v477_v18  ;;  %vm499_vm4 = vcmp.le.f32.partialorder %v495_v19, %v2220_v61  ;;  %v536_v49 = vsub.f32 %v1901_v16, %v535_v25 }
  0x74   : > { %v537_v32 = vsub.f32 %v1903_v17, %v535_v25  ;;  %v539_v33 = vsub.f32 %v1871_v4, %v538_v26  ;;  %vm500_vm5 = vcmp.le.f32.partialorder %v496_v23, %v2220_v61  ;;  %v519_v34 = vadd.f32 %v518_v24, %v516_v21 }
  0x75   : > { %v520_v35 = vadd.f32 %v518_v24, %v517_v22  ;;  %v657_v36 = vsub.f32 %v1871_v4, %v656_v28  ;;  %v450_v37 = vmax.f32 %v426_v47, %v448_v27  ;;  %v480_v38 = vsel %vm473_vm3, 4.0, %v478_v30 }
  0x76   : > { %v559_v39 = vstv %s2231_s18  ;;  %v562_v41 = vstv %s2236_s19  ;;  %v481_v42 = vmax.f32 %v449_v29, %v479_v31  ;;  %vm497_vm6 = vcmp.le.f32.partialorder %v495_v19, %v2225_v1 }
  0x77   : > { %vm498_vm7 = vcmp.le.f32.partialorder %v496_v23, %v2225_v1  ;;  %v501_v43 = vsel %vm499_vm4, 1.8, %v1848_v46  ;;  %v502_v44 = vsel %vm500_vm5, 1.8, %v1848_v46  ;;  %v540_v45 = vmul.f32 %v536_v49, %v536_v49 }
  0x78   : > { %v541_v48 = vmul.f32 %v537_v32, %v537_v32  ;;  %v542_v50 = vmul.f32 %v539_v33, %v539_v33  ;;  %vm523_vm8 = vcmp.le.f32.partialorder %v519_v34, %v2220_v61  ;;  %vm524_vm9 = vcmp.le.f32.partialorder %v520_v35, %v2220_v61 }
  0x79   : > { %v560_v51 = vsub.f32 %v1901_v16, %v559_v39  ;;  %v563_v52 = vsub.f32 %v1871_v4, %v562_v41  ;;  %v482_v53 = vmax.f32 %v450_v37, %v480_v38  ;;  %v503_v54 = vsel %vm497_vm6, 3.6, %v501_v43 }
  0x7a   : > { %v583_v55 = vstv %s2248_s20  ;;  %v586_v56 = vstv %s2252_s21  ;;  %v504_v20 = vsel %vm498_vm7, 3.6, %v502_v44  ;;  %vm521_vm10 = vcmp.le.f32.partialorder %v519_v34, %v2225_v1 }
  0x7b   : > { %vm522_vm11 = vcmp.le.f32.partialorder %v520_v35, %v2225_v1  ;;  %v561_v57 = vsub.f32 %v1903_v17, %v559_v39  ;;  %v525_v58 = vsel %vm523_vm8, 1.62, %v1848_v46  ;;  %v526_v59 = vsel %vm524_vm9, 1.62, %v1848_v46 }
  0x7c   : > { %v543_v60 = vadd.f32 %v542_v50, %v540_v45  ;;  %v544_v62 = vadd.f32 %v542_v50, %v541_v48  ;;  %v564_v63 = vmul.f32 %v560_v51, %v560_v51  ;;  %v566_v40 = vmul.f32 %v563_v52, %v563_v52 }
  0x7d   : > { %v584_v2 = vsub.f32 %v1901_v16, %v583_v55  ;;  %v587_v3 = vsub.f32 %v1871_v4, %v586_v56  ;;  %v505_v7 = vmax.f32 %v481_v42, %v503_v54  ;;  %v607_v8 = vstv %s2269_s22 }
  0x7e   : > { %v651_v9 = vstv %s1866_s9  ;;  %v658_v10 = vmul.f32 %v657_v36, %v657_v36  ;;  %v506_v11 = vmax.f32 %v482_v53, %v504_v20  ;;  %v527_v12 = vsel %vm521_vm10, 3.24, %v525_v58 }
  0x7f   : > { %v565_v13 = vmul.f32 %v561_v57, %v561_v57  ;;  %v610_v14 = vstv %s2276_s23  ;;  %v528_v15 = vsel %vm522_vm11, 3.24, %v526_v59  ;;  %vm547_vm12 = vcmp.le.f32.partialorder %v543_v60, %v2220_v61 }
  0x80   : > { %vm548_vm13 = vcmp.le.f32.partialorder %v544_v62, %v2220_v61  ;;  %v585_v18 = vsub.f32 %v1903_v17, %v583_v55  ;;  %v567_v19 = vadd.f32 %v566_v40, %v564_v63  ;;  %v588_v21 = vmul.f32 %v584_v2, %v584_v2 }
  0x81   : > { %v590_v22 = vmul.f32 %v587_v3, %v587_v3  ;;  %v608_v23 = vsub.f32 %v1901_v16, %v607_v8  ;;  %v529_v24 = vmax.f32 %v505_v7, %v527_v12  ;;  %vm545_vm14 = vcmp.le.f32.partialorder %v543_v60, %v2225_v1 }
  0x82   : > { %vm546_vm15 = vcmp.le.f32.partialorder %v544_v62, %v2225_v1  ;;  %v611_v25 = vsub.f32 %v1871_v4, %v610_v14  ;;  %v549_v26 = vsel %vm547_vm12, 1.46, %v1848_v46  ;;  %v550_v47 = vsel %vm548_vm13, 1.46, %v1848_v46 }
  0x83   : > { %v568_v27 = vadd.f32 %v566_v40, %v565_v13  ;;  %v631_v28 = vstv %s2288_s24  ;;  %v589_v29 = vmul.f32 %v585_v18, %v585_v18  ;;  %v609_v30 = vsub.f32 %v1903_v17, %v607_v8 }
  0x84   : > { %v634_v31 = vstv %s2292_s25  ;;  %v652_v49 = vsub.f32 %v1901_v16, %v651_v9  ;;  %v530_v32 = vmax.f32 %v506_v11, %v528_v15  ;;  %vm571_vm0 = vcmp.le.f32.partialorder %v567_v19, %v2220_v61 }
  0x85   : > { %v591_v33 = vadd.f32 %v590_v22, %v588_v21  ;;  %v612_v34 = vmul.f32 %v608_v23, %v608_v23  ;;  %v614_v35 = vmul.f32 %v611_v25, %v611_v25  ;;  %v632_v36 = vsub.f32 %v1901_v16, %v631_v28 }
  0x86   : > { %v635_v37 = vsub.f32 %v1871_v4, %v634_v31  ;;  %v653_v38 = vsub.f32 %v1903_v17, %v651_v9  ;;  %v551_v39 = vsel %vm545_vm14, 2.92, %v549_v26  ;;  %v552_v41 = vsel %vm546_vm15, 2.92, %v550_v47 }
  0x87   : > { %vm572_vm1 = vcmp.le.f32.partialorder %v568_v27, %v2220_v61  ;;  %v654_v42 = vmul.f32 %v652_v49, %v652_v49  ;;  %v592_v43 = vadd.f32 %v590_v22, %v589_v29  ;;  %v613_v44 = vmul.f32 %v609_v30, %v609_v30 }
  0x88   : > { %v633_v45 = vsub.f32 %v1903_v17, %v631_v28  ;;  %v655_v48 = vmul.f32 %v653_v38, %v653_v38  ;;  %vm569_vm2 = vcmp.le.f32.partialorder %v567_v19, %v2225_v1  ;;  %v573_v16 = vsel %vm571_vm0, 1.32, %v1848_v46 }
  0x89   : > { %vm595_vm3 = vcmp.le.f32.partialorder %v591_v33, %v2220_v61  ;;  %v659_v50 = vadd.f32 %v658_v10, %v654_v42  ;;  %v615_v51 = vadd.f32 %v614_v35, %v612_v34  ;;  %v636_v52 = vmul.f32 %v632_v36, %v632_v36 }
  0x8a   : > { %v638_v53 = vmul.f32 %v635_v37, %v635_v37  ;;  %v660_v54 = vadd.f32 %v658_v10, %v655_v48  ;;  %v553_v55 = vmax.f32 %v529_v24, %v551_v39  ;;  %vm570_vm4 = vcmp.le.f32.partialorder %v568_v27, %v2225_v1 }
  0x8b   : > { %v574_v17 = vsel %vm572_vm1, 1.32, %v1848_v46  ;;  %1755 = vrsqrt.f32 %v659_v50  ;;  %v575_v56 = vsel %vm569_vm2, 2.64, %v573_v16  ;;  %vm596_vm5 = vcmp.le.f32.partialorder %v592_v43, %v2220_v61 }
  0x8c   : > { %v616_v20 = vadd.f32 %v614_v35, %v613_v44  ;;  %v637_v57 = vmul.f32 %v633_v45, %v633_v45  ;;  %v554_v58 = vmax.f32 %v530_v32, %v552_v41  ;;  %vm593_vm6 = vcmp.le.f32.partialorder %v591_v33, %v2225_v1 }
  0x8d   : > { %v597_v59 = vsel %vm595_vm3, 1.18, %v1848_v46  ;;  %1757 = vrsqrt.f32 %v660_v54  ;;  %v576_v60 = vsel %vm570_vm4, 2.64, %v574_v17  ;;  %vm619_vm7 = vcmp.le.f32.partialorder %v615_v51, %v2220_v61 }
  0x8e   : > { %v639_v62 = vadd.f32 %v638_v53, %v636_v52  ;;  %v577_v63 = vmax.f32 %v553_v55, %v575_v56  ;;  %vm594_vm8 = vcmp.le.f32.partialorder %v592_v43, %v2225_v1  ;;  %v598_v40 = vsel %vm596_vm5, 1.18, %v1848_v46 }
  0x8f   : > { %v599_v2 = vsel %vm593_vm6, 2.36, %v597_v59  ;;  %vm620_vm9 = vcmp.le.f32.partialorder %v616_v20, %v2220_v61  ;;  %v640_v3 = vadd.f32 %v638_v53, %v637_v57  ;;  %v578_v7 = vmax.f32 %v554_v58, %v576_v60 }
  0x90   : > { %vm617_vm10 = vcmp.le.f32.partialorder %v615_v51, %v2225_v1  ;;  %v621_v8 = vsel %vm619_vm7, 1.06, %v1848_v46  ;;  %v600_v9 = vsel %vm594_vm8, 2.36, %v598_v40  ;;  %vm643_vm11 = vcmp.le.f32.partialorder %v639_v62, %v2220_v61 }
  0x91   : > { %v601_v10 = vmax.f32 %v577_v63, %v599_v2  ;;  %vm618_vm12 = vcmp.le.f32.partialorder %v616_v20, %v2225_v1  ;;  %v622_v11 = vsel %vm620_vm9, 1.06, %v1848_v46  ;;  %v623_v12 = vsel %vm617_vm10, 2.12, %v621_v8 }
  0x92   : > { %vm644_vm13 = vcmp.le.f32.partialorder %v640_v3, %v2220_v61  ;;  %v602_v13 = vmax.f32 %v578_v7, %v600_v9  ;;  %vm641_vm14 = vcmp.le.f32.partialorder %v639_v62, %v2225_v1  ;;  %v645_v14 = vsel %vm643_vm11, 0.96, %v1848_v46 }
  0x93   : > { %v624_v15 = vsel %vm618_vm12, 2.12, %v622_v11  ;;  %v625_v18 = vmax.f32 %v601_v10, %v623_v12  ;;  %vm642_vm15 = vcmp.le.f32.partialorder %v640_v3, %v2225_v1  ;;  %v646_v19 = vsel %vm644_vm13, 0.96, %v1848_v46 }
  0x94   : > { %v647_v22 = vsel %vm641_vm14, 1.92, %v645_v14  ;;  %vm663_vm0 = vcmp.eq.f32.partialorder %v659_v50, inf  ;;  %v666_v23 = vand.u32 2147483648, %v659_v50  ;;  %v626_v24 = vmax.f32 %v602_v13, %v624_v15 }
  0x95   : > { %vm665_vm1 = vcmp.eq.f32.partialorder %v659_v50, 0.0  ;;  %v648_v61 = vsel %vm642_vm15, 1.92, %v646_v19  ;;  %vm670_vm2 = vcmp.eq.f32.partialorder %v660_v54, inf  ;;  %v673_v47 = vand.u32 2147483648, %v660_v54 }
  0x96   : > { %v649_v27 = vmax.f32 %v625_v18, %v647_v22  ;;  %vm672_vm3 = vcmp.eq.f32.partialorder %v660_v54, 0.0  ;;  %v650_v1 = vmax.f32 %v626_v24, %v648_v61 }
  0x98   : > { %v1756_v21 = vpop.eup %1755 }
  0x99   : > { %v662_v25 = vmul.f32 %v1756_v21, %v659_v50 }
  0x9a   : > { %v1758_v26 = vpop.eup %1757 }
  0x9b   : > { %v664_v28 = vsel %vm663_vm0, %v659_v50, %v662_v25  ;;  %v669_v29 = vmul.f32 %v1758_v26, %v660_v54 }
  0x9c   : > { %v667_v30 = vsel %vm665_vm1, %v666_v23, %v664_v28 }
  0x9d   : > { %v671_v31 = vsel %vm670_vm2, %v660_v54, %v669_v29  ;;  %v675_v46 = vmul.f32 0.5, %v667_v30 }
  0x9e   : > { %v674_v49 = vsel %vm672_vm3, %v673_v47, %v671_v31 }
  0x9f   : > { %v676_v32 = vmul.f32 0.5, %v674_v49  ;;  %v677_v33 = vadd.f32 %v675_v46, %v649_v27 }
  0xa1   : > { %v678_v34 = vadd.f32 %v676_v32, %v650_v1  ;;  %680 = vst [vmem:[%s679_s26] sm:$0xff] %v677_v33 }
  0xa3   : > { %v682_v35 = vmin.f32 %v677_v33, %v678_v34  ;;  %v693_v36 = vmax.f32 %v677_v33, %v678_v34  ;;  %681 = vst [vmem:[%s679_s26 + $0x8] sm:$0xff] %v678_v34 }
  0xa5   : > { %683 = vmin.xlane.f32.xlu0 %v682_v35 }
  0xa9   : > { %694 = vmax.xlane.f32.xlu0 %v693_v36 }
  0xaa   :  { %v710_v17 = vld [vmem:[#allocation5] sm:$0xff] (%p32_p0)  ;;  %v711_v56 = vld [vmem:[#allocation5 + $0x8] sm:$0xff] (%p32_p0)  ;;  %v712_v20 = vld [vmem:[#allocation5 + $0x10] sm:$0xff] (%p32_p0) }
  0xab   :  { %v713_v57 = vld [vmem:[#allocation5 + $0x18] sm:$0xff] (%p32_p0)  ;;  %v714_v59 = vld [vmem:[#allocation5 + $0x20] sm:$0xff] (%p32_p0)  ;;  %v715_v60 = vld [vmem:[#allocation5 + $0x28] sm:$0xff] (%p32_p0) }
  0xac   :  { %v716_v0 = vld [vmem:[#allocation5 + $0x30] sm:$0xff] (%p32_p0)  ;;  %v717_v62 = vld [vmem:[#allocation5 + $0x38] sm:$0xff] (%p32_p0)  ;;  %v718_v63 = vld [vmem:[#allocation5 + $0x40] sm:$0xff] (%p32_p0) }
  0xad   :  { %v719_v40 = vld [vmem:[#allocation5 + $0x48] sm:$0xff] (%p32_p0)  ;;  %v720_v2 = vld [vmem:[#allocation5 + $0x50] sm:$0xff] (%p32_p0)  ;;  %v721_v3 = vld [vmem:[#allocation5 + $0x58] sm:$0xff] (%p32_p0) }
  0xae   :  { %v722_v7 = vld [vmem:[#allocation5 + $0x60] sm:$0xff] (%p32_p0)  ;;  %v723_v9 = vld [vmem:[#allocation5 + $0x68] sm:$0xff] (%p32_p0)  ;;  %v724_v10 = vld [vmem:[#allocation5 + $0x70] sm:$0xff] (%p32_p0) }
  0xaf   :  { %v725_v11 = vld [vmem:[#allocation5 + $0x78] sm:$0xff] (%p32_p0) }
 0x12e   : > { %v684_v37 = vpop.xlane.xlu0 %683 }
 0x12f   : > { %v685_v38 = vrot.slane %v684_v37, 4 }
 0x131   : > { %v686_v39 = vmin.f32 %v684_v37, %v685_v38 }
 0x132   : > { %v695_v41 = vpop.xlane.xlu0 %694 }
 0x133   : > { %v687_v42 = vrot.slane %v686_v39, 2  ;;  %v696_v43 = vrot.slane %v695_v41, 4 }
 0x135   : > { %v688_v44 = vmin.f32 %v686_v39, %v687_v42  ;;  %v697_v45 = vmax.f32 %v695_v41, %v696_v43 }
 0x137   : > { %v689_v48 = vrot.slane %v688_v44, 1  ;;  %v698_v16 = vrot.slane %v697_v45, 2 }
 0x139   : > { %v690_v50 = vmin.f32 %v688_v44, %v689_v48  ;;  %v699_v51 = vmax.f32 %v697_v45, %v698_v16 }
 0x13b   : > { %1689 = vpush %v690_v50  ;;  %v700_v52 = vrot.slane %v699_v51, 1 }
 0x13d   : > { %v701_v53 = vmax.f32 %v699_v51, %v700_v52 }
 0x13f   : > { %1691 = vpush %v701_v53 }
 0x16c   : > { %s1690_s15 = spop %1689 }
 0x16d   : > { %s692_s27 = smin.f32 %s1829_s12, %s1690_s15  }
 0x16e   : > { %s2873_s12 = smov %s692_s27  ;;  %34 = sbr.rel (!%p32_p0) target bundleno = 15 (0xf), region = 45  ;;  %v726_v58 = vstv (%p32_p0), %s692_s27 }
 0x16f   :  { %v727_v8 = vsub.f32 (%p32_p0), %v710_v17, %v726_v58  ;;  %v728_v12 = vsub.f32 (%p32_p0), %v711_v56, %v726_v58  ;;  %v729_v13 = vsub.f32 (%p32_p0), %v712_v20, %v726_v58  ;;  %v730_v14 = vsub.f32 (%p32_p0), %v713_v57, %v726_v58  ;;  %s2379_s12 = smov (%p32_p0), 0  }
 0x170   : > { %s1692_s28 = spop %1691  ;;  %v731_v15 = vsub.f32 (%p32_p0), %v714_v59, %v726_v58  ;;  %v732_v18 = vsub.f32 (%p32_p0), %v715_v60, %v726_v58  ;;  %v733_v19 = vsub.f32 (%p32_p0), %v716_v0, %v726_v58  ;;  %v734_v21 = vsub.f32 (%p32_p0), %v717_v62, %v726_v58 }
 0x171   : > { %s703_s29 = smax.f32 %s1825_s11, %s1692_s28   ;;  %v735_v22 = vsub.f32 (%p32_p0), %v718_v63, %v726_v58  ;;  %v736_v23 = vsub.f32 (%p32_p0), %v719_v40, %v726_v58  ;;  %v737_v24 = vsub.f32 (%p32_p0), %v720_v2, %v726_v58  ;;  %v738_v25 = vsub.f32 (%p32_p0), %v721_v3, %v726_v58 }
 0x172   : > { %s2872_s11 = smov %s703_s29  ;;  %s2365_s30 = ssub.f32 (%p32_p0), %s703_s29, %s692_s27  ;;  %v739_v26 = vsub.f32 (%p32_p0), %v722_v7, %v726_v58  ;;  %v740_v61 = vsub.f32 (%p32_p0), %v723_v9, %v726_v58  ;;  %v741_v47 = vsub.f32 (%p32_p0), %v724_v10, %v726_v58  ;;  %v742_v27 = vsub.f32 (%p32_p0), %v725_v11, %v726_v58 }
 0x173   :  { %s2377_s11 = smov inf  }
 0x174   :  { %v706_v54 = vstv %s2365_s30  ;;  %p705_p1 = scmp.gt.f32.partialorder %s2365_s30, 0.0 }
 0x175   :  { %1759 = vrcp.f32 %v706_v54 }
 0x182   :  { %v1760_v55 = vpop.eup %1759 }
 0x183   :  { %1693 = vpush %v1760_v55 }
 0x1b4   :  { %s1694_s9 = spop %1693 }
 0x1b5   :  { %s2877_s9 = smov (!%p705_p1, %s1694_s9), 0.0 }
 0x1b6   :  { %v743_v28 = vstv %s2877_s9 }
 0x1b7   :  { %v744_v29 = vmul.f32 %v743_v28, %v727_v8  ;;  %v745_v30 = vmul.f32 %v743_v28, %v728_v12  ;;  %v746_v1 = vmul.f32 %v743_v28, %v729_v13  ;;  %v747_v31 = vmul.f32 %v743_v28, %v730_v14 }
 0x1b8   :  { %v748_v46 = vmul.f32 %v743_v28, %v731_v15  ;;  %v749_v49 = vmul.f32 %v743_v28, %v732_v18  ;;  %v750_v32 = vmul.f32 %v743_v28, %v733_v19  ;;  %v751_v33 = vmul.f32 %v743_v28, %v734_v21 }
 0x1b9   :  { %v752_v34 = vmul.f32 %v743_v28, %v735_v22  ;;  %v753_v35 = vmul.f32 %v743_v28, %v736_v23  ;;  %v754_v36 = vmul.f32 %v743_v28, %v737_v24  ;;  %v755_v37 = vmul.f32 %v743_v28, %v738_v25  ;;  %760 = vst [vmem:[#allocation5] sm:$0xff] %v744_v29 }
 0x1ba   :  { %761 = vst [vmem:[#allocation5 + $0x8] sm:$0xff] %v745_v30  ;;  %762 = vst [vmem:[#allocation5 + $0x10] sm:$0xff] %v746_v1  ;;  %v756_v38 = vmul.f32 %v743_v28, %v739_v26  ;;  %v757_v39 = vmul.f32 %v743_v28, %v740_v61  ;;  %v758_v41 = vmul.f32 %v743_v28, %v741_v47 }
 0x1bb   :  { %763 = vst [vmem:[#allocation5 + $0x18] sm:$0xff] %v747_v31  ;;  %v759_v42 = vmul.f32 %v743_v28, %v742_v27  ;;  %764 = vst [vmem:[#allocation5 + $0x20] sm:$0xff] %v748_v46 }
 0x1bc   :  { %765 = vst [vmem:[#allocation5 + $0x28] sm:$0xff] %v749_v49  ;;  %766 = vst [vmem:[#allocation5 + $0x30] sm:$0xff] %v750_v32 }
 0x1bd   :  { %767 = vst [vmem:[#allocation5 + $0x38] sm:$0xff] %v751_v33  ;;  %768 = vst [vmem:[#allocation5 + $0x40] sm:$0xff] %v752_v34 }
 0x1be   :  { %769 = vst [vmem:[#allocation5 + $0x48] sm:$0xff] %v753_v35  ;;  %770 = vst [vmem:[#allocation5 + $0x50] sm:$0xff] %v754_v36 }
 0x1bf   :  { %771 = vst [vmem:[#allocation5 + $0x58] sm:$0xff] %v755_v37  ;;  %772 = vst [vmem:[#allocation5 + $0x60] sm:$0xff] %v756_v38 }
 0x1c0   :  { %773 = vst [vmem:[#allocation5 + $0x68] sm:$0xff] %v757_v39  ;;  %774 = vst [vmem:[#allocation5 + $0x70] sm:$0xff] %v758_v41 }
 0x1c1   :  { %775 = vst [vmem:[#allocation5 + $0x78] sm:$0xff] %v759_v42 }
 0x1c2 LB: > { %s2390_s13 = sld [smem:[#allocation2 + $0x82]]  ;;  %s1631_s5 = sshll.u32 %s1845_s12, 4  ;;  %v1849_v25 = vmov 0.0   ;;  %s1845_s12 = sphi %s2379_s12, %s786_s12   ;;  %s1841_s11 = sphi %s2377_s11, %s2875_s11   ;;  %s1837_s10 = sphi %s2375_s10, %s2874_s10  }
 0x1c3   : > { %s1633_s4 = sld [smem:[#allocation2 + $0x85]]  ;;  %v793_v43 = vstv %s1631_s5  ;;  %s786_s12 = sadd.s32 1, %s1845_s12  }
 0x1c4   : > { %s1634_s6 = sld [smem:[#allocation2 + $0x88]]  ;;  %v794_v44 = vadd.s32 %v793_v43, %v1889_v5  ;;  %v795_v45 = vadd.s32 %v793_v43, %v1895_v6  ;;  %p783_p2 = scmp.ge.s32.totalorder %s786_s12, 8  }
 0x1c5   : > { %s1635_s7 = sld [smem:[#allocation2 + $0x89]] }
 0x1c6   : > { %s1636_s8 = sld [smem:[#allocation2 + $0x8e]]  ;;  %v796_v48 = vcvt.s32.f32 %v794_v44  ;;  %v797_v16 = vcvt.s32.f32 %v795_v45 }
 0x1c7   : > { %s1637_s0 = sld [smem:[#allocation2 + $0x8f]] }
 0x1c8   : > { %s1638_s14 = sld [smem:[#allocation2 + $0x94]]  ;;  %v798_v50 = vmul.f32 0.0503937, %v796_v48  ;;  %v799_v51 = vmul.f32 0.0503937, %v797_v16  ;;  %s806_s18 = smul.f32 %s2390_s13, %s2390_s13 }
 0x1c9   : > { %s807_s16 = smul.f32 %s1633_s4, %s1633_s4  ;;  %s1639_s17 = sld [smem:[#allocation2 + $0x95]] }
 0x1ca   : > { %v812_v52 = vstv %s1634_s6  ;;  %v2397_v54 = vsub.f32 3.2, %v798_v50  ;;  %v2399_v55 = vsub.f32 3.2, %v799_v51  ;;  %s2409_s19 = sld [smem:[#allocation2 + $0x9a]]  ;;  %v2416_v18 = vstv %s806_s18 }
 0x1cb   : > { %v815_v53 = vstv %s1635_s7  ;;  %v2402_v20 = vstv %s807_s16  ;;  %s2418_s20 = sld [smem:[#allocation2 + $0x9b]] }
 0x1cc   : > { %v816_v17 = vsub.f32 %v1871_v4, %v815_v53  ;;  %v838_v56 = vstv %s1636_s8  ;;  %v813_v58 = vsub.f32 %v2397_v54, %v812_v52  ;;  %v814_v59 = vsub.f32 %v2399_v55, %v812_v52  ;;  %s2422_s21 = sld [smem:[#allocation2 + $0xa0]] }
 0x1cd   : > { %v841_v57 = vstv %s1637_s0  ;;  %v839_v0 = vsub.f32 %v2397_v54, %v838_v56  ;;  %v840_v62 = vsub.f32 %v2399_v55, %v838_v56  ;;  %s2428_s22 = sld [smem:[#allocation2 + $0xa1]] }
 0x1ce   : > { %v819_v60 = vmul.f32 %v816_v17, %v816_v17  ;;  %v842_v63 = vsub.f32 %v1871_v4, %v841_v57  ;;  %v862_v40 = vstv %s1638_s14  ;;  %v817_v3 = vmul.f32 %v813_v58, %v813_v58  ;;  %s2431_s23 = sld [smem:[#allocation2 + $0xa6]] }
 0x1cf   : > { %v865_v2 = vstv %s1639_s17  ;;  %v818_v7 = vmul.f32 %v814_v59, %v814_v59  ;;  %v843_v8 = vmul.f32 %v839_v0, %v839_v0  ;;  %v863_v9 = vsub.f32 %v2397_v54, %v862_v40  ;;  %s2433_s24 = sld [smem:[#allocation2 + $0xa7]] }
 0x1d0   : > { %v844_v10 = vmul.f32 %v840_v62, %v840_v62  ;;  %v845_v11 = vmul.f32 %v842_v63, %v842_v63  ;;  %v864_v12 = vsub.f32 %v2399_v55, %v862_v40  ;;  %v866_v13 = vsub.f32 %v1871_v4, %v865_v2  ;;  %s2443_s25 = sld [smem:[#allocation2 + $0xac]] }
 0x1d1   : > { %v820_v14 = vadd.f32 %v819_v60, %v817_v3  ;;  %v821_v15 = vadd.f32 %v819_v60, %v818_v7  ;;  %v867_v22 = vmul.f32 %v863_v9, %v863_v9  ;;  %v886_v47 = vstv %s2409_s19  ;;  %s2448_s26 = sld [smem:[#allocation2 + $0xad]] }
 0x1d2   : > { %v846_v19 = vadd.f32 %v845_v11, %v843_v8  ;;  %v847_v21 = vadd.f32 %v845_v11, %v844_v10  ;;  %v868_v23 = vmul.f32 %v864_v12, %v864_v12  ;;  %v869_v24 = vmul.f32 %v866_v13, %v866_v13  ;;  %s2474_s15 = sld [smem:[#allocation2 + $0xb2]] }
 0x1d3   : > { %vm826_vm4 = vcmp.le.f32.partialorder %v820_v14, %v2402_v20  ;;  %vm827_vm5 = vcmp.le.f32.partialorder %v821_v15, %v2402_v20  ;;  %vm823_vm6 = vcmp.le.f32.partialorder %v820_v14, %v2416_v18  ;;  %vm824_vm7 = vcmp.le.f32.partialorder %v821_v15, %v2416_v18  ;;  %s2485_s27 = sld [smem:[#allocation2 + $0xb3]] }
 0x1d4   : > { %v828_v26 = vsel %vm826_vm4, 2.0, %v1849_v25  ;;  %v829_v61 = vsel %vm827_vm5, 2.0, %v1849_v25  ;;  %vm850_vm8 = vcmp.le.f32.partialorder %v846_v19, %v2402_v20  ;;  %v870_v29 = vadd.f32 %v869_v24, %v867_v22  ;;  %s2489_s28 = sld [smem:[#allocation2 + $0x8a]] }
 0x1d5   : > { %v830_v27 = vsel %vm823_vm6, 4.0, %v828_v26  ;;  %v831_v28 = vsel %vm824_vm7, 4.0, %v829_v61  ;;  %vm851_vm9 = vcmp.le.f32.partialorder %v847_v21, %v2402_v20  ;;  %v871_v30 = vadd.f32 %v869_v24, %v868_v23  ;;  %s2495_s29 = sld [smem:[#allocation2 + $0x8b]] }
 0x1d6   : > { %v887_v1 = vsub.f32 %v2397_v54, %v886_v47  ;;  %v888_v31 = vsub.f32 %v2399_v55, %v886_v47  ;;  %vm848_vm10 = vcmp.le.f32.partialorder %v846_v19, %v2416_v18  ;;  %vm849_vm11 = vcmp.le.f32.partialorder %v847_v21, %v2416_v18  ;;  %s2501_s30 = sld [smem:[#allocation2 + $0x90]] }
 0x1d7   : > { %v832_v46 = vmax.f32 %v830_v27, 0.0  ;;  %v833_v49 = vmax.f32 %v831_v28, 0.0  ;;  %v852_v32 = vsel %vm850_vm8, 1.8, %v1849_v25  ;;  %v889_v33 = vstv %s2418_s20  ;;  %s2507_s9 = sld [smem:[#allocation2 + $0x91]] }
 0x1d8   : > { %v853_v34 = vsel %vm851_vm9, 1.8, %v1849_v25  ;;  %vm874_vm12 = vcmp.le.f32.partialorder %v870_v29, %v2402_v20  ;;  %v890_v35 = vsub.f32 %v1871_v4, %v889_v33  ;;  %v891_v36 = vmul.f32 %v887_v1, %v887_v1  ;;  %s2514_s13 = sld [smem:[#allocation2 + $0x86]] }
 0x1d9   : > { %vm875_vm13 = vcmp.le.f32.partialorder %v871_v30, %v2402_v20  ;;  %v892_v37 = vmul.f32 %v888_v31, %v888_v31  ;;  %v910_v38 = vstv %s2422_s21  ;;  %v913_v39 = vstv %s2428_s22  ;;  %s2520_s4 = sld [smem:[#allocation2 + $0x83]] }
 0x1da   : > { %v893_v41 = vmul.f32 %v890_v35, %v890_v35  ;;  %v911_v42 = vsub.f32 %v2397_v54, %v910_v38  ;;  %v912_v43 = vsub.f32 %v2399_v55, %v910_v38  ;;  %v914_v44 = vsub.f32 %v1871_v4, %v913_v39  ;;  %s2525_s6 = sld [smem:[#allocation2 + $0x96]] }
 0x1db   : > { %v854_v45 = vsel %vm848_vm10, 3.6, %v852_v32  ;;  %v855_v48 = vsel %vm849_vm11, 3.6, %v853_v34  ;;  %v934_v16 = vstv %s2431_s23  ;;  %v937_v50 = vstv %s2433_s24  ;;  %s2535_s7 = sld [smem:[#allocation2 + $0x97]] }
 0x1dc   : > { %vm872_vm14 = vcmp.le.f32.partialorder %v870_v29, %v2416_v18  ;;  %vm873_vm15 = vcmp.le.f32.partialorder %v871_v30, %v2416_v18  ;;  %v876_v51 = vsel %vm874_vm12, 1.62, %v1849_v25  ;;  %v894_v52 = vadd.f32 %v893_v41, %v891_v36  ;;  %s2543_s8 = sld [smem:[#allocation2 + $0x9c]] }
 0x1dd   : > { %v877_v53 = vsel %vm875_vm13, 1.62, %v1849_v25  ;;  %v895_v17 = vadd.f32 %v893_v41, %v892_v37  ;;  %v915_v56 = vmul.f32 %v911_v42, %v911_v42  ;;  %v916_v57 = vmul.f32 %v912_v43, %v912_v43  ;;  %s2549_s14 = sld [smem:[#allocation2 + $0x9d]] }
 0x1de   : > { %vm898_vm0 = vcmp.le.f32.partialorder %v894_v52, %v2402_v20  ;;  %v917_v58 = vmul.f32 %v914_v44, %v914_v44  ;;  %v935_v59 = vsub.f32 %v2397_v54, %v934_v16  ;;  %v938_v60 = vsub.f32 %v1871_v4, %v937_v50  ;;  %s1007_s0 = smul.f32 %s2514_s13, %s2514_s13  ;;  %s2557_s17 = sld [smem:[#allocation2 + $0xa2]] }
 0x1df   : > { %v856_v0 = vmax.f32 %v832_v46, %v854_v45  ;;  %v936_v62 = vsub.f32 %v2399_v55, %v934_v16  ;;  %v857_v63 = vmax.f32 %v833_v49, %v855_v48  ;;  %v878_v40 = vsel %vm872_vm14, 3.24, %v876_v51  ;;  %s1006_s16 = smul.f32 %s2520_s4, %s2520_s4  ;;  %s2563_s18 = sld [smem:[#allocation2 + $0xa3]] }
 0x1e0   : > { %v958_v2 = vstv %s2443_s25  ;;  %v961_v3 = vstv %s2448_s26  ;;  %v879_v7 = vsel %vm873_vm15, 3.24, %v877_v53  ;;  %vm896_vm1 = vcmp.le.f32.partialorder %v894_v52, %v2416_v18  ;;  %s2581_s19 = sld [smem:[#allocation2 + $0xa8]] }
 0x1e1   : > { %vm899_vm2 = vcmp.le.f32.partialorder %v895_v17, %v2402_v20  ;;  %v900_v8 = vsel %vm898_vm0, 1.46, %v1849_v25  ;;  %v918_v9 = vadd.f32 %v917_v58, %v915_v56  ;;  %v919_v10 = vadd.f32 %v917_v58, %v916_v57  ;;  %s2590_s20 = sld [smem:[#allocation2 + $0xa9]] }
 0x1e2   : > { %v939_v11 = vmul.f32 %v935_v59, %v935_v59  ;;  %v941_v12 = vmul.f32 %v938_v60, %v938_v60  ;;  %v940_v13 = vmul.f32 %v936_v62, %v936_v62  ;;  %v959_v14 = vsub.f32 %v2397_v54, %v958_v2  ;;  %s2603_s21 = sld [smem:[#allocation2 + $0xae]] }
 0x1e3   : > { %v962_v15 = vsub.f32 %v1871_v4, %v961_v3  ;;  %v880_v19 = vmax.f32 %v856_v0, %v878_v40  ;;  %v881_v21 = vmax.f32 %v857_v63, %v879_v7  ;;  %vm897_vm3 = vcmp.le.f32.partialorder %v895_v17, %v2416_v18  ;;  %s2608_s22 = sld [smem:[#allocation2 + $0xaf]] }
 0x1e4   : > { %v901_v22 = vsel %vm899_vm2, 1.46, %v1849_v25  ;;  %v902_v23 = vsel %vm896_vm1, 2.92, %v900_v8  ;;  %vm922_vm4 = vcmp.le.f32.partialorder %v918_v9, %v2402_v20  ;;  %vm923_vm5 = vcmp.le.f32.partialorder %v919_v10, %v2402_v20  ;;  %s2617_s23 = sld [smem:[#allocation2 + $0xb4]] }
 0x1e5   : > { %v942_v24 = vadd.f32 %v941_v12, %v939_v11  ;;  %v960_v26 = vsub.f32 %v2399_v55, %v958_v2  ;;  %v943_v61 = vadd.f32 %v941_v12, %v940_v13  ;;  %v963_v47 = vmul.f32 %v959_v14, %v959_v14  ;;  %s2620_s24 = sld [smem:[#allocation2 + $0xb5]] }
 0x1e6   : > { %v965_v27 = vmul.f32 %v962_v15, %v962_v15  ;;  %v982_v28 = vstv %s2474_s15  ;;  %v903_v29 = vsel %vm897_vm3, 2.92, %v901_v22  ;;  %vm920_vm6 = vcmp.le.f32.partialorder %v918_v9, %v2416_v18  ;;  %s2636_s25 = sld [smem:[#allocation2 + $0x8c]] }
 0x1e7   : > { %vm921_vm7 = vcmp.le.f32.partialorder %v919_v10, %v2416_v18  ;;  %v924_v30 = vsel %vm922_vm4, 1.32, %v1849_v25  ;;  %v925_v1 = vsel %vm923_vm5, 1.32, %v1849_v25  ;;  %v904_v31 = vmax.f32 %v880_v19, %v902_v23  ;;  %s2642_s26 = sld [smem:[#allocation2 + $0x8d]] }
 0x1e8   : > { %v964_v46 = vmul.f32 %v960_v26, %v960_v26  ;;  %v983_v49 = vsub.f32 %v2397_v54, %v982_v28  ;;  %v985_v32 = vstv %s2485_s27  ;;  %v905_v33 = vmax.f32 %v881_v21, %v903_v29  ;;  %s2657_s15 = sld [smem:[#allocation2 + $0x92]] }
 0x1e9   : > { %vm946_vm8 = vcmp.le.f32.partialorder %v942_v24, %v2402_v20  ;;  %vm947_vm9 = vcmp.le.f32.partialorder %v943_v61, %v2402_v20  ;;  %v966_v34 = vadd.f32 %v965_v27, %v963_v47  ;;  %v926_v35 = vsel %vm920_vm6, 2.64, %v924_v30  ;;  %s2662_s27 = sld [smem:[#allocation2 + $0x93]] }
 0x1ea   : > { %v927_v36 = vsel %vm921_vm7, 2.64, %v925_v1  ;;  %v986_v37 = vsub.f32 %v1871_v4, %v985_v32  ;;  %v1012_v38 = vstv %s2489_s28  ;;  %vm944_vm10 = vcmp.le.f32.partialorder %v942_v24, %v2416_v18  ;;  %s2667_s28 = sld [smem:[#allocation2 + $0x87]] }
 0x1eb   : > { %vm945_vm11 = vcmp.le.f32.partialorder %v943_v61, %v2416_v18  ;;  %v984_v39 = vsub.f32 %v2399_v55, %v982_v28  ;;  %v1015_v41 = vstv %s2495_s29  ;;  %v948_v42 = vsel %vm946_vm8, 1.18, %v1849_v25  ;;  %s2676_s29 = sld [smem:[#allocation2 + $0x84]] }
 0x1ec   : > { %v949_v43 = vsel %vm947_vm9, 1.18, %v1849_v25  ;;  %v967_v44 = vadd.f32 %v965_v27, %v964_v46  ;;  %v987_v45 = vmul.f32 %v983_v49, %v983_v49  ;;  %vm970_vm12 = vcmp.le.f32.partialorder %v966_v34, %v2402_v20 }
 0x1ed   : > { %v989_v48 = vmul.f32 %v986_v37, %v986_v37  ;;  %v1013_v16 = vsub.f32 %v2397_v54, %v1012_v38  ;;  %v1016_v50 = vsub.f32 %v1871_v4, %v1015_v41  ;;  %v928_v51 = vmax.f32 %v904_v31, %v926_v35 }
 0x1ee   : > { %v929_v52 = vmax.f32 %v905_v33, %v927_v36  ;;  %v1038_v53 = vstv %s2501_s30  ;;  %v950_v17 = vsel %vm944_vm10, 2.36, %v948_v42  ;;  %v988_v56 = vmul.f32 %v984_v39, %v984_v39  ;;  %s2682_s30 = sld [smem:[#allocation2 + $0x98]] }
 0x1ef   : > { %v1014_v57 = vsub.f32 %v2399_v55, %v1012_v38  ;;  %v1041_v58 = vstv %s2507_s9  ;;  %v951_v59 = vsel %vm945_vm11, 2.36, %v949_v43  ;;  %vm968_vm13 = vcmp.le.f32.partialorder %v966_v34, %v2416_v18  ;;  %s2686_s9 = sld [smem:[#allocation2 + $0x99]] }
 0x1f0   : > { %vm971_vm14 = vcmp.le.f32.partialorder %v967_v44, %v2402_v20  ;;  %v972_v60 = vsel %vm970_vm12, 1.06, %v1849_v25  ;;  %v990_v0 = vadd.f32 %v989_v48, %v987_v45  ;;  %v1017_v62 = vmul.f32 %v1013_v16, %v1013_v16  ;;  %s1207_s13 = smul.f32 %s2667_s28, %s2667_s28 }
 0x1f1   : > { %v1019_v63 = vmul.f32 %v1016_v50, %v1016_v50  ;;  %v1039_v40 = vsub.f32 %v2397_v54, %v1038_v53  ;;  %v952_v2 = vmax.f32 %v928_v51, %v950_v17  ;;  %vm969_vm15 = vcmp.le.f32.partialorder %v967_v44, %v2416_v18  ;;  %s1206_s4 = smul.f32 %s2676_s29, %s2676_s29 }
 0x1f2   : > { %v1042_v3 = vsub.f32 %v1871_v4, %v1041_v58  ;;  %v973_v7 = vsel %vm971_vm14, 1.06, %v1849_v25  ;;  %v974_v8 = vsel %vm968_vm13, 2.12, %v972_v60  ;;  %v991_v9 = vadd.f32 %v989_v48, %v988_v56 }
 0x1f3   : > { %v1018_v10 = vmul.f32 %v1014_v57, %v1014_v57  ;;  %v953_v11 = vmax.f32 %v929_v52, %v951_v59  ;;  %v1040_v12 = vsub.f32 %v2399_v55, %v1038_v53  ;;  %v1062_v13 = vstv %s2525_s6  ;;  %s2708_s6 = sld [smem:[#allocation2 + $0x9e]] }
 0x1f4   : > { %vm994_vm0 = vcmp.le.f32.partialorder %v990_v0, %v2402_v20  ;;  %v1020_v14 = vadd.f32 %v1019_v63, %v1017_v62  ;;  %v1043_v15 = vmul.f32 %v1039_v40, %v1039_v40  ;;  %v1045_v19 = vmul.f32 %v1042_v3, %v1042_v3 }
 0x1f5   : > { %v975_v21 = vsel %vm969_vm15, 2.12, %v973_v7  ;;  %v976_v22 = vmax.f32 %v952_v2, %v974_v8  ;;  %v2561_v23 = vstv %s1007_s0  ;;  %vm995_vm1 = vcmp.le.f32.partialorder %v991_v9, %v2402_v20  ;;  %s2732_s0 = sld [smem:[#allocation2 + $0xa5]] }
 0x1f6   : > { %v1021_v24 = vadd.f32 %v1019_v63, %v1018_v10  ;;  %v2566_v26 = vstv %s1006_s16  ;;  %v1065_v61 = vstv %s2535_s7  ;;  %vm992_vm2 = vcmp.le.f32.partialorder %v990_v0, %v2416_v18  ;;  %s2713_s7 = sld [smem:[#allocation2 + $0x9f]] }
 0x1f7   : > { %v996_v47 = vsel %vm994_vm0, 0.96, %v1849_v25  ;;  %v1044_v27 = vmul.f32 %v1040_v12, %v1040_v12  ;;  %v1063_v28 = vsub.f32 %v2397_v54, %v1062_v13  ;;  %v977_v29 = vmax.f32 %v953_v11, %v975_v21  ;;  %s2748_s16 = sld [smem:[#allocation2 + $0xab]] }
 0x1f8   : > { %vm1026_vm3 = vcmp.le.f32.partialorder %v1020_v14, %v2561_v23  ;;  %v1046_v30 = vadd.f32 %v1045_v19, %v1043_v15  ;;  %v1066_v1 = vsub.f32 %v1871_v4, %v1065_v61  ;;  %vm993_vm4 = vcmp.le.f32.partialorder %v991_v9, %v2416_v18 }
 0x1f9   : > { %v997_v20 = vsel %vm995_vm1, 0.96, %v1849_v25  ;;  %v1086_v31 = vstv %s2543_s8  ;;  %v1089_v46 = vstv %s2549_s14  ;;  %v998_v49 = vsel %vm992_vm2, 1.92, %v996_v47  ;;  %s2727_s8 = sld [smem:[#allocation2 + $0xa4]] }
 0x1fa   : > { %vm1023_vm5 = vcmp.le.f32.partialorder %v1020_v14, %v2566_v26  ;;  %vm1027_vm6 = vcmp.le.f32.partialorder %v1021_v24, %v2561_v23  ;;  %v1064_v32 = vsub.f32 %v2399_v55, %v1062_v13  ;;  %v1028_v33 = vsel %vm1026_vm3, 2.0, %v1849_v25  ;;  %s2744_s14 = sld [smem:[#allocation2 + $0xaa]] }
 0x1fb   : > { %v1047_v34 = vadd.f32 %v1045_v19, %v1044_v27  ;;  %v1067_v35 = vmul.f32 %v1063_v28, %v1063_v28  ;;  %v1069_v18 = vmul.f32 %v1066_v1, %v1066_v1  ;;  %v999_v36 = vsel %vm993_vm4, 1.92, %v997_v20 }
 0x1fc   : > { %vm1050_vm7 = vcmp.le.f32.partialorder %v1046_v30, %v2561_v23  ;;  %v1087_v37 = vsub.f32 %v2397_v54, %v1086_v31  ;;  %v1090_v38 = vsub.f32 %v1871_v4, %v1089_v46  ;;  %v1000_v39 = vmax.f32 %v976_v22, %v998_v49 }
 0x1fd   : > { %vm1024_vm8 = vcmp.le.f32.partialorder %v1021_v24, %v2566_v26  ;;  %v1110_v41 = vstv %s2557_s17  ;;  %v1113_v42 = vstv %s2563_s18  ;;  %v1029_v43 = vsel %vm1027_vm6, 2.0, %v1849_v25  ;;  %s2765_s17 = sld [smem:[#allocation2 + $0xb0]] }
 0x1fe   : > { %v1030_v44 = vsel %vm1023_vm5, 4.0, %v1028_v33  ;;  %v1068_v45 = vmul.f32 %v1064_v32, %v1064_v32  ;;  %v1088_v48 = vsub.f32 %v2399_v55, %v1086_v31  ;;  %vm1048_vm9 = vcmp.le.f32.partialorder %v1046_v30, %v2566_v26  ;;  %s2772_s18 = sld [smem:[#allocation2 + $0xb1]] }
 0x1ff   : > { %vm1051_vm10 = vcmp.le.f32.partialorder %v1047_v34, %v2561_v23  ;;  %v1052_v16 = vsel %vm1050_vm7, 1.8, %v1849_v25  ;;  %v1070_v50 = vadd.f32 %v1069_v18, %v1067_v35  ;;  %v1091_v51 = vmul.f32 %v1087_v37, %v1087_v37 }
 0x200   : > { %v1093_v52 = vmul.f32 %v1090_v38, %v1090_v38  ;;  %v1111_v53 = vsub.f32 %v2397_v54, %v1110_v41  ;;  %v1114_v17 = vsub.f32 %v1871_v4, %v1113_v42  ;;  %v1001_v56 = vmax.f32 %v977_v29, %v999_v36 }
 0x201   : > { %v1031_v57 = vsel %vm1024_vm8, 4.0, %v1029_v43  ;;  %v1032_v58 = vmax.f32 %v1000_v39, %v1030_v44  ;;  %vm1049_vm11 = vcmp.le.f32.partialorder %v1047_v34, %v2566_v26  ;;  %v1053_v59 = vsel %vm1051_vm10, 1.8, %v1849_v25 }
 0x202   : > { %v1071_v60 = vadd.f32 %v1069_v18, %v1068_v45  ;;  %v1092_v0 = vmul.f32 %v1088_v48, %v1088_v48  ;;  %v1134_v62 = vstv %s2581_s19  ;;  %v1054_v63 = vsel %vm1048_vm9, 3.6, %v1052_v16  ;;  %s2784_s19 = sld [smem:[#allocation2 + $0xb6]] }
 0x203   : > { %vm1074_vm12 = vcmp.le.f32.partialorder %v1070_v50, %v2561_v23  ;;  %v1112_v40 = vsub.f32 %v2399_v55, %v1110_v41  ;;  %v1094_v2 = vadd.f32 %v1093_v52, %v1091_v51  ;;  %v1115_v3 = vmul.f32 %v1111_v53, %v1111_v53 }
 0x204   : > { %v1117_v7 = vmul.f32 %v1114_v17, %v1114_v17  ;;  %v1135_v8 = vsub.f32 %v2397_v54, %v1134_v62  ;;  %v1033_v9 = vmax.f32 %v1001_v56, %v1031_v57  ;;  %v1055_v10 = vsel %vm1049_vm11, 3.6, %v1053_v59 }
 0x205   : > { %v1137_v11 = vstv %s2590_s20  ;;  %v1056_v12 = vmax.f32 %v1032_v58, %v1054_v63  ;;  %vm1072_vm13 = vcmp.le.f32.partialorder %v1070_v50, %v2566_v26  ;;  %vm1075_vm14 = vcmp.le.f32.partialorder %v1071_v60, %v2561_v23  ;;  %s2788_s20 = sld [smem:[#allocation2 + $0xb7]] }
 0x206   : > { %v1095_v13 = vadd.f32 %v1093_v52, %v1092_v0  ;;  %v1076_v14 = vsel %vm1074_vm12, 1.62, %v1849_v25  ;;  %v1116_v15 = vmul.f32 %v1112_v40, %v1112_v40  ;;  %v1136_v19 = vsub.f32 %v2399_v55, %v1134_v62 }
 0x207   : > { %v1138_v21 = vsub.f32 %v1871_v4, %v1137_v11  ;;  %vm1098_vm15 = vcmp.le.f32.partialorder %v1094_v2, %v2561_v23  ;;  %v1118_v22 = vadd.f32 %v1117_v7, %v1115_v3  ;;  %v1139_v24 = vmul.f32 %v1135_v8, %v1135_v8 }
 0x208   : > { %v1158_v61 = vstv %s2603_s21  ;;  %vm1073_vm0 = vcmp.le.f32.partialorder %v1071_v60, %v2566_v26  ;;  %v1077_v47 = vsel %vm1075_vm14, 1.62, %v1849_v25  ;;  %v1161_v28 = vstv %s2608_s22  ;;  %s1549_s21 = scalar_lea.vmem [#allocation5], %s1631_s5 }
 0x209   : > { %v1141_v27 = vmul.f32 %v1138_v21, %v1138_v21  ;;  %v1057_v29 = vmax.f32 %v1033_v9, %v1055_v10  ;;  %v1078_v30 = vsel %vm1072_vm13, 3.24, %v1076_v14  ;;  %vm1096_vm1 = vcmp.le.f32.partialorder %v1094_v2, %v2566_v26 }
 0x20a   : > { %vm1099_vm2 = vcmp.le.f32.partialorder %v1095_v13, %v2561_v23  ;;  %v1100_v1 = vsel %vm1098_vm15, 1.46, %v1849_v25  ;;  %v1119_v20 = vadd.f32 %v1117_v7, %v1116_v15  ;;  %v1140_v31 = vmul.f32 %v1136_v19, %v1136_v19 }
 0x20b   : > { %v1159_v46 = vsub.f32 %v2397_v54, %v1158_v61  ;;  %v1079_v49 = vsel %vm1073_vm0, 3.24, %v1077_v47  ;;  %vm1122_vm3 = vcmp.le.f32.partialorder %v1118_v22, %v2561_v23  ;;  %v1142_v32 = vadd.f32 %v1141_v27, %v1139_v24 }
 0x20c   : > { %v1162_v33 = vsub.f32 %v1871_v4, %v1161_v28  ;;  %v1080_v34 = vmax.f32 %v1056_v12, %v1078_v30  ;;  %vm1097_vm4 = vcmp.le.f32.partialorder %v1095_v13, %v2566_v26  ;;  %v1182_v35 = vstv %s2617_s23 }
 0x20d   : > { %v1185_v18 = vstv %s2620_s24  ;;  %v1101_v36 = vsel %vm1099_vm2, 1.46, %v1849_v25  ;;  %v1102_v37 = vsel %vm1096_vm1, 2.92, %v1100_v1  ;;  %vm1120_vm5 = vcmp.le.f32.partialorder %v1118_v22, %v2566_v26 }
 0x20e   : > { %v1160_v38 = vsub.f32 %v2399_v55, %v1158_v61  ;;  %vm1123_vm6 = vcmp.le.f32.partialorder %v1119_v20, %v2561_v23  ;;  %v1124_v39 = vsel %vm1122_vm3, 1.32, %v1849_v25  ;;  %v1143_v41 = vadd.f32 %v1141_v27, %v1140_v31 }
 0x20f   : > { %v1163_v42 = vmul.f32 %v1159_v46, %v1159_v46  ;;  %vm1146_vm7 = vcmp.le.f32.partialorder %v1142_v32, %v2561_v23  ;;  %v1165_v43 = vmul.f32 %v1162_v33, %v1162_v33  ;;  %v1183_v44 = vsub.f32 %v2397_v54, %v1182_v35 }
 0x210   : > { %v1186_v45 = vsub.f32 %v1871_v4, %v1185_v18  ;;  %v1081_v48 = vmax.f32 %v1057_v29, %v1079_v49  ;;  %v1103_v16 = vsel %vm1097_vm4, 2.92, %v1101_v36  ;;  %v1104_v50 = vmax.f32 %v1080_v34, %v1102_v37 }
 0x211   : > { %vm1121_vm8 = vcmp.le.f32.partialorder %v1119_v20, %v2566_v26  ;;  %v1125_v51 = vsel %vm1123_vm6, 1.32, %v1849_v25  ;;  %v1126_v52 = vsel %vm1120_vm5, 2.64, %v1124_v39  ;;  %v1164_v53 = vmul.f32 %v1160_v38, %v1160_v38 }
 0x212   : > { %v1212_v17 = vstv %s2636_s25  ;;  %vm1144_vm9 = vcmp.le.f32.partialorder %v1142_v32, %v2566_v26  ;;  %vm1147_vm10 = vcmp.le.f32.partialorder %v1143_v41, %v2561_v23  ;;  %v1148_v56 = vsel %vm1146_vm7, 1.18, %v1849_v25 }
 0x213   : > { %v1184_v57 = vsub.f32 %v2399_v55, %v1182_v35  ;;  %v1166_v58 = vadd.f32 %v1165_v43, %v1163_v42  ;;  %v1187_v59 = vmul.f32 %v1183_v44, %v1183_v44  ;;  %v1189_v60 = vmul.f32 %v1186_v45, %v1186_v45 }
 0x214   : > { %v1215_v0 = vstv %s2642_s26  ;;  %v1105_v62 = vmax.f32 %v1081_v48, %v1103_v16  ;;  %v1127_v63 = vsel %vm1121_vm8, 2.64, %v1125_v51  ;;  %v1213_v40 = vsub.f32 %v2397_v54, %v1212_v17 }
 0x215   : > { %v1128_v2 = vmax.f32 %v1104_v50, %v1126_v52  ;;  %vm1145_vm11 = vcmp.le.f32.partialorder %v1143_v41, %v2566_v26  ;;  %v1167_v3 = vadd.f32 %v1165_v43, %v1164_v53  ;;  %v1216_v7 = vsub.f32 %v1871_v4, %v1215_v0 }
 0x216   : > { %v1149_v8 = vsel %vm1147_vm10, 1.18, %v1849_v25  ;;  %v1150_v9 = vsel %vm1144_vm9, 2.36, %v1148_v56  ;;  %v1188_v10 = vmul.f32 %v1184_v57, %v1184_v57  ;;  %v1214_v11 = vsub.f32 %v2399_v55, %v1212_v17 }
 0x217   : > { %vm1170_vm12 = vcmp.le.f32.partialorder %v1166_v58, %v2561_v23  ;;  %v1190_v12 = vadd.f32 %v1189_v60, %v1187_v59  ;;  %v1217_v13 = vmul.f32 %v1213_v40, %v1213_v40  ;;  %v1219_v14 = vmul.f32 %v1216_v7, %v1216_v7 }
 0x218   : > { %v1238_v15 = vstv %s2657_s15  ;;  %v1241_v19 = vstv %s2662_s27  ;;  %v1129_v21 = vmax.f32 %v1105_v62, %v1127_v63  ;;  %v1151_v22 = vsel %vm1145_vm11, 2.36, %v1149_v8 }
 0x219   : > { %v1152_v24 = vmax.f32 %v1128_v2, %v1150_v9  ;;  %vm1171_vm13 = vcmp.le.f32.partialorder %v1167_v3, %v2561_v23  ;;  %vm1168_vm14 = vcmp.le.f32.partialorder %v1166_v58, %v2566_v26  ;;  %v1172_v61 = vsel %vm1170_vm12, 1.06, %v1849_v25 }
 0x21a   : > { %v1191_v47 = vadd.f32 %v1189_v60, %v1188_v10  ;;  %v1218_v27 = vmul.f32 %v1214_v11, %v1214_v11  ;;  %vm1169_vm15 = vcmp.le.f32.partialorder %v1167_v3, %v2566_v26  ;;  %vm1194_vm0 = vcmp.le.f32.partialorder %v1190_v12, %v2561_v23 }
 0x21b   : > { %v1239_v28 = vsub.f32 %v2397_v54, %v1238_v15  ;;  %v1242_v29 = vsub.f32 %v1871_v4, %v1241_v19  ;;  %v1173_v30 = vsel %vm1171_vm13, 1.06, %v1849_v25  ;;  %v1220_v1 = vadd.f32 %v1219_v14, %v1217_v13 }
 0x21c   : > { %v1240_v20 = vsub.f32 %v2399_v55, %v1238_v15  ;;  %v1262_v31 = vstv %s2682_s30  ;;  %v1174_v46 = vsel %vm1168_vm14, 2.12, %v1172_v61  ;;  %vm1192_vm1 = vcmp.le.f32.partialorder %v1190_v12, %v2566_v26 }
 0x21d   : > { %v2716_v49 = vstv %s1207_s13  ;;  %v1265_v32 = vstv %s2686_s9  ;;  %vm1195_vm2 = vcmp.le.f32.partialorder %v1191_v47, %v2561_v23  ;;  %v1196_v33 = vsel %vm1194_vm0, 0.96, %v1849_v25 }
 0x21e   : > { %v1221_v34 = vadd.f32 %v1219_v14, %v1218_v27  ;;  %v2721_v35 = vstv %s1206_s4  ;;  %v1243_v18 = vmul.f32 %v1239_v28, %v1239_v28  ;;  %v1245_v36 = vmul.f32 %v1242_v29, %v1242_v29 }
 0x21f   : > { %v1263_v37 = vsub.f32 %v2397_v54, %v1262_v31  ;;  %v1264_v38 = vsub.f32 %v2399_v55, %v1262_v31  ;;  %vm1226_vm3 = vcmp.le.f32.partialorder %v1220_v1, %v2716_v49  ;;  %v1244_v39 = vmul.f32 %v1240_v20, %v1240_v20 }
 0x220   : > { %v1266_v41 = vsub.f32 %v1871_v4, %v1265_v32  ;;  %v1153_v42 = vmax.f32 %v1129_v21, %v1151_v22  ;;  %v1175_v43 = vsel %vm1169_vm15, 2.12, %v1173_v30  ;;  %v1176_v44 = vmax.f32 %v1152_v24, %v1174_v46 }
 0x221   : > { %vm1193_vm4 = vcmp.le.f32.partialorder %v1191_v47, %v2566_v26  ;;  %v1197_v45 = vsel %vm1195_vm2, 0.96, %v1849_v25  ;;  %v1198_v48 = vsel %vm1192_vm1, 1.92, %v1196_v33  ;;  %vm1223_vm5 = vcmp.le.f32.partialorder %v1220_v1, %v2721_v35 }
 0x222   : > { %vm1227_vm6 = vcmp.le.f32.partialorder %v1221_v34, %v2716_v49  ;;  %v1228_v16 = vsel %vm1226_vm3, 2.0, %v1849_v25  ;;  %v1246_v50 = vadd.f32 %v1245_v36, %v1243_v18  ;;  %v1267_v51 = vmul.f32 %v1263_v37, %v1263_v37 }
 0x223   : > { %v1268_v52 = vmul.f32 %v1264_v38, %v1264_v38  ;;  %v1247_v53 = vadd.f32 %v1245_v36, %v1244_v39  ;;  %v1269_v17 = vmul.f32 %v1266_v41, %v1266_v41  ;;  %v1286_v56 = vstv %s2708_s6 }
 0x224   : > { %v1289_v57 = vstv %s2713_s7  ;;  %v1177_v23 = vmax.f32 %v1153_v42, %v1175_v43  ;;  %v1199_v58 = vsel %vm1193_vm4, 1.92, %v1197_v45  ;;  %v1407_v59 = vstv %s2370_s3  ;;  %s1850_s3 = smov (%p783_p2), [#allocation5]  }
 0x225   : > { %v1200_v60 = vmax.f32 %v1176_v44, %v1198_v48  ;;  %vm1224_vm7 = vcmp.le.f32.partialorder %v1221_v34, %v2721_v35  ;;  %v1229_v0 = vsel %vm1227_vm6, 2.0, %v1849_v25  ;;  %v1230_v62 = vsel %vm1223_vm5, 4.0, %v1228_v16 }
 0x226   : > { %vm1250_vm8 = vcmp.le.f32.partialorder %v1246_v50, %v2716_v49  ;;  %v1287_v26 = vsub.f32 %v2397_v54, %v1286_v56  ;;  %v1288_v63 = vsub.f32 %v2399_v55, %v1286_v56  ;;  %v1290_v40 = vsub.f32 %v1871_v4, %v1289_v57 }
 0x227   : > { %vm1251_vm9 = vcmp.le.f32.partialorder %v1247_v53, %v2716_v49  ;;  %v1270_v2 = vadd.f32 %v1269_v17, %v1267_v51  ;;  %v1271_v3 = vadd.f32 %v1269_v17, %v1268_v52  ;;  %v1408_v7 = vsub.f32 %v1871_v4, %v1407_v59 }
 0x228   : > { %v1201_v8 = vmax.f32 %v1177_v23, %v1199_v58  ;;  %v1231_v9 = vsel %vm1224_vm7, 4.0, %v1229_v0  ;;  %v1310_v10 = vstv %s2727_s8  ;;  %v1313_v11 = vstv %s2732_s0 }
 0x229   : > { %v1232_v12 = vmax.f32 %v1200_v60, %v1230_v62  ;;  %vm1248_vm10 = vcmp.le.f32.partialorder %v1246_v50, %v2721_v35  ;;  %vm1249_vm11 = vcmp.le.f32.partialorder %v1247_v53, %v2721_v35  ;;  %v1252_v13 = vsel %vm1250_vm8, 1.8, %v1849_v25 }
 0x22a   : > { %v1253_v14 = vsel %vm1251_vm9, 1.8, %v1849_v25  ;;  %v1291_v15 = vmul.f32 %v1287_v26, %v1287_v26  ;;  %v1292_v19 = vmul.f32 %v1288_v63, %v1288_v63  ;;  %v1293_v21 = vmul.f32 %v1290_v40, %v1290_v40 }
 0x22b   : > { %vm1274_vm12 = vcmp.le.f32.partialorder %v1270_v2, %v2716_v49  ;;  %vm1275_vm13 = vcmp.le.f32.partialorder %v1271_v3, %v2716_v49  ;;  %v1311_v22 = vsub.f32 %v2397_v54, %v1310_v10  ;;  %v1314_v24 = vsub.f32 %v1871_v4, %v1313_v11 }
 0x22c   : > { %v1233_v61 = vmax.f32 %v1201_v8, %v1231_v9  ;;  %v1254_v47 = vsel %vm1248_vm10, 3.6, %v1252_v13  ;;  %v1334_v27 = vstv %s2744_s14  ;;  %v1337_v28 = vstv %s2748_s16 }
 0x22d   : > { %v1255_v29 = vsel %vm1249_vm11, 3.6, %v1253_v14  ;;  %vm1272_vm14 = vcmp.le.f32.partialorder %v1270_v2, %v2721_v35  ;;  %vm1273_vm15 = vcmp.le.f32.partialorder %v1271_v3, %v2721_v35  ;;  %v1312_v30 = vsub.f32 %v2399_v55, %v1310_v10 }
 0x22e   : > { %v1276_v1 = vsel %vm1274_vm12, 1.62, %v1849_v25  ;;  %v1277_v20 = vsel %vm1275_vm13, 1.62, %v1849_v25  ;;  %v1294_v31 = vadd.f32 %v1293_v21, %v1291_v15  ;;  %v1295_v46 = vadd.f32 %v1293_v21, %v1292_v19 }
 0x22f   : > { %v1315_v32 = vmul.f32 %v1311_v22, %v1311_v22  ;;  %v1317_v33 = vmul.f32 %v1314_v24, %v1314_v24  ;;  %v1335_v34 = vsub.f32 %v2397_v54, %v1334_v27  ;;  %v1338_v18 = vsub.f32 %v1871_v4, %v1337_v28 }
 0x230   : > { %v1256_v36 = vmax.f32 %v1232_v12, %v1254_v47  ;;  %v1358_v37 = vstv %s2765_s17  ;;  %v1402_v38 = vstv %s2367_s2  ;;  %v1409_v39 = vmul.f32 %v1408_v7, %v1408_v7 }
 0x231   : > { %v1257_v41 = vmax.f32 %v1233_v61, %v1255_v29  ;;  %v1278_v42 = vsel %vm1272_vm14, 3.24, %v1276_v1  ;;  %v1316_v43 = vmul.f32 %v1312_v30, %v1312_v30  ;;  %v1361_v44 = vstv %s2772_s18 }
 0x232   : > { %v1279_v45 = vsel %vm1273_vm15, 3.24, %v1277_v20  ;;  %vm1298_vm0 = vcmp.le.f32.partialorder %v1294_v31, %v2716_v49  ;;  %vm1299_vm1 = vcmp.le.f32.partialorder %v1295_v46, %v2716_v49  ;;  %v1336_v48 = vsub.f32 %v2399_v55, %v1334_v27 }
 0x233   : > { %v1318_v16 = vadd.f32 %v1317_v33, %v1315_v32  ;;  %v1339_v50 = vmul.f32 %v1335_v34, %v1335_v34  ;;  %v1341_v51 = vmul.f32 %v1338_v18, %v1338_v18  ;;  %v1359_v52 = vsub.f32 %v2397_v54, %v1358_v37 }
 0x234   : > { %v1280_v53 = vmax.f32 %v1256_v36, %v1278_v42  ;;  %vm1296_vm2 = vcmp.le.f32.partialorder %v1294_v31, %v2721_v35  ;;  %vm1297_vm3 = vcmp.le.f32.partialorder %v1295_v46, %v2721_v35  ;;  %v1362_v17 = vsub.f32 %v1871_v4, %v1361_v44 }
 0x235   : > { %v1300_v56 = vsel %vm1298_vm0, 1.46, %v1849_v25  ;;  %v1301_v57 = vsel %vm1299_vm1, 1.46, %v1849_v25  ;;  %v1319_v23 = vadd.f32 %v1317_v33, %v1316_v43  ;;  %v1382_v58 = vstv %s2784_s19 }
 0x236   : > { %v1340_v59 = vmul.f32 %v1336_v48, %v1336_v48  ;;  %v1360_v60 = vsub.f32 %v2399_v55, %v1358_v37  ;;  %v1385_v0 = vstv %s2788_s20  ;;  %v1403_v62 = vsub.f32 %v2397_v54, %v1402_v38 }
 0x237   : > { %v1281_v26 = vmax.f32 %v1257_v41, %v1279_v45  ;;  %vm1322_vm4 = vcmp.le.f32.partialorder %v1318_v16, %v2716_v49  ;;  %v1342_v63 = vadd.f32 %v1341_v51, %v1339_v50  ;;  %v1363_v40 = vmul.f32 %v1359_v52, %v1359_v52 }
 0x238   : > { %v1365_v2 = vmul.f32 %v1362_v17, %v1362_v17  ;;  %v1383_v3 = vsub.f32 %v2397_v54, %v1382_v58  ;;  %v1386_v7 = vsub.f32 %v1871_v4, %v1385_v0  ;;  %v1404_v8 = vsub.f32 %v2399_v55, %v1402_v38 }
 0x239   : > { %v1302_v9 = vsel %vm1296_vm2, 2.92, %v1300_v56  ;;  %v1303_v10 = vsel %vm1297_vm3, 2.92, %v1301_v57  ;;  %vm1323_vm5 = vcmp.le.f32.partialorder %v1319_v23, %v2716_v49  ;;  %v1405_v11 = vmul.f32 %v1403_v62, %v1403_v62 }
 0x23a   : > { %v1343_v12 = vadd.f32 %v1341_v51, %v1340_v59  ;;  %v1364_v13 = vmul.f32 %v1360_v60, %v1360_v60  ;;  %v1384_v14 = vsub.f32 %v2399_v55, %v1382_v58  ;;  %v1406_v15 = vmul.f32 %v1404_v8, %v1404_v8 }
 0x23b   : > { %vm1320_vm6 = vcmp.le.f32.partialorder %v1318_v16, %v2721_v35  ;;  %v1324_v54 = vsel %vm1322_vm4, 1.32, %v1849_v25  ;;  %vm1346_vm7 = vcmp.le.f32.partialorder %v1342_v63, %v2716_v49  ;;  %v1410_v19 = vadd.f32 %v1409_v39, %v1405_v11 }
 0x23c   : > { %v1366_v21 = vadd.f32 %v1365_v2, %v1363_v40  ;;  %v1387_v22 = vmul.f32 %v1383_v3, %v1383_v3  ;;  %v1389_v24 = vmul.f32 %v1386_v7, %v1386_v7  ;;  %v1411_v61 = vadd.f32 %v1409_v39, %v1406_v15 }
 0x23d   : > { %v1304_v47 = vmax.f32 %v1280_v53, %v1302_v9  ;;  %vm1321_vm8 = vcmp.le.f32.partialorder %v1319_v23, %v2721_v35  ;;  %v1325_v55 = vsel %vm1323_vm5, 1.32, %v1849_v25  ;;  %1761 = vrsqrt.f32 %v1410_v19 }
 0x23e   : > { %v1326_v27 = vsel %vm1320_vm6, 2.64, %v1324_v54  ;;  %vm1347_vm9 = vcmp.le.f32.partialorder %v1343_v12, %v2716_v49  ;;  %v1367_v28 = vadd.f32 %v1365_v2, %v1364_v13  ;;  %v1388_v29 = vmul.f32 %v1384_v14, %v1384_v14 }
 0x23f   : > { %v1305_v30 = vmax.f32 %v1281_v26, %v1303_v10  ;;  %vm1344_vm10 = vcmp.le.f32.partialorder %v1342_v63, %v2721_v35  ;;  %v1348_v1 = vsel %vm1346_vm7, 1.18, %v1849_v25  ;;  %1763 = vrsqrt.f32 %v1411_v61 }
 0x240   : > { %v1327_v20 = vsel %vm1321_vm8, 2.64, %v1325_v55  ;;  %vm1370_vm11 = vcmp.le.f32.partialorder %v1366_v21, %v2716_v49  ;;  %v1390_v31 = vadd.f32 %v1389_v24, %v1387_v22  ;;  %v1328_v46 = vmax.f32 %v1304_v47, %v1326_v27 }
 0x241   : > { %vm1345_vm12 = vcmp.le.f32.partialorder %v1343_v12, %v2721_v35  ;;  %v1349_v32 = vsel %vm1347_vm9, 1.18, %v1849_v25  ;;  %v1350_v33 = vsel %vm1344_vm10, 2.36, %v1348_v1  ;;  %vm1371_vm13 = vcmp.le.f32.partialorder %v1367_v28, %v2716_v49 }
 0x242   : > { %v1391_v34 = vadd.f32 %v1389_v24, %v1388_v29  ;;  %v1329_v18 = vmax.f32 %v1305_v30, %v1327_v20  ;;  %vm1368_vm14 = vcmp.le.f32.partialorder %v1366_v21, %v2721_v35  ;;  %v1372_v36 = vsel %vm1370_vm11, 1.06, %v1849_v25 }
 0x243   : > { %v1351_v37 = vsel %vm1345_vm12, 2.36, %v1349_v32  ;;  %vm1394_vm15 = vcmp.le.f32.partialorder %v1390_v31, %v2716_v49  ;;  %v1352_v38 = vmax.f32 %v1328_v46, %v1350_v33  ;;  %vm1369_vm0 = vcmp.le.f32.partialorder %v1367_v28, %v2721_v35 }
 0x244   : > { %v1373_v39 = vsel %vm1371_vm13, 1.06, %v1849_v25  ;;  %v1374_v41 = vsel %vm1368_vm14, 2.12, %v1372_v36  ;;  %vm1395_vm1 = vcmp.le.f32.partialorder %v1391_v34, %v2716_v49  ;;  %v1353_v42 = vmax.f32 %v1329_v18, %v1351_v37 }
 0x245   : > { %vm1392_vm2 = vcmp.le.f32.partialorder %v1390_v31, %v2721_v35  ;;  %v1396_v43 = vsel %vm1394_vm15, 0.96, %v1849_v25  ;;  %v1375_v44 = vsel %vm1369_vm0, 2.12, %v1373_v39  ;;  %v1376_v45 = vmax.f32 %v1352_v38, %v1374_v41 }
 0x246   : > { %vm1393_vm3 = vcmp.le.f32.partialorder %v1391_v34, %v2721_v35  ;;  %v1397_v48 = vsel %vm1395_vm1, 0.96, %v1849_v25  ;;  %v1398_v50 = vsel %vm1392_vm2, 1.92, %v1396_v43  ;;  %vm1414_vm4 = vcmp.eq.f32.partialorder %v1410_v19, inf }
 0x247   : > { %v1417_v51 = vand.u32 2147483648, %v1410_v19  ;;  %v1377_v52 = vmax.f32 %v1353_v42, %v1375_v44  ;;  %vm1416_vm5 = vcmp.eq.f32.partialorder %v1410_v19, 0.0  ;;  %v1399_v49 = vsel %vm1393_vm3, 1.92, %v1397_v48 }
 0x248   : > { %vm1421_vm6 = vcmp.eq.f32.partialorder %v1411_v61, inf  ;;  %v1424_v56 = vand.u32 2147483648, %v1411_v61  ;;  %v1400_v57 = vmax.f32 %v1376_v45, %v1398_v50  ;;  %vm1423_vm7 = vcmp.eq.f32.partialorder %v1411_v61, 0.0 }
 0x249   : > { %v1401_v35 = vmax.f32 %v1377_v52, %v1399_v49 }
 0x24a   : > { %v1762_v16 = vpop.eup %1761 }
 0x24b   : > { %v1413_v53 = vmul.f32 %v1762_v16, %v1410_v19 }
 0x24c   : > { %v1764_v17 = vpop.eup %1763 }
 0x24d   : > { %v1415_v23 = vsel %vm1414_vm4, %v1410_v19, %v1413_v53  ;;  %v1420_v58 = vmul.f32 %v1764_v17, %v1411_v61 }
 0x24e   : > { %v1418_v59 = vsel %vm1416_vm5, %v1417_v51, %v1415_v23 }
 0x24f   : > { %v1422_v60 = vsel %vm1421_vm6, %v1411_v61, %v1420_v58  ;;  %v1426_v25 = vmul.f32 0.5, %v1418_v59 }
 0x250   : > { %v1425_v0 = vsel %vm1423_vm7, %v1424_v56, %v1422_v60 }
 0x251   : > { %v1427_v62 = vmul.f32 0.5, %v1425_v0  ;;  %v1428_v26 = vadd.f32 %v1426_v25, %v1400_v57 }
 0x253   : > { %v1429_v63 = vadd.f32 %v1427_v62, %v1401_v35  ;;  %1687 = vst [vmem:[%s1549_s21 + $0x80] sm:$0xff] %v1428_v26 }
 0x255   : > { %v1434_v40 = vmin.f32 %v1428_v26, %v1429_v63  ;;  %v1445_v2 = vmax.f32 %v1428_v26, %v1429_v63  ;;  %1688 = vst [vmem:[%s1549_s21 + $0x88] sm:$0xff] %v1429_v63 }
 0x257   : > { %1435 = vmin.xlane.f32.xlu0 %v1434_v40 }
 0x25b   : > { %1446 = vmax.xlane.f32.xlu0 %v1445_v2 }
 0x25c   :  { %v1463_v47 = vld [vmem:[#allocation5 + $0x80] sm:$0xff] (%p783_p2)  ;;  %v1464_v55 = vld [vmem:[#allocation5 + $0x88] sm:$0xff] (%p783_p2)  ;;  %v1465_v27 = vld [vmem:[#allocation5 + $0x90] sm:$0xff] (%p783_p2) }
 0x25d   :  { %v1466_v28 = vld [vmem:[#allocation5 + $0x98] sm:$0xff] (%p783_p2)  ;;  %v1467_v30 = vld [vmem:[#allocation5 + $0xa0] sm:$0xff] (%p783_p2)  ;;  %v1468_v1 = vld [vmem:[#allocation5 + $0xa8] sm:$0xff] (%p783_p2) }
 0x25e   :  { %v1469_v20 = vld [vmem:[#allocation5 + $0xb0] sm:$0xff] (%p783_p2)  ;;  %v1470_v31 = vld [vmem:[#allocation5 + $0xb8] sm:$0xff] (%p783_p2)  ;;  %v1471_v46 = vld [vmem:[#allocation5 + $0xc0] sm:$0xff] (%p783_p2) }
 0x25f   :  { %v1472_v4 = vld [vmem:[#allocation5 + $0xc8] sm:$0xff] (%p783_p2)  ;;  %v1473_v5 = vld [vmem:[#allocation5 + $0xd0] sm:$0xff] (%p783_p2)  ;;  %v1474_v6 = vld [vmem:[#allocation5 + $0xd8] sm:$0xff] (%p783_p2) }
 0x260   :  { %v1475_v32 = vld [vmem:[#allocation5 + $0xe0] sm:$0xff] (%p783_p2)  ;;  %v1476_v34 = vld [vmem:[#allocation5 + $0xe8] sm:$0xff] (%p783_p2)  ;;  %v1477_v18 = vld [vmem:[#allocation5 + $0xf0] sm:$0xff] (%p783_p2) }
 0x261   :  { %v1478_v36 = vld [vmem:[#allocation5 + $0xf8] sm:$0xff] (%p783_p2) }
 0x2e0   : > { %v1436_v3 = vpop.xlane.xlu0 %1435 }
 0x2e1   : > { %v1437_v7 = vrot.slane %v1436_v3, 4 }
 0x2e3   : > { %v1438_v8 = vmin.f32 %v1436_v3, %v1437_v7 }
 0x2e4   : > { %v1447_v9 = vpop.xlane.xlu0 %1446 }
 0x2e5   : > { %v1439_v10 = vrot.slane %v1438_v8, 2  ;;  %v1448_v11 = vrot.slane %v1447_v9, 4 }
 0x2e7   : > { %v1440_v12 = vmin.f32 %v1438_v8, %v1439_v10  ;;  %v1449_v13 = vmax.f32 %v1447_v9, %v1448_v11 }
 0x2e9   : > { %v1441_v14 = vrot.slane %v1440_v12, 1  ;;  %v1450_v15 = vrot.slane %v1449_v13, 2 }
 0x2eb   : > { %v1442_v54 = vmin.f32 %v1440_v12, %v1441_v14  ;;  %v1451_v19 = vmax.f32 %v1449_v13, %v1450_v15 }
 0x2ed   : > { %1695 = vpush %v1442_v54  ;;  %v1452_v21 = vrot.slane %v1451_v19, 1 }
 0x2ef   : > { %v1453_v22 = vmax.f32 %v1451_v19, %v1452_v21 }
 0x2f1   : > { %1697 = vpush %v1453_v22 }
 0x31e   : > { %s1696_s5 = spop %1695 }
 0x31f   : > { %s1444_s22 = smin.f32 %s1841_s11, %s1696_s5  }
 0x320   : > { %s2875_s11 = smov %s1444_s22  ;;  %785 = sbr.rel (!%p783_p2) target bundleno = 450 (0x1c2), region = 56  ;;  %v1479_v29 = vstv (%p783_p2), %s1444_s22 }
 0x321   :  { %v1480_v33 = vsub.f32 (%p783_p2), %v1463_v47, %v1479_v29  ;;  %v1481_v37 = vsub.f32 (%p783_p2), %v1464_v55, %v1479_v29  ;;  %v1482_v38 = vsub.f32 (%p783_p2), %v1465_v27, %v1479_v29  ;;  %v1483_v39 = vsub.f32 (%p783_p2), %v1466_v28, %v1479_v29 }
 0x322   : > { %s1698_s23 = spop %1697  ;;  %v1484_v41 = vsub.f32 (%p783_p2), %v1467_v30, %v1479_v29  ;;  %v1485_v42 = vsub.f32 (%p783_p2), %v1468_v1, %v1479_v29  ;;  %v1486_v43 = vsub.f32 (%p783_p2), %v1469_v20, %v1479_v29  ;;  %v1487_v44 = vsub.f32 (%p783_p2), %v1470_v31, %v1479_v29 }
 0x323   : > { %s1455_s24 = smax.f32 %s1837_s10, %s1698_s23   ;;  %v1488_v45 = vsub.f32 (%p783_p2), %v1471_v46, %v1479_v29  ;;  %v1489_v48 = vsub.f32 (%p783_p2), %v1472_v4, %v1479_v29  ;;  %v1490_v16 = vsub.f32 (%p783_p2), %v1473_v5, %v1479_v29  ;;  %v1491_v50 = vsub.f32 (%p783_p2), %v1474_v6, %v1479_v29 }
 0x324   : > { %s2874_s10 = smov %s1455_s24  ;;  %s2861_s25 = ssub.f32 (%p783_p2), %s1455_s24, %s1444_s22  ;;  %v1492_v51 = vsub.f32 (%p783_p2), %v1475_v32, %v1479_v29  ;;  %v1493_v52 = vsub.f32 (%p783_p2), %v1476_v34, %v1479_v29  ;;  %v1494_v53 = vsub.f32 (%p783_p2), %v1477_v18, %v1479_v29  ;;  %v1495_v17 = vsub.f32 (%p783_p2), %v1478_v36, %v1479_v29 }
 0x325   :  { %s1534_s10 = sshll.u32 %s1850_s3, 4  ;;  %s1535_s10 = int_to_ptr.vmem [resolvable:$true] %s1534_s10 }
 0x326   :  { %v1458_v24 = vstv %s2861_s25  ;;  %p1457_p3 = scmp.gt.f32.partialorder %s2861_s25, 0.0  ;;  %s1775_s11 = scalar_lea.vmem %s1535_s10, 4096 }
 0x327   :  { %1765 = vrcp.f32 %v1458_v24  ;;  %p1776_p4 = scmp.ne.s32.totalorder %s1535_s10, %s1775_s11  ;;  %p1780_p5 = scmp.lt.s32.totalorder %s1535_s10, %s1535_s10 }
 0x328   :  { %p1781_p6 = scmp.lt.s32.totalorder %s1775_s11, %s1775_s11 }
 0x32a   :  { %p1782_p7 = por %p1781_p6, %p1780_p5 }
 0x32c   :  { %p1783_p8 = pnand %p1782_p7, %p1776_p4 }
 0x334   :  { %v1766_v61 = vpop.eup %1765 }
 0x335   :  { %1699 = vpush %v1766_v61 }
 0x366   :  { %s1700_s2 = spop %1699 }
 0x367   :  { %s2879_s2 = smov (!%p1457_p3, %s1700_s2), 0.0 }
 0x368   :  { %v1496_v49 = vstv %s2879_s2 }
 0x369   :  { %v1497_v56 = vmul.f32 %v1496_v49, %v1480_v33  ;;  %v1498_v57 = vmul.f32 %v1496_v49, %v1481_v37  ;;  %v1499_v23 = vmul.f32 %v1496_v49, %v1482_v38  ;;  %v1500_v58 = vmul.f32 %v1496_v49, %v1483_v39 }
 0x36a   :  { %v1501_v59 = vmul.f32 %v1496_v49, %v1484_v41  ;;  %v1502_v35 = vmul.f32 %v1496_v49, %v1485_v42  ;;  %v1503_v60 = vmul.f32 %v1496_v49, %v1486_v43  ;;  %v1504_v25 = vmul.f32 %v1496_v49, %v1487_v44 }
 0x36b   :  { %v1505_v0 = vmul.f32 %v1496_v49, %v1488_v45  ;;  %v1506_v62 = vmul.f32 %v1496_v49, %v1489_v48  ;;  %v1507_v26 = vmul.f32 %v1496_v49, %v1490_v16  ;;  %v1508_v63 = vmul.f32 %v1496_v49, %v1491_v50  ;;  %1513 = vst [vmem:[#allocation5 + $0x80] sm:$0xff] %v1497_v56 }
 0x36c   :  { %1514 = vst [vmem:[#allocation5 + $0x88] sm:$0xff] %v1498_v57  ;;  %1515 = vst [vmem:[#allocation5 + $0x90] sm:$0xff] %v1499_v23  ;;  %v1509_v40 = vmul.f32 %v1496_v49, %v1492_v51  ;;  %v1510_v2 = vmul.f32 %v1496_v49, %v1493_v52  ;;  %v1511_v3 = vmul.f32 %v1496_v49, %v1494_v53 }
 0x36d   :  { %1516 = vst [vmem:[#allocation5 + $0x98] sm:$0xff] %v1500_v58  ;;  %v1512_v7 = vmul.f32 %v1496_v49, %v1495_v17  ;;  %1517 = vst [vmem:[#allocation5 + $0xa0] sm:$0xff] %v1501_v59 }
 0x36e   :  { %1518 = vst [vmem:[#allocation5 + $0xa8] sm:$0xff] %v1502_v35  ;;  %1519 = vst [vmem:[#allocation5 + $0xb0] sm:$0xff] %v1503_v60 }
 0x36f   :  { %1520 = vst [vmem:[#allocation5 + $0xb8] sm:$0xff] %v1504_v25  ;;  %1521 = vst [vmem:[#allocation5 + $0xc0] sm:$0xff] %v1505_v0 }
 0x370   :  { %1522 = vst [vmem:[#allocation5 + $0xc8] sm:$0xff] %v1506_v62  ;;  %1523 = vst [vmem:[#allocation5 + $0xd0] sm:$0xff] %v1507_v26 }
 0x371   :  { %1524 = vst [vmem:[#allocation5 + $0xd8] sm:$0xff] %v1508_v63  ;;  %1525 = vst [vmem:[#allocation5 + $0xe0] sm:$0xff] %v1509_v40 }
 0x372   :  { %1526 = vst [vmem:[#allocation5 + $0xe8] sm:$0xff] %v1510_v2  ;;  %1527 = vst [vmem:[#allocation5 + $0xf0] sm:$0xff] %v1511_v3 }
 0x373   :  { %1528 = vst [vmem:[#allocation5 + $0xf8] sm:$0xff] %v1512_v7 }
 0x374   :  { %1786 = shalt.err (!%p1783_p8)
}
 0x375   :  { %s1851_s12 = smov 128   ;;  %s1852_s26 = smov 8  }
 0x376   :  { %1540 = dma.vmem_to_hbm [thread:$0]  %s1535_s10, 4096, %s2871_s1, [#allocation3], %s1851_s12, %s1851_s12, %s1852_s26  }
 0x377   :  { %1821 = dma.done.wait [#allocation3], 4096  }
 0x378   :  { %1822 = vsyncadd [#allocation3], 4294963200 }
 0x379   :  { %1544 = vsyncpa [#allocation3], 1 }
 0x37a   :  { %1545 = vsyncpa [#allocation4], 1 }

</bundles_post_ra>
